<compile_context>
chip_gen: v7x
topology: tpu7x:2x2x1
jax: 0.10.0
libtpu: 0.0.40
codegen_flags: <defaults>
</compile_context>

<pallas_src>
import math
import functools

import jax
import jax.numpy as jnp
from jax.experimental import pallas as pl
from jax.experimental.pallas import tpu as pltpu

LN_EPS = 1e-5          # nn.LayerNorm default


def _generation_defaults():
    """(vmem_limit_bytes, max q-tile) tuned per TPU generation."""
    kind = ""
    try:
        kind = jax.devices()[0].device_kind.lower()
    except Exception:
        pass
    if "v7" in kind:
        # v7x: 64 MiB VMEM per TensorCore -> stay well under, smaller q tiles.
        return 56 * 1024 * 1024, 256
    # v5e / v6e: 128 MiB VMEM -> large tiles amortize per-step overhead and
    # keep the MXU fed (v5e especially benefits from big M tiles).
    return 96 * 1024 * 1024, 512


def _seq_tile(s, tq_max):
    # Tile Sq for pipelining; must be a multiple of 8 or equal the full extent.
    return s if s <= tq_max else tq_max


# -----------------------------------------------------------------------------
# Kernels
# -----------------------------------------------------------------------------
def _layernorm(x, gamma, beta):
    mu = jnp.mean(x, axis=-1, keepdims=True)
    var = jnp.mean((x - mu) * (x - mu), axis=-1, keepdims=True)
    return (x - mu) * jax.lax.rsqrt(var + LN_EPS) * gamma + beta


def mha_kernel(resid_ref, kv_ref, g_ref, beta_ref,
               wq_ref, bq_ref, wkv_ref, bkv_ref, wo_ref, bo_ref,
               o_ref, kvproj_ref, ctx_ref,
               *, heads, causal, normalize_kv, q_tile):
    d_model = resid_ref.shape[-1]
    dh = d_model // heads
    scale = 1.0 / math.sqrt(dh)

    gamma = g_ref[...]
    beta = beta_ref[...]

    # --- K/V LayerNorm + fused [K|V] projection: once per batch, cached in
    # VMEM scratch.  The t grid axis is "arbitrary" (sequential), so t == 0
    # runs before any other q-tile of this batch reads the cache.
    @pl.when(pl.program_id(1) == 0)
    def _():
        kvx = kv_ref[0]                                     # (Sk, D) f32
        kvn = _layernorm(kvx, gamma, beta) if normalize_kv else kvx
        kvn = kvn.astype(jnp.bfloat16)
        kv = jnp.dot(kvn, wkv_ref[...],
                     preferred_element_type=jnp.float32) + bkv_ref[...]
        kvproj_ref[...] = kv.astype(jnp.bfloat16)           # (Sk, 2D) bf16

    # --- Q path: fused pre-norm + projection; 1/sqrt(dh) folded into q.
    resid = resid_ref[0]                                    # (TQ, D) f32
    qn = _layernorm(resid, gamma, beta).astype(jnp.bfloat16)
    q = (jnp.dot(qn, wq_ref[...], preferred_element_type=jnp.float32)
         + bq_ref[...]) * scale                             # (TQ, D) f32

    tq = q.shape[0]
    sk = kv_ref.shape[1]

    if causal:
        q0 = pl.program_id(1) * q_tile                      # global row offset
        rows = q0 + jax.lax.broadcasted_iota(jnp.int32, (tq, sk), 0)
        cols = jax.lax.broadcasted_iota(jnp.int32, (tq, sk), 1)
        banned = cols > rows

    # Static per-head loop.  Each head's context is written into its lane slice
    # of a (TQ, D) bf16 slab; the output projection is then ONE D-contraction.
    # TODO(synk): switch to lax.fori_loop (with pl.multiple_of on slice starts)
    #             when head count is large, to bound vreg live ranges.
    for h in range(heads):
        lo = h * dh
        qh = q[:, lo:lo + dh].astype(jnp.bfloat16)                    # (TQ, dh)
        kh = kvproj_ref[:, lo:lo + dh]                                # (Sk, dh)
        vh = kvproj_ref[:, d_model + lo:d_model + lo + dh]            # (Sk, dh)
        # q @ k^T without materializing a transpose.
        s = jax.lax.dot_general(qh, kh, (((1,), (1,)), ((), ())),
                                preferred_element_type=jnp.float32)   # (TQ, Sk)
        if causal:
            s = jnp.where(banned, -1e9, s)       # single pass over score tile
        s = s - jnp.max(s, axis=-1, keepdims=True)
        e = jnp.exp(s)
        p = e * pl.reciprocal(jnp.sum(e, axis=-1, keepdims=True), approx=True)
        ctx = jnp.dot(p.astype(jnp.bfloat16), vh,
                      preferred_element_type=jnp.float32)             # (TQ, dh)
        ctx_ref[:, lo:lo + dh] = ctx.astype(jnp.bfloat16)

    out = jnp.dot(ctx_ref[...], wo_ref[...],
                  preferred_element_type=jnp.float32)                 # (TQ, D)
    o_ref[0] = resid + out + bo_ref[...]                    # fused residual add


def ffn_kernel(resid_ref, g_ref, beta_ref, w1_ref, b1_ref, w2_ref, b2_ref, o_ref):
    resid = resid_ref[0]                                    # (TQ, D) f32
    xn = _layernorm(resid, g_ref[...], beta_ref[...]).astype(jnp.bfloat16)
    h = jnp.dot(xn, w1_ref[...], preferred_element_type=jnp.float32) + b1_ref[...]
    h = jnp.maximum(h, 0.0).astype(jnp.bfloat16)            # ReLU
    out = jnp.dot(h, w2_ref[...], preferred_element_type=jnp.float32) + b2_ref[...]
    o_ref[0] = resid + out                                  # fused residual add


# -----------------------------------------------------------------------------
# Wrappers (pallas_call plumbing)
# -----------------------------------------------------------------------------
def _weight_specs(weights, single_buffer):
    """Full-array, grid-invariant blocks; optionally single-buffered."""
    specs = []
    for w in weights:
        nd = w.ndim
        kwargs = dict(pipeline_mode=pl.Buffered(1)) if single_buffer else {}
        specs.append(pl.BlockSpec(w.shape, lambda b, t, _nd=nd: (0,) * _nd, **kwargs))
    return specs


def _call_with_optional_single_buffering(build, args):
    # Prefer single-buffering grid-invariant blocks (halves their VMEM cost,
    # important on v7x); fall back if this jax version rejects pipeline_mode.
    try:
        return build(True)(*args)
    except Exception:
        return build(False)(*args)


def multihead_attention(resid, kv, p, gamma, beta, heads, *, causal, normalize_kv):
    B, Sq, D = resid.shape
    Sk = kv.shape[1]
    vmem_limit, tq_max = _generation_defaults()
    TQ = _seq_tile(Sq, tq_max)
    assert Sq % TQ == 0
    n_tq = Sq // TQ

    weights = [gamma, beta, p["wq"], p["bq"], p["wkv"], p["bkv"], p["wo"], p["bo"]]
    kern = functools.partial(mha_kernel, heads=heads, causal=causal,
                             normalize_kv=normalize_kv, q_tile=TQ)

    def build(single_buffer):
        kv_kwargs = dict(pipeline_mode=pl.Buffered(1)) if single_buffer else {}
        return pl.pallas_call(
            kern,
            out_shape=jax.ShapeDtypeStruct((B, Sq, D), jnp.float32),
            grid=(B, n_tq),
            in_specs=[pl.BlockSpec((1, TQ, D), lambda b, t: (b, t, 0)),
                      # kv source block is constant over t -> single-buffer it.
                      pl.BlockSpec((1, Sk, D), lambda b, t: (b, 0, 0), **kv_kwargs)]
                     + _weight_specs(weights, single_buffer),
            out_specs=pl.BlockSpec((1, TQ, D), lambda b, t: (b, t, 0)),
            scratch_shapes=[pltpu.VMEM((Sk, 2 * D), jnp.bfloat16),  # cached [K|V] proj
                            pltpu.VMEM((TQ, D), jnp.bfloat16)],     # per-head ctx slab
            compiler_params=pltpu.CompilerParams(
                # batch "parallel" (megacore / 2 TCs), q-tile axis "arbitrary"
                # so the t==0 KV cache is computed before later tiles reuse it.
                dimension_semantics=("parallel", "arbitrary"),
                vmem_limit_bytes=vmem_limit),
        )

    return _call_with_optional_single_buffering(build, (resid, kv, *weights))


def feed_forward(resid, p, gamma, beta):
    B, S, D = resid.shape
    vmem_limit, tq_max = _generation_defaults()
    TQ = _seq_tile(S, tq_max)
    assert S % TQ == 0
    n_t = S // TQ

    weights = [gamma, beta, p["w1"], p["b1"], p["w2"], p["b2"]]

    def build(single_buffer):
        return pl.pallas_call(
            ffn_kernel,
            out_shape=jax.ShapeDtypeStruct((B, S, D), jnp.float32),
            grid=(B, n_t),
            in_specs=[pl.BlockSpec((1, TQ, D), lambda b, t: (b, t, 0))]
                     + _weight_specs(weights, single_buffer),
            out_specs=pl.BlockSpec((1, TQ, D), lambda b, t: (b, t, 0)),
            compiler_params=pltpu.CompilerParams(
                dimension_semantics=("parallel", "parallel"),
                vmem_limit_bytes=vmem_limit),
        )

    return _call_with_optional_single_buffering(build, (resid, *weights))


def decoder_layer(x, memory, params, heads):
    # sublayer 0: causal self-attention (pre-norm residual, LN fused in-kernel)
    x = multihead_attention(x, x, params["self_attn"], params["ln0_g"],
                            params["ln0_b"], heads, causal=True, normalize_kv=True)
    # sublayer 1: cross-attention over encoder memory (no mask; memory not normed)
    x = multihead_attention(x, memory, params["src_attn"], params["ln1_g"],
                            params["ln1_b"], heads, causal=False, normalize_kv=False)
    # sublayer 2: feed-forward
    return feed_forward(x, params["ffn"], params["ln2_g"], params["ln2_b"])


# -----------------------------------------------------------------------------
# Parameters: PyTorch nn.Linear-style init + one-time kernel-ready preparation
# -----------------------------------------------------------------------------
def _linear(key, fan_in, fan_out):
    kw, kb = jax.random.split(key)
    bound = 1.0 / math.sqrt(fan_in)
    w = jax.random.uniform(kw, (fan_in, fan_out), jnp.float32, -bound, bound)
    b = jax.random.uniform(kb, (1, fan_out), jnp.float32, -bound, bound)
    return w, b


def init_params(key, d_model, hidden):
    keys = jax.random.split(key, 4)

    def attn_params(k):
        ks = jax.random.split(k, 4)
        wq, bq = _linear(ks[0], d_model, d_model)
        wk, bk = _linear(ks[1], d_model, d_model)
        wv, bv = _linear(ks[2], d_model, d_model)
        wo, bo = _linear(ks[3], d_model, d_model)
        return dict(wq=wq, bq=bq, wk=wk, bk=bk, wv=wv, bv=bv, wo=wo, bo=bo)

    w1, b1 = _linear(keys[2], d_model, hidden)
    w2, b2 = _linear(keys[3], hidden, d_model)
    return {
        "self_attn": attn_params(keys[0]),
        "src_attn": attn_params(keys[1]),
        "ffn": dict(w1=w1, b1=b1, w2=w2, b2=b2),
        "ln0_g": jnp.ones((1, d_model), jnp.float32),
        "ln0_b": jnp.zeros((1, d_model), jnp.float32),
        "ln1_g": jnp.ones((1, d_model), jnp.float32),
        "ln1_b": jnp.zeros((1, d_model), jnp.float32),
        "ln2_g": jnp.ones((1, d_model), jnp.float32),
        "ln2_b": jnp.zeros((1, d_model), jnp.float32),
    }


def prepare_params(params):
    """One-time conversion to kernel-ready layout (bf16 weights, fused [K|V]).

    Done once at parameter-preparation time so the per-step forward pass never
    re-reads f32 weights just to cast/concatenate them.
    """
    def attn(p):
        return dict(
            wq=p["wq"].astype(jnp.bfloat16), bq=p["bq"],
            wkv=jnp.concatenate([p["wk"], p["wv"]], axis=1).astype(jnp.bfloat16),
            bkv=jnp.concatenate([p["bk"], p["bv"]], axis=1),
            wo=p["wo"].astype(jnp.bfloat16), bo=p["bo"])

    out = dict(params)
    out["self_attn"] = attn(params["self_attn"])
    out["src_attn"] = attn(params["src_attn"])
    out["ffn"] = dict(w1=params["ffn"]["w1"].astype(jnp.bfloat16),
                      b1=params["ffn"]["b1"],
                      w2=params["ffn"]["w2"].astype(jnp.bfloat16),
                      b2=params["ffn"]["b2"])
    return out


# -----------------------------------------------------------------------------
if __name__ == "__main__":
    B, S, S_MEM = 2, 8, 8
    D_MODEL, HEADS, HIDDEN = 32, 4, 64

    key = jax.random.PRNGKey(0)
    kx, kmem, kp = jax.random.split(key, 3)

    x = jax.random.normal(kx, (B, S, D_MODEL), jnp.float32)
    memory = jax.random.normal(kmem, (B, S_MEM, D_MODEL), jnp.float32)
    params = prepare_params(init_params(kp, D_MODEL, HIDDEN))

    # Causal (trg) mask is generated inside the self-attention kernel via iota;
    # src_mask=None semantics -> cross-attention runs unmasked.
    out = decoder_layer(x, memory, params, HEADS)
    out = jax.block_until_ready(out)
    assert out.shape == (B, S, D_MODEL) and jnp.all(jnp.isfinite(out))
    print("KERNEL_OK")
</pallas_src>

<mosaic_0001>
module attributes {stable_mosaic.version = 11 : i64} {
  func.func @mha_kernel(%arg0: i32, %arg1: i32, %arg2: memref<1x8x32xf32, #tpu.memory_space<vmem>>, %arg3: memref<1x8x32xf32, #tpu.memory_space<vmem>>, %arg4: memref<1x32xf32, #tpu.memory_space<vmem>>, %arg5: memref<1x32xf32, #tpu.memory_space<vmem>>, %arg6: memref<32x32xbf16, #tpu.memory_space<vmem>>, %arg7: memref<1x32xf32, #tpu.memory_space<vmem>>, %arg8: memref<32x64xbf16, #tpu.memory_space<vmem>>, %arg9: memref<1x64xf32, #tpu.memory_space<vmem>>, %arg10: memref<32x32xbf16, #tpu.memory_space<vmem>>, %arg11: memref<1x32xf32, #tpu.memory_space<vmem>>, %arg12: memref<1x8x32xf32, #tpu.memory_space<vmem>>, %arg13: memref<8x64xbf16, #tpu.memory_space<vmem>>, %arg14: memref<8x32xbf16, #tpu.memory_space<vmem>>) attributes {dimension_semantics = [#tpu.dimension_semantics<parallel>, #tpu.dimension_semantics<arbitrary>], iteration_bounds = array<i64: 2, 1>, scalar_prefetch = 0 : i64, scratch_operands = 2 : i64, tpu.core_type = #tpu.core_type<tc>, window_params = [{transform_indices = @transform_0, window_bounds = array<i64: 1, 8, 32>}, {pipeline_mode = #tpu.pipeline_mode<synchronous>, transform_indices = @transform_1, window_bounds = array<i64: 1, 8, 32>}, {pipeline_mode = #tpu.pipeline_mode<synchronous>, transform_indices = @transform_2, window_bounds = array<i64: 1, 32>}, {pipeline_mode = #tpu.pipeline_mode<synchronous>, transform_indices = @transform_3, window_bounds = array<i64: 1, 32>}, {pipeline_mode = #tpu.pipeline_mode<synchronous>, transform_indices = @transform_4, window_bounds = array<i64: 32, 32>}, {pipeline_mode = #tpu.pipeline_mode<synchronous>, transform_indices = @transform_5, window_bounds = array<i64: 1, 32>}, {pipeline_mode = #tpu.pipeline_mode<synchronous>, transform_indices = @transform_6, window_bounds = array<i64: 32, 64>}, {pipeline_mode = #tpu.pipeline_mode<synchronous>, transform_indices = @transform_7, window_bounds = array<i64: 1, 64>}, {pipeline_mode = #tpu.pipeline_mode<synchronous>, transform_indices = @transform_8, window_bounds = array<i64: 32, 32>}, {pipeline_mode = #tpu.pipeline_mode<synchronous>, transform_indices = @transform_9, window_bounds = array<i64: 1, 32>}, {transform_indices = @transform_10, window_bounds = array<i64: 1, 8, 32>}]} {
    %c0 = arith.constant 0 : index
    %c0_0 = arith.constant 0 : index
    %0 = vector.load %arg4[%c0, %c0_0] : memref<1x32xf32, #tpu.memory_space<vmem>>, vector<1x32xf32>
    %c0_1 = arith.constant 0 : index
    %c0_2 = arith.constant 0 : index
    %1 = vector.load %arg5[%c0_1, %c0_2] : memref<1x32xf32, #tpu.memory_space<vmem>>, vector<1x32xf32>
    %c0_i32 = arith.constant 0 : i32
    %2 = arith.cmpi eq, %arg1, %c0_i32 : i32
    %3 = arith.extui %2 : i1 to i32
    %c0_i32_3 = arith.constant 0 : i32
    %4 = arith.cmpi ne, %3, %c0_i32_3 : i32
    scf.if %4 {
      %c0_64 = arith.constant 0 : index
      %c0_65 = arith.constant 0 : index
      %c0_66 = arith.constant 0 : index
      %139 = vector.load %arg3[%c0_64, %c0_65, %c0_66] : memref<1x8x32xf32, #tpu.memory_space<vmem>>, vector<1x8x32xf32>
      %140 = vector.shape_cast %139 : vector<1x8x32xf32> to vector<8x32xf32>
      %cst_67 = arith.constant dense<0.000000e+00> : vector<8xf32>
      %141 = vector.multi_reduction <add>, %140, %cst_67 [1] : vector<8x32xf32> to vector<8xf32>
      %142 = vector.shape_cast %141 : vector<8xf32> to vector<8x1xf32>
      %cst_68 = arith.constant 3.200000e+01 : f32
      %143 = vector.broadcast %cst_68 : f32 to vector<8x1xf32>
      %144 = arith.divf %142, %143 : vector<8x1xf32>
      %145 = vector.broadcast %144 : vector<8x1xf32> to vector<8x32xf32>
      %146 = arith.subf %140, %145 : vector<8x32xf32>
      %147 = vector.broadcast %144 : vector<8x1xf32> to vector<8x32xf32>
      %148 = arith.subf %140, %147 : vector<8x32xf32>
      %149 = arith.mulf %146, %148 : vector<8x32xf32>
      %cst_69 = arith.constant dense<0.000000e+00> : vector<8xf32>
      %150 = vector.multi_reduction <add>, %149, %cst_69 [1] : vector<8x32xf32> to vector<8xf32>
      %151 = vector.shape_cast %150 : vector<8xf32> to vector<8x1xf32>
      %cst_70 = arith.constant 3.200000e+01 : f32
      %152 = vector.broadcast %cst_70 : f32 to vector<8x1xf32>
      %153 = arith.divf %151, %152 : vector<8x1xf32>
      %154 = vector.broadcast %144 : vector<8x1xf32> to vector<8x32xf32>
      %155 = arith.subf %140, %154 : vector<8x32xf32>
      %cst_71 = arith.constant 9.99999974E-6 : f32
      %156 = vector.broadcast %cst_71 : f32 to vector<8x1xf32>
      %157 = arith.addf %153, %156 : vector<8x1xf32>
      %158 = math.rsqrt %157 : vector<8x1xf32>
      %159 = vector.broadcast %158 : vector<8x1xf32> to vector<8x32xf32>
      %160 = arith.mulf %155, %159 : vector<8x32xf32>
      %161 = vector.broadcast %0 : vector<1x32xf32> to vector<8x32xf32>
      %162 = arith.mulf %160, %161 : vector<8x32xf32>
      %163 = vector.broadcast %1 : vector<1x32xf32> to vector<8x32xf32>
      %164 = arith.addf %162, %163 : vector<8x32xf32>
      %165 = arith.truncf %164 : vector<8x32xf32> to vector<8x32xbf16>
      %c0_72 = arith.constant 0 : index
      %c0_73 = arith.constant 0 : index
      %166 = vector.load %arg8[%c0_72, %c0_73] : memref<32x64xbf16, #tpu.memory_space<vmem>>, vector<32x64xbf16>
      %cst_74 = arith.constant dense<0.000000e+00> : vector<8x64xf32>
      %167 = tpu.matmul %165, %166, %cst_74 {dimension_numbers = #tpu.dot_dimension_numbers<[1], [0], [0], [1], [0, 0, 1, 1], [], []>} : vector<8x32xbf16>, vector<32x64xbf16>, vector<8x64xf32> -> vector<8x64xf32>
      %c0_75 = arith.constant 0 : index
      %c0_76 = arith.constant 0 : index
      %168 = vector.load %arg9[%c0_75, %c0_76] : memref<1x64xf32, #tpu.memory_space<vmem>>, vector<1x64xf32>
      %169 = vector.broadcast %168 : vector<1x64xf32> to vector<8x64xf32>
      %170 = arith.addf %167, %169 : vector<8x64xf32>
      %171 = arith.truncf %170 : vector<8x64xf32> to vector<8x64xbf16>
      %c0_77 = arith.constant 0 : index
      %c0_78 = arith.constant 0 : index
      %172 = vector.load %arg13[%c0_77, %c0_78] : memref<8x64xbf16, #tpu.memory_space<vmem>>, vector<8x64xbf16>
      tpu.vector_store %arg13[%c0_77, %c0_78], %171 {strides = array<i32>} : memref<8x64xbf16, #tpu.memory_space<vmem>>, vector<8x64xbf16>,
    } else {
    }
    %c0_4 = arith.constant 0 : index
    %c0_5 = arith.constant 0 : index
    %c0_6 = arith.constant 0 : index
    %5 = vector.load %arg2[%c0_4, %c0_5, %c0_6] : memref<1x8x32xf32, #tpu.memory_space<vmem>>, vector<1x8x32xf32>
    %6 = vector.shape_cast %5 : vector<1x8x32xf32> to vector<8x32xf32>
    %cst = arith.constant dense<0.000000e+00> : vector<8xf32>
    %7 = vector.multi_reduction <add>, %6, %cst [1] : vector<8x32xf32> to vector<8xf32>
    %8 = vector.shape_cast %7 : vector<8xf32> to vector<8x1xf32>
    %cst_7 = arith.constant 3.200000e+01 : f32
    %9 = vector.broadcast %cst_7 : f32 to vector<8x1xf32>
    %10 = arith.divf %8, %9 : vector<8x1xf32>
    %11 = vector.broadcast %10 : vector<8x1xf32> to vector<8x32xf32>
    %12 = arith.subf %6, %11 : vector<8x32xf32>
    %13 = vector.broadcast %10 : vector<8x1xf32> to vector<8x32xf32>
    %14 = arith.subf %6, %13 : vector<8x32xf32>
    %15 = arith.mulf %12, %14 : vector<8x32xf32>
    %cst_8 = arith.constant dense<0.000000e+00> : vector<8xf32>
    %16 = vector.multi_reduction <add>, %15, %cst_8 [1] : vector<8x32xf32> to vector<8xf32>
    %17 = vector.shape_cast %16 : vector<8xf32> to vector<8x1xf32>
    %cst_9 = arith.constant 3.200000e+01 : f32
    %18 = vector.broadcast %cst_9 : f32 to vector<8x1xf32>
    %19 = arith.divf %17, %18 : vector<8x1xf32>
    %20 = vector.broadcast %10 : vector<8x1xf32> to vector<8x32xf32>
    %21 = arith.subf %6, %20 : vector<8x32xf32>
    %cst_10 = arith.constant 9.99999974E-6 : f32
    %22 = vector.broadcast %cst_10 : f32 to vector<8x1xf32>
    %23 = arith.addf %19, %22 : vector<8x1xf32>
    %24 = math.rsqrt %23 : vector<8x1xf32>
    %25 = vector.broadcast %24 : vector<8x1xf32> to vector<8x32xf32>
    %26 = arith.mulf %21, %25 : vector<8x32xf32>
    %27 = vector.broadcast %0 : vector<1x32xf32> to vector<8x32xf32>
    %28 = arith.mulf %26, %27 : vector<8x32xf32>
    %29 = vector.broadcast %1 : vector<1x32xf32> to vector<8x32xf32>
    %30 = arith.addf %28, %29 : vector<8x32xf32>
    %31 = arith.truncf %30 : vector<8x32xf32> to vector<8x32xbf16>
    %c0_11 = arith.constant 0 : index
    %c0_12 = arith.constant 0 : index
    %32 = vector.load %arg6[%c0_11, %c0_12] : memref<32x32xbf16, #tpu.memory_space<vmem>>, vector<32x32xbf16>
    %cst_13 = arith.constant dense<0.000000e+00> : vector<8x32xf32>
    %33 = tpu.matmul %31, %32, %cst_13 {dimension_numbers = #tpu.dot_dimension_numbers<[1], [0], [0], [1], [0, 0, 1, 1], [], []>} : vector<8x32xbf16>, vector<32x32xbf16>, vector<8x32xf32> -> vector<8x32xf32>
    %c0_14 = arith.constant 0 : index
    %c0_15 = arith.constant 0 : index
    %34 = vector.load %arg7[%c0_14, %c0_15] : memref<1x32xf32, #tpu.memory_space<vmem>>, vector<1x32xf32>
    %35 = vector.broadcast %34 : vector<1x32xf32> to vector<8x32xf32>
    %36 = arith.addf %33, %35 : vector<8x32xf32>
    %cst_16 = arith.constant 0.353553385 : f32
    %37 = vector.broadcast %cst_16 : f32 to vector<8x32xf32>
    %38 = arith.mulf %36, %37 : vector<8x32xf32>
    %c8_i32 = arith.constant 8 : i32
    %39 = arith.muli %arg1, %c8_i32 : i32
    %40 = tpu.iota {dimensions = array<i32: 0>} : vector<8x8xi32>
    %41 = vector.broadcast %39 : i32 to vector<8x8xi32>
    %42 = arith.addi %41, %40 : vector<8x8xi32>
    %43 = tpu.iota {dimensions = array<i32: 1>} : vector<8x8xi32>
    %44 = arith.cmpi sgt, %43, %42 : vector<8x8xi32>
    %45 = vector.extract_strided_slice %38 {offsets = [0, 0], sizes = [8, 8], strides = [1, 1]} : vector<8x32xf32> to vector<8x8xf32>
    %46 = arith.truncf %45 : vector<8x8xf32> to vector<8x8xbf16>
    %c0_17 = arith.constant 0 : index
    %c0_18 = arith.constant 0 : index
    %47 = vector.load %arg13[%c0_17, %c0_18] : memref<8x64xbf16, #tpu.memory_space<vmem>>, vector<8x8xbf16>
    %c0_19 = arith.constant 0 : index
    %c32 = arith.constant 32 : index
    %48 = vector.load %arg13[%c0_19, %c32] : memref<8x64xbf16, #tpu.memory_space<vmem>>, vector<8x8xbf16>
    %cst_20 = arith.constant dense<0.000000e+00> : vector<8x8xf32>
    %49 = tpu.matmul %46, %47, %cst_20 {dimension_numbers = #tpu.dot_dimension_numbers<[1], [1], [0], [0], [0, 0, 1, 0], [], []>} : vector<8x8xbf16>, vector<8x8xbf16>, vector<8x8xf32> -> vector<8x8xf32>
    %cst_21 = arith.constant -1.000000e+09 : f32
    %50 = vector.broadcast %cst_21 : f32 to vector<8x8xf32>
    %51 = arith.select %44, %50, %49 : vector<8x8xi1>, vector<8x8xf32>
    %cst_22 = arith.constant dense<0xFF800000> : vector<8xf32>
    %52 = vector.multi_reduction <maximumf>, %51, %cst_22 [1] : vector<8x8xf32> to vector<8xf32>
    %53 = vector.shape_cast %52 : vector<8xf32> to vector<8x1xf32>
    %54 = vector.broadcast %53 : vector<8x1xf32> to vector<8x8xf32>
    %55 = arith.subf %51, %54 : vector<8x8xf32>
    %56 = math.exp %55 : vector<8x8xf32>
    %cst_23 = arith.constant dense<0.000000e+00> : vector<8xf32>
    %57 = vector.multi_reduction <add>, %56, %cst_23 [1] : vector<8x8xf32> to vector<8xf32>
    %58 = vector.shape_cast %57 : vector<8xf32> to vector<8x1xf32>
    %59 = tpu.reciprocal %58 {approx = true} : vector<8x1xf32> -> vector<8x1xf32>
    %60 = vector.broadcast %59 : vector<8x1xf32> to vector<8x8xf32>
    %61 = arith.mulf %56, %60 : vector<8x8xf32>
    %62 = arith.truncf %61 : vector<8x8xf32> to vector<8x8xbf16>
    %cst_24 = arith.constant dense<0.000000e+00> : vector<8x8xf32>
    %63 = tpu.matmul %62, %48, %cst_24 {dimension_numbers = #tpu.dot_dimension_numbers<[1], [0], [0], [1], [0, 0, 1, 1], [], []>} : vector<8x8xbf16>, vector<8x8xbf16>, vector<8x8xf32> -> vector<8x8xf32>
    %64 = arith.truncf %63 : vector<8x8xf32> to vector<8x8xbf16>
    %c0_25 = arith.constant 0 : index
    %c0_26 = arith.constant 0 : index
    %65 = vector.load %arg14[%c0_25, %c0_26] : memref<8x32xbf16, #tpu.memory_space<vmem>>, vector<8x8xbf16>
    tpu.vector_store %arg14[%c0_25, %c0_26], %64 {strides = array<i32>} : memref<8x32xbf16, #tpu.memory_space<vmem>>, vector<8x8xbf16>,
    %66 = vector.extract_strided_slice %38 {offsets = [0, 8], sizes = [8, 8], strides = [1, 1]} : vector<8x32xf32> to vector<8x8xf32>
    %67 = arith.truncf %66 : vector<8x8xf32> to vector<8x8xbf16>
    %c0_27 = arith.constant 0 : index
    %c8 = arith.constant 8 : index
    %68 = vector.load %arg13[%c0_27, %c8] : memref<8x64xbf16, #tpu.memory_space<vmem>>, vector<8x8xbf16>
    %c0_28 = arith.constant 0 : index
    %c40 = arith.constant 40 : index
    %69 = vector.load %arg13[%c0_28, %c40] : memref<8x64xbf16, #tpu.memory_space<vmem>>, vector<8x8xbf16>
    %cst_29 = arith.constant dense<0.000000e+00> : vector<8x8xf32>
    %70 = tpu.matmul %67, %68, %cst_29 {dimension_numbers = #tpu.dot_dimension_numbers<[1], [1], [0], [0], [0, 0, 1, 0], [], []>} : vector<8x8xbf16>, vector<8x8xbf16>, vector<8x8xf32> -> vector<8x8xf32>
    %cst_30 = arith.constant -1.000000e+09 : f32
    %71 = vector.broadcast %cst_30 : f32 to vector<8x8xf32>
    %72 = arith.select %44, %71, %70 : vector<8x8xi1>, vector<8x8xf32>
    %cst_31 = arith.constant dense<0xFF800000> : vector<8xf32>
    %73 = vector.multi_reduction <maximumf>, %72, %cst_31 [1] : vector<8x8xf32> to vector<8xf32>
    %74 = vector.shape_cast %73 : vector<8xf32> to vector<8x1xf32>
    %75 = vector.broadcast %74 : vector<8x1xf32> to vector<8x8xf32>
    %76 = arith.subf %72, %75 : vector<8x8xf32>
    %77 = math.exp %76 : vector<8x8xf32>
    %cst_32 = arith.constant dense<0.000000e+00> : vector<8xf32>
    %78 = vector.multi_reduction <add>, %77, %cst_32 [1] : vector<8x8xf32> to vector<8xf32>
    %79 = vector.shape_cast %78 : vector<8xf32> to vector<8x1xf32>
    %80 = tpu.reciprocal %79 {approx = true} : vector<8x1xf32> -> vector<8x1xf32>
    %81 = vector.broadcast %80 : vector<8x1xf32> to vector<8x8xf32>
    %82 = arith.mulf %77, %81 : vector<8x8xf32>
    %83 = arith.truncf %82 : vector<8x8xf32> to vector<8x8xbf16>
    %cst_33 = arith.constant dense<0.000000e+00> : vector<8x8xf32>
    %84 = tpu.matmul %83, %69, %cst_33 {dimension_numbers = #tpu.dot_dimension_numbers<[1], [0], [0], [1], [0, 0, 1, 1], [], []>} : vector<8x8xbf16>, vector<8x8xbf16>, vector<8x8xf32> -> vector<8x8xf32>
    %85 = arith.truncf %84 : vector<8x8xf32> to vector<8x8xbf16>
    %c0_34 = arith.constant 0 : index
    %c8_35 = arith.constant 8 : index
    %86 = vector.load %arg14[%c0_34, %c8_35] : memref<8x32xbf16, #tpu.memory_space<vmem>>, vector<8x8xbf16>
    tpu.vector_store %arg14[%c0_34, %c8_35], %85 {strides = array<i32>} : memref<8x32xbf16, #tpu.memory_space<vmem>>, vector<8x8xbf16>,
    %87 = vector.extract_strided_slice %38 {offsets = [0, 16], sizes = [8, 8], strides = [1, 1]} : vector<8x32xf32> to vector<8x8xf32>
    %88 = arith.truncf %87 : vector<8x8xf32> to vector<8x8xbf16>
    %c0_36 = arith.constant 0 : index
    %c16 = arith.constant 16 : index
    %89 = vector.load %arg13[%c0_36, %c16] : memref<8x64xbf16, #tpu.memory_space<vmem>>, vector<8x8xbf16>
    %c0_37 = arith.constant 0 : index
    %c48 = arith.constant 48 : index
    %90 = vector.load %arg13[%c0_37, %c48] : memref<8x64xbf16, #tpu.memory_space<vmem>>, vector<8x8xbf16>
    %cst_38 = arith.constant dense<0.000000e+00> : vector<8x8xf32>
    %91 = tpu.matmul %88, %89, %cst_38 {dimension_numbers = #tpu.dot_dimension_numbers<[1], [1], [0], [0], [0, 0, 1, 0], [], []>} : vector<8x8xbf16>, vector<8x8xbf16>, vector<8x8xf32> -> vector<8x8xf32>
    %cst_39 = arith.constant -1.000000e+09 : f32
    %92 = vector.broadcast %cst_39 : f32 to vector<8x8xf32>
    %93 = arith.select %44, %92, %91 : vector<8x8xi1>, vector<8x8xf32>
    %cst_40 = arith.constant dense<0xFF800000> : vector<8xf32>
    %94 = vector.multi_reduction <maximumf>, %93, %cst_40 [1] : vector<8x8xf32> to vector<8xf32>
    %95 = vector.shape_cast %94 : vector<8xf32> to vector<8x1xf32>
    %96 = vector.broadcast %95 : vector<8x1xf32> to vector<8x8xf32>
    %97 = arith.subf %93, %96 : vector<8x8xf32>
    %98 = math.exp %97 : vector<8x8xf32>
    %cst_41 = arith.constant dense<0.000000e+00> : vector<8xf32>
    %99 = vector.multi_reduction <add>, %98, %cst_41 [1] : vector<8x8xf32> to vector<8xf32>
    %100 = vector.shape_cast %99 : vector<8xf32> to vector<8x1xf32>
    %101 = tpu.reciprocal %100 {approx = true} : vector<8x1xf32> -> vector<8x1xf32>
    %102 = vector.broadcast %101 : vector<8x1xf32> to vector<8x8xf32>
    %103 = arith.mulf %98, %102 : vector<8x8xf32>
    %104 = arith.truncf %103 : vector<8x8xf32> to vector<8x8xbf16>
    %cst_42 = arith.constant dense<0.000000e+00> : vector<8x8xf32>
    %105 = tpu.matmul %104, %90, %cst_42 {dimension_numbers = #tpu.dot_dimension_numbers<[1], [0], [0], [1], [0, 0, 1, 1], [], []>} : vector<8x8xbf16>, vector<8x8xbf16>, vector<8x8xf32> -> vector<8x8xf32>
    %106 = arith.truncf %105 : vector<8x8xf32> to vector<8x8xbf16>
    %c0_43 = arith.constant 0 : index
    %c16_44 = arith.constant 16 : index
    %107 = vector.load %arg14[%c0_43, %c16_44] : memref<8x32xbf16, #tpu.memory_space<vmem>>, vector<8x8xbf16>
    tpu.vector_store %arg14[%c0_43, %c16_44], %106 {strides = array<i32>} : memref<8x32xbf16, #tpu.memory_space<vmem>>, vector<8x8xbf16>,
    %108 = vector.extract_strided_slice %38 {offsets = [0, 24], sizes = [8, 8], strides = [1, 1]} : vector<8x32xf32> to vector<8x8xf32>
    %109 = arith.truncf %108 : vector<8x8xf32> to vector<8x8xbf16>
    %c0_45 = arith.constant 0 : index
    %c24 = arith.constant 24 : index
    %110 = vector.load %arg13[%c0_45, %c24] : memref<8x64xbf16, #tpu.memory_space<vmem>>, vector<8x8xbf16>
    %c0_46 = arith.constant 0 : index
    %c56 = arith.constant 56 : index
    %111 = vector.load %arg13[%c0_46, %c56] : memref<8x64xbf16, #tpu.memory_space<vmem>>, vector<8x8xbf16>
    %cst_47 = arith.constant dense<0.000000e+00> : vector<8x8xf32>
    %112 = tpu.matmul %109, %110, %cst_47 {dimension_numbers = #tpu.dot_dimension_numbers<[1], [1], [0], [0], [0, 0, 1, 0], [], []>} : vector<8x8xbf16>, vector<8x8xbf16>, vector<8x8xf32> -> vector<8x8xf32>
    %cst_48 = arith.constant -1.000000e+09 : f32
    %113 = vector.broadcast %cst_48 : f32 to vector<8x8xf32>
    %114 = arith.select %44, %113, %112 : vector<8x8xi1>, vector<8x8xf32>
    %cst_49 = arith.constant dense<0xFF800000> : vector<8xf32>
    %115 = vector.multi_reduction <maximumf>, %114, %cst_49 [1] : vector<8x8xf32> to vector<8xf32>
    %116 = vector.shape_cast %115 : vector<8xf32> to vector<8x1xf32>
    %117 = vector.broadcast %116 : vector<8x1xf32> to vector<8x8xf32>
    %118 = arith.subf %114, %117 : vector<8x8xf32>
    %119 = math.exp %118 : vector<8x8xf32>
    %cst_50 = arith.constant dense<0.000000e+00> : vector<8xf32>
    %120 = vector.multi_reduction <add>, %119, %cst_50 [1] : vector<8x8xf32> to vector<8xf32>
    %121 = vector.shape_cast %120 : vector<8xf32> to vector<8x1xf32>
    %122 = tpu.reciprocal %121 {approx = true} : vector<8x1xf32> -> vector<8x1xf32>
    %123 = vector.broadcast %122 : vector<8x1xf32> to vector<8x8xf32>
    %124 = arith.mulf %119, %123 : vector<8x8xf32>
    %125 = arith.truncf %124 : vector<8x8xf32> to vector<8x8xbf16>
    %cst_51 = arith.constant dense<0.000000e+00> : vector<8x8xf32>
    %126 = tpu.matmul %125, %111, %cst_51 {dimension_numbers = #tpu.dot_dimension_numbers<[1], [0], [0], [1], [0, 0, 1, 1], [], []>} : vector<8x8xbf16>, vector<8x8xbf16>, vector<8x8xf32> -> vector<8x8xf32>
    %127 = arith.truncf %126 : vector<8x8xf32> to vector<8x8xbf16>
    %c0_52 = arith.constant 0 : index
    %c24_53 = arith.constant 24 : index
    %128 = vector.load %arg14[%c0_52, %c24_53] : memref<8x32xbf16, #tpu.memory_space<vmem>>, vector<8x8xbf16>
    tpu.vector_store %arg14[%c0_52, %c24_53], %127 {strides = array<i32>} : memref<8x32xbf16, #tpu.memory_space<vmem>>, vector<8x8xbf16>,
    %c0_54 = arith.constant 0 : index
    %c0_55 = arith.constant 0 : index
    %129 = vector.load %arg14[%c0_54, %c0_55] : memref<8x32xbf16, #tpu.memory_space<vmem>>, vector<8x32xbf16>
    %c0_56 = arith.constant 0 : index
    %c0_57 = arith.constant 0 : index
    %130 = vector.load %arg10[%c0_56, %c0_57] : memref<32x32xbf16, #tpu.memory_space<vmem>>, vector<32x32xbf16>
    %cst_58 = arith.constant dense<0.000000e+00> : vector<8x32xf32>
    %131 = tpu.matmul %129, %130, %cst_58 {dimension_numbers = #tpu.dot_dimension_numbers<[1], [0], [0], [1], [0, 0, 1, 1], [], []>} : vector<8x32xbf16>, vector<32x32xbf16>, vector<8x32xf32> -> vector<8x32xf32>
    %132 = arith.addf %6, %131 : vector<8x32xf32>
    %c0_59 = arith.constant 0 : index
    %c0_60 = arith.constant 0 : index
    %133 = vector.load %arg11[%c0_59, %c0_60] : memref<1x32xf32, #tpu.memory_space<vmem>>, vector<1x32xf32>
    %134 = vector.broadcast %133 : vector<1x32xf32> to vector<8x32xf32>
    %135 = arith.addf %132, %134 : vector<8x32xf32>
    %c0_61 = arith.constant 0 : index
    %c0_62 = arith.constant 0 : index
    %c0_63 = arith.constant 0 : index
    %136 = vector.load %arg12[%c0_61, %c0_62, %c0_63] : memref<1x8x32xf32, #tpu.memory_space<vmem>>, vector<1x8x32xf32>
    %137 = vector.shape_cast %136 : vector<1x8x32xf32> to vector<8x32xf32>
    %138 = vector.shape_cast %135 : vector<8x32xf32> to vector<1x8x32xf32>
    tpu.vector_store %arg12[%c0_61, %c0_62, %c0_63], %138 {strides = array<i32>} : memref<1x8x32xf32, #tpu.memory_space<vmem>>, vector<1x8x32xf32>,
    return
  }
  func.func @transform_0(%arg0: i32, %arg1: i32) -> (i32, i32, i32) {
    %c0_i32 = arith.constant 0 : i32
    %c0_i32_0 = arith.constant 0 : i32
    return %arg0, %arg1, %c0_i32 : i32, i32, i32
  }
  func.func @transform_1(%arg0: i32, %arg1: i32) -> (i32, i32, i32) {
    %c0_i32 = arith.constant 0 : i32
    %c0_i32_0 = arith.constant 0 : i32
    %c0_i32_1 = arith.constant 0 : i32
    return %arg0, %c0_i32, %c0_i32_0 : i32, i32, i32
  }
  func.func @transform_2(%arg0: i32, %arg1: i32) -> (i32, i32) {
    %c0_i32 = arith.constant 0 : i32
    %c0_i32_0 = arith.constant 0 : i32
    %c0_i32_1 = arith.constant 0 : i32
    return %c0_i32, %c0_i32_0 : i32, i32
  }
  func.func @transform_3(%arg0: i32, %arg1: i32) -> (i32, i32) {
    %c0_i32 = arith.constant 0 : i32
    %c0_i32_0 = arith.constant 0 : i32
    %c0_i32_1 = arith.constant 0 : i32
    return %c0_i32, %c0_i32_0 : i32, i32
  }
  func.func @transform_4(%arg0: i32, %arg1: i32) -> (i32, i32) {
    %c0_i32 = arith.constant 0 : i32
    %c0_i32_0 = arith.constant 0 : i32
    %c0_i32_1 = arith.constant 0 : i32
    return %c0_i32, %c0_i32_0 : i32, i32
  }
  func.func @transform_5(%arg0: i32, %arg1: i32) -> (i32, i32) {
    %c0_i32 = arith.constant 0 : i32
    %c0_i32_0 = arith.constant 0 : i32
    %c0_i32_1 = arith.constant 0 : i32
    return %c0_i32, %c0_i32_0 : i32, i32
  }
  func.func @transform_6(%arg0: i32, %arg1: i32) -> (i32, i32) {
    %c0_i32 = arith.constant 0 : i32
    %c0_i32_0 = arith.constant 0 : i32
    %c0_i32_1 = arith.constant 0 : i32
    return %c0_i32, %c0_i32_0 : i32, i32
  }
  func.func @transform_7(%arg0: i32, %arg1: i32) -> (i32, i32) {
    %c0_i32 = arith.constant 0 : i32
    %c0_i32_0 = arith.constant 0 : i32
    %c0_i32_1 = arith.constant 0 : i32
    return %c0_i32, %c0_i32_0 : i32, i32
  }
  func.func @transform_8(%arg0: i32, %arg1: i32) -> (i32, i32) {
    %c0_i32 = arith.constant 0 : i32
    %c0_i32_0 = arith.constant 0 : i32
    %c0_i32_1 = arith.constant 0 : i32
    return %c0_i32, %c0_i32_0 : i32, i32
  }
  func.func @transform_9(%arg0: i32, %arg1: i32) -> (i32, i32) {
    %c0_i32 = arith.constant 0 : i32
    %c0_i32_0 = arith.constant 0 : i32
    %c0_i32_1 = arith.constant 0 : i32
    return %c0_i32, %c0_i32_0 : i32, i32
  }
  func.func @transform_10(%arg0: i32, %arg1: i32) -> (i32, i32, i32) {
    %c0_i32 = arith.constant 0 : i32
    %c0_i32_0 = arith.constant 0 : i32
    return %arg0, %arg1, %c0_i32 : i32, i32, i32
  }
}

module attributes {stable_mosaic.version = 11 : i64} {
  func.func @mha_kernel(%arg0: i32, %arg1: i32, %arg2: memref<1x8x32xf32, #tpu.memory_space<vmem>>, %arg3: memref<1x8x32xf32, #tpu.memory_space<vmem>>, %arg4: memref<1x32xf32, #tpu.memory_space<vmem>>, %arg5: memref<1x32xf32, #tpu.memory_space<vmem>>, %arg6: memref<32x32xbf16, #tpu.memory_space<vmem>>, %arg7: memref<1x32xf32, #tpu.memory_space<vmem>>, %arg8: memref<32x64xbf16, #tpu.memory_space<vmem>>, %arg9: memref<1x64xf32, #tpu.memory_space<vmem>>, %arg10: memref<32x32xbf16, #tpu.memory_space<vmem>>, %arg11: memref<1x32xf32, #tpu.memory_space<vmem>>, %arg12: memref<1x8x32xf32, #tpu.memory_space<vmem>>, %arg13: memref<8x64xbf16, #tpu.memory_space<vmem>>, %arg14: memref<8x32xbf16, #tpu.memory_space<vmem>>) attributes {dimension_semantics = [#tpu.dimension_semantics<parallel>, #tpu.dimension_semantics<arbitrary>], iteration_bounds = array<i64: 2, 1>, scalar_prefetch = 0 : i64, scratch_operands = 2 : i64, tpu.core_type = #tpu.core_type<tc>, window_params = [{transform_indices = @transform_0, window_bounds = array<i64: 1, 8, 32>}, {transform_indices = @transform_1, window_bounds = array<i64: 1, 8, 32>}, {pipeline_mode = #tpu.pipeline_mode<synchronous>, transform_indices = @transform_2, window_bounds = array<i64: 1, 32>}, {pipeline_mode = #tpu.pipeline_mode<synchronous>, transform_indices = @transform_3, window_bounds = array<i64: 1, 32>}, {pipeline_mode = #tpu.pipeline_mode<synchronous>, transform_indices = @transform_4, window_bounds = array<i64: 32, 32>}, {pipeline_mode = #tpu.pipeline_mode<synchronous>, transform_indices = @transform_5, window_bounds = array<i64: 1, 32>}, {pipeline_mode = #tpu.pipeline_mode<synchronous>, transform_indices = @transform_6, window_bounds = array<i64: 32, 64>}, {pipeline_mode = #tpu.pipeline_mode<synchronous>, transform_indices = @transform_7, window_bounds = array<i64: 1, 64>}, {pipeline_mode = #tpu.pipeline_mode<synchronous>, transform_indices = @transform_8, window_bounds = array<i64: 32, 32>}, {pipeline_mode = #tpu.pipeline_mode<synchronous>, transform_indices = @transform_9, window_bounds = array<i64: 1, 32>}, {transform_indices = @transform_10, window_bounds = array<i64: 1, 8, 32>}]} {
    %c0 = arith.constant 0 : index
    %c0_0 = arith.constant 0 : index
    %0 = vector.load %arg4[%c0, %c0_0] : memref<1x32xf32, #tpu.memory_space<vmem>>, vector<1x32xf32>
    %c0_1 = arith.constant 0 : index
    %c0_2 = arith.constant 0 : index
    %1 = vector.load %arg5[%c0_1, %c0_2] : memref<1x32xf32, #tpu.memory_space<vmem>>, vector<1x32xf32>
    %c0_i32 = arith.constant 0 : i32
    %2 = arith.cmpi eq, %arg1, %c0_i32 : i32
    %3 = arith.extui %2 : i1 to i32
    %c0_i32_3 = arith.constant 0 : i32
    %4 = arith.cmpi ne, %3, %c0_i32_3 : i32
    scf.if %4 {
      %c0_64 = arith.constant 0 : index
      %c0_65 = arith.constant 0 : index
      %c0_66 = arith.constant 0 : index
      %139 = vector.load %arg3[%c0_64, %c0_65, %c0_66] : memref<1x8x32xf32, #tpu.memory_space<vmem>>, vector<1x8x32xf32>
      %140 = vector.shape_cast %139 : vector<1x8x32xf32> to vector<8x32xf32>
      %cst_67 = arith.constant dense<0.000000e+00> : vector<8xf32>
      %141 = vector.multi_reduction <add>, %140, %cst_67 [1] : vector<8x32xf32> to vector<8xf32>
      %142 = vector.shape_cast %141 : vector<8xf32> to vector<8x1xf32>
      %cst_68 = arith.constant 3.200000e+01 : f32
      %143 = vector.broadcast %cst_68 : f32 to vector<8x1xf32>
      %144 = arith.divf %142, %143 : vector<8x1xf32>
      %145 = vector.broadcast %144 : vector<8x1xf32> to vector<8x32xf32>
      %146 = arith.subf %140, %145 : vector<8x32xf32>
      %147 = vector.broadcast %144 : vector<8x1xf32> to vector<8x32xf32>
      %148 = arith.subf %140, %147 : vector<8x32xf32>
      %149 = arith.mulf %146, %148 : vector<8x32xf32>
      %cst_69 = arith.constant dense<0.000000e+00> : vector<8xf32>
      %150 = vector.multi_reduction <add>, %149, %cst_69 [1] : vector<8x32xf32> to vector<8xf32>
      %151 = vector.shape_cast %150 : vector<8xf32> to vector<8x1xf32>
      %cst_70 = arith.constant 3.200000e+01 : f32
      %152 = vector.broadcast %cst_70 : f32 to vector<8x1xf32>
      %153 = arith.divf %151, %152 : vector<8x1xf32>
      %154 = vector.broadcast %144 : vector<8x1xf32> to vector<8x32xf32>
      %155 = arith.subf %140, %154 : vector<8x32xf32>
      %cst_71 = arith.constant 9.99999974E-6 : f32
      %156 = vector.broadcast %cst_71 : f32 to vector<8x1xf32>
      %157 = arith.addf %153, %156 : vector<8x1xf32>
      %158 = math.rsqrt %157 : vector<8x1xf32>
      %159 = vector.broadcast %158 : vector<8x1xf32> to vector<8x32xf32>
      %160 = arith.mulf %155, %159 : vector<8x32xf32>
      %161 = vector.broadcast %0 : vector<1x32xf32> to vector<8x32xf32>
      %162 = arith.mulf %160, %161 : vector<8x32xf32>
      %163 = vector.broadcast %1 : vector<1x32xf32> to vector<8x32xf32>
      %164 = arith.addf %162, %163 : vector<8x32xf32>
      %165 = arith.truncf %164 : vector<8x32xf32> to vector<8x32xbf16>
      %c0_72 = arith.constant 0 : index
      %c0_73 = arith.constant 0 : index
      %166 = vector.load %arg8[%c0_72, %c0_73] : memref<32x64xbf16, #tpu.memory_space<vmem>>, vector<32x64xbf16>
      %cst_74 = arith.constant dense<0.000000e+00> : vector<8x64xf32>
      %167 = tpu.matmul %165, %166, %cst_74 {dimension_numbers = #tpu.dot_dimension_numbers<[1], [0], [0], [1], [0, 0, 1, 1], [], []>} : vector<8x32xbf16>, vector<32x64xbf16>, vector<8x64xf32> -> vector<8x64xf32>
      %c0_75 = arith.constant 0 : index
      %c0_76 = arith.constant 0 : index
      %168 = vector.load %arg9[%c0_75, %c0_76] : memref<1x64xf32, #tpu.memory_space<vmem>>, vector<1x64xf32>
      %169 = vector.broadcast %168 : vector<1x64xf32> to vector<8x64xf32>
      %170 = arith.addf %167, %169 : vector<8x64xf32>
      %171 = arith.truncf %170 : vector<8x64xf32> to vector<8x64xbf16>
      %c0_77 = arith.constant 0 : index
      %c0_78 = arith.constant 0 : index
      %172 = vector.load %arg13[%c0_77, %c0_78] : memref<8x64xbf16, #tpu.memory_space<vmem>>, vector<8x64xbf16>
      tpu.vector_store %arg13[%c0_77, %c0_78], %171 {strides = array<i32>} : memref<8x64xbf16, #tpu.memory_space<vmem>>, vector<8x64xbf16>,
    } else {
    }
    %c0_4 = arith.constant 0 : index
    %c0_5 = arith.constant 0 : index
    %c0_6 = arith.constant 0 : index
    %5 = vector.load %arg2[%c0_4, %c0_5, %c0_6] : memref<1x8x32xf32, #tpu.memory_space<vmem>>, vector<1x8x32xf32>
    %6 = vector.shape_cast %5 : vector<1x8x32xf32> to vector<8x32xf32>
    %cst = arith.constant dense<0.000000e+00> : vector<8xf32>
    %7 = vector.multi_reduction <add>, %6, %cst [1] : vector<8x32xf32> to vector<8xf32>
    %8 = vector.shape_cast %7 : vector<8xf32> to vector<8x1xf32>
    %cst_7 = arith.constant 3.200000e+01 : f32
    %9 = vector.broadcast %cst_7 : f32 to vector<8x1xf32>
    %10 = arith.divf %8, %9 : vector<8x1xf32>
    %11 = vector.broadcast %10 : vector<8x1xf32> to vector<8x32xf32>
    %12 = arith.subf %6, %11 : vector<8x32xf32>
    %13 = vector.broadcast %10 : vector<8x1xf32> to vector<8x32xf32>
    %14 = arith.subf %6, %13 : vector<8x32xf32>
    %15 = arith.mulf %12, %14 : vector<8x32xf32>
    %cst_8 = arith.constant dense<0.000000e+00> : vector<8xf32>
    %16 = vector.multi_reduction <add>, %15, %cst_8 [1] : vector<8x32xf32> to vector<8xf32>
    %17 = vector.shape_cast %16 : vector<8xf32> to vector<8x1xf32>
    %cst_9 = arith.constant 3.200000e+01 : f32
    %18 = vector.broadcast %cst_9 : f32 to vector<8x1xf32>
    %19 = arith.divf %17, %18 : vector<8x1xf32>
    %20 = vector.broadcast %10 : vector<8x1xf32> to vector<8x32xf32>
    %21 = arith.subf %6, %20 : vector<8x32xf32>
    %cst_10 = arith.constant 9.99999974E-6 : f32
    %22 = vector.broadcast %cst_10 : f32 to vector<8x1xf32>
    %23 = arith.addf %19, %22 : vector<8x1xf32>
    %24 = math.rsqrt %23 : vector<8x1xf32>
    %25 = vector.broadcast %24 : vector<8x1xf32> to vector<8x32xf32>
    %26 = arith.mulf %21, %25 : vector<8x32xf32>
    %27 = vector.broadcast %0 : vector<1x32xf32> to vector<8x32xf32>
    %28 = arith.mulf %26, %27 : vector<8x32xf32>
    %29 = vector.broadcast %1 : vector<1x32xf32> to vector<8x32xf32>
    %30 = arith.addf %28, %29 : vector<8x32xf32>
    %31 = arith.truncf %30 : vector<8x32xf32> to vector<8x32xbf16>
    %c0_11 = arith.constant 0 : index
    %c0_12 = arith.constant 0 : index
    %32 = vector.load %arg6[%c0_11, %c0_12] : memref<32x32xbf16, #tpu.memory_space<vmem>>, vector<32x32xbf16>
    %cst_13 = arith.constant dense<0.000000e+00> : vector<8x32xf32>
    %33 = tpu.matmul %31, %32, %cst_13 {dimension_numbers = #tpu.dot_dimension_numbers<[1], [0], [0], [1], [0, 0, 1, 1], [], []>} : vector<8x32xbf16>, vector<32x32xbf16>, vector<8x32xf32> -> vector<8x32xf32>
    %c0_14 = arith.constant 0 : index
    %c0_15 = arith.constant 0 : index
    %34 = vector.load %arg7[%c0_14, %c0_15] : memref<1x32xf32, #tpu.memory_space<vmem>>, vector<1x32xf32>
    %35 = vector.broadcast %34 : vector<1x32xf32> to vector<8x32xf32>
    %36 = arith.addf %33, %35 : vector<8x32xf32>
    %cst_16 = arith.constant 0.353553385 : f32
    %37 = vector.broadcast %cst_16 : f32 to vector<8x32xf32>
    %38 = arith.mulf %36, %37 : vector<8x32xf32>
    %c8_i32 = arith.constant 8 : i32
    %39 = arith.muli %arg1, %c8_i32 : i32
    %40 = tpu.iota {dimensions = array<i32: 0>} : vector<8x8xi32>
    %41 = vector.broadcast %39 : i32 to vector<8x8xi32>
    %42 = arith.addi %41, %40 : vector<8x8xi32>
    %43 = tpu.iota {dimensions = array<i32: 1>} : vector<8x8xi32>
    %44 = arith.cmpi sgt, %43, %42 : vector<8x8xi32>
    %45 = vector.extract_strided_slice %38 {offsets = [0, 0], sizes = [8, 8], strides = [1, 1]} : vector<8x32xf32> to vector<8x8xf32>
    %46 = arith.truncf %45 : vector<8x8xf32> to vector<8x8xbf16>
    %c0_17 = arith.constant 0 : index
    %c0_18 = arith.constant 0 : index
    %47 = vector.load %arg13[%c0_17, %c0_18] : memref<8x64xbf16, #tpu.memory_space<vmem>>, vector<8x8xbf16>
    %c0_19 = arith.constant 0 : index
    %c32 = arith.constant 32 : index
    %48 = vector.load %arg13[%c0_19, %c32] : memref<8x64xbf16, #tpu.memory_space<vmem>>, vector<8x8xbf16>
    %cst_20 = arith.constant dense<0.000000e+00> : vector<8x8xf32>
    %49 = tpu.matmul %46, %47, %cst_20 {dimension_numbers = #tpu.dot_dimension_numbers<[1], [1], [0], [0], [0, 0, 1, 0], [], []>} : vector<8x8xbf16>, vector<8x8xbf16>, vector<8x8xf32> -> vector<8x8xf32>
    %cst_21 = arith.constant -1.000000e+09 : f32
    %50 = vector.broadcast %cst_21 : f32 to vector<8x8xf32>
    %51 = arith.select %44, %50, %49 : vector<8x8xi1>, vector<8x8xf32>
    %cst_22 = arith.constant dense<0xFF800000> : vector<8xf32>
    %52 = vector.multi_reduction <maximumf>, %51, %cst_22 [1] : vector<8x8xf32> to vector<8xf32>
    %53 = vector.shape_cast %52 : vector<8xf32> to vector<8x1xf32>
    %54 = vector.broadcast %53 : vector<8x1xf32> to vector<8x8xf32>
    %55 = arith.subf %51, %54 : vector<8x8xf32>
    %56 = math.exp %55 : vector<8x8xf32>
    %cst_23 = arith.constant dense<0.000000e+00> : vector<8xf32>
    %57 = vector.multi_reduction <add>, %56, %cst_23 [1] : vector<8x8xf32> to vector<8xf32>
    %58 = vector.shape_cast %57 : vector<8xf32> to vector<8x1xf32>
    %59 = tpu.reciprocal %58 {approx = true} : vector<8x1xf32> -> vector<8x1xf32>
    %60 = vector.broadcast %59 : vector<8x1xf32> to vector<8x8xf32>
    %61 = arith.mulf %56, %60 : vector<8x8xf32>
    %62 = arith.truncf %61 : vector<8x8xf32> to vector<8x8xbf16>
    %cst_24 = arith.constant dense<0.000000e+00> : vector<8x8xf32>
    %63 = tpu.matmul %62, %48, %cst_24 {dimension_numbers = #tpu.dot_dimension_numbers<[1], [0], [0], [1], [0, 0, 1, 1], [], []>} : vector<8x8xbf16>, vector<8x8xbf16>, vector<8x8xf32> -> vector<8x8xf32>
    %64 = arith.truncf %63 : vector<8x8xf32> to vector<8x8xbf16>
    %c0_25 = arith.constant 0 : index
    %c0_26 = arith.constant 0 : index
    %65 = vector.load %arg14[%c0_25, %c0_26] : memref<8x32xbf16, #tpu.memory_space<vmem>>, vector<8x8xbf16>
    tpu.vector_store %arg14[%c0_25, %c0_26], %64 {strides = array<i32>} : memref<8x32xbf16, #tpu.memory_space<vmem>>, vector<8x8xbf16>,
    %66 = vector.extract_strided_slice %38 {offsets = [0, 8], sizes = [8, 8], strides = [1, 1]} : vector<8x32xf32> to vector<8x8xf32>
    %67 = arith.truncf %66 : vector<8x8xf32> to vector<8x8xbf16>
    %c0_27 = arith.constant 0 : index
    %c8 = arith.constant 8 : index
    %68 = vector.load %arg13[%c0_27, %c8] : memref<8x64xbf16, #tpu.memory_space<vmem>>, vector<8x8xbf16>
    %c0_28 = arith.constant 0 : index
    %c40 = arith.constant 40 : index
    %69 = vector.load %arg13[%c0_28, %c40] : memref<8x64xbf16, #tpu.memory_space<vmem>>, vector<8x8xbf16>
    %cst_29 = arith.constant dense<0.000000e+00> : vector<8x8xf32>
    %70 = tpu.matmul %67, %68, %cst_29 {dimension_numbers = #tpu.dot_dimension_numbers<[1], [1], [0], [0], [0, 0, 1, 0], [], []>} : vector<8x8xbf16>, vector<8x8xbf16>, vector<8x8xf32> -> vector<8x8xf32>
    %cst_30 = arith.constant -1.000000e+09 : f32
    %71 = vector.broadcast %cst_30 : f32 to vector<8x8xf32>
    %72 = arith.select %44, %71, %70 : vector<8x8xi1>, vector<8x8xf32>
    %cst_31 = arith.constant dense<0xFF800000> : vector<8xf32>
    %73 = vector.multi_reduction <maximumf>, %72, %cst_31 [1] : vector<8x8xf32> to vector<8xf32>
    %74 = vector.shape_cast %73 : vector<8xf32> to vector<8x1xf32>
    %75 = vector.broadcast %74 : vector<8x1xf32> to vector<8x8xf32>
    %76 = arith.subf %72, %75 : vector<8x8xf32>
    %77 = math.exp %76 : vector<8x8xf32>
    %cst_32 = arith.constant dense<0.000000e+00> : vector<8xf32>
    %78 = vector.multi_reduction <add>, %77, %cst_32 [1] : vector<8x8xf32> to vector<8xf32>
    %79 = vector.shape_cast %78 : vector<8xf32> to vector<8x1xf32>
    %80 = tpu.reciprocal %79 {approx = true} : vector<8x1xf32> -> vector<8x1xf32>
    %81 = vector.broadcast %80 : vector<8x1xf32> to vector<8x8xf32>
    %82 = arith.mulf %77, %81 : vector<8x8xf32>
    %83 = arith.truncf %82 : vector<8x8xf32> to vector<8x8xbf16>
    %cst_33 = arith.constant dense<0.000000e+00> : vector<8x8xf32>
    %84 = tpu.matmul %83, %69, %cst_33 {dimension_numbers = #tpu.dot_dimension_numbers<[1], [0], [0], [1], [0, 0, 1, 1], [], []>} : vector<8x8xbf16>, vector<8x8xbf16>, vector<8x8xf32> -> vector<8x8xf32>
    %85 = arith.truncf %84 : vector<8x8xf32> to vector<8x8xbf16>
    %c0_34 = arith.constant 0 : index
    %c8_35 = arith.constant 8 : index
    %86 = vector.load %arg14[%c0_34, %c8_35] : memref<8x32xbf16, #tpu.memory_space<vmem>>, vector<8x8xbf16>
    tpu.vector_store %arg14[%c0_34, %c8_35], %85 {strides = array<i32>} : memref<8x32xbf16, #tpu.memory_space<vmem>>, vector<8x8xbf16>,
    %87 = vector.extract_strided_slice %38 {offsets = [0, 16], sizes = [8, 8], strides = [1, 1]} : vector<8x32xf32> to vector<8x8xf32>
    %88 = arith.truncf %87 : vector<8x8xf32> to vector<8x8xbf16>
    %c0_36 = arith.constant 0 : index
    %c16 = arith.constant 16 : index
    %89 = vector.load %arg13[%c0_36, %c16] : memref<8x64xbf16, #tpu.memory_space<vmem>>, vector<8x8xbf16>
    %c0_37 = arith.constant 0 : index
    %c48 = arith.constant 48 : index
    %90 = vector.load %arg13[%c0_37, %c48] : memref<8x64xbf16, #tpu.memory_space<vmem>>, vector<8x8xbf16>
    %cst_38 = arith.constant dense<0.000000e+00> : vector<8x8xf32>
    %91 = tpu.matmul %88, %89, %cst_38 {dimension_numbers = #tpu.dot_dimension_numbers<[1], [1], [0], [0], [0, 0, 1, 0], [], []>} : vector<8x8xbf16>, vector<8x8xbf16>, vector<8x8xf32> -> vector<8x8xf32>
    %cst_39 = arith.constant -1.000000e+09 : f32
    %92 = vector.broadcast %cst_39 : f32 to vector<8x8xf32>
    %93 = arith.select %44, %92, %91 : vector<8x8xi1>, vector<8x8xf32>
    %cst_40 = arith.constant dense<0xFF800000> : vector<8xf32>
    %94 = vector.multi_reduction <maximumf>, %93, %cst_40 [1] : vector<8x8xf32> to vector<8xf32>
    %95 = vector.shape_cast %94 : vector<8xf32> to vector<8x1xf32>
    %96 = vector.broadcast %95 : vector<8x1xf32> to vector<8x8xf32>
    %97 = arith.subf %93, %96 : vector<8x8xf32>
    %98 = math.exp %97 : vector<8x8xf32>
    %cst_41 = arith.constant dense<0.000000e+00> : vector<8xf32>
    %99 = vector.multi_reduction <add>, %98, %cst_41 [1] : vector<8x8xf32> to vector<8xf32>
    %100 = vector.shape_cast %99 : vector<8xf32> to vector<8x1xf32>
    %101 = tpu.reciprocal %100 {approx = true} : vector<8x1xf32> -> vector<8x1xf32>
    %102 = vector.broadcast %101 : vector<8x1xf32> to vector<8x8xf32>
    %103 = arith.mulf %98, %102 : vector<8x8xf32>
    %104 = arith.truncf %103 : vector<8x8xf32> to vector<8x8xbf16>
    %cst_42 = arith.constant dense<0.000000e+00> : vector<8x8xf32>
    %105 = tpu.matmul %104, %90, %cst_42 {dimension_numbers = #tpu.dot_dimension_numbers<[1], [0], [0], [1], [0, 0, 1, 1], [], []>} : vector<8x8xbf16>, vector<8x8xbf16>, vector<8x8xf32> -> vector<8x8xf32>
    %106 = arith.truncf %105 : vector<8x8xf32> to vector<8x8xbf16>
    %c0_43 = arith.constant 0 : index
    %c16_44 = arith.constant 16 : index
    %107 = vector.load %arg14[%c0_43, %c16_44] : memref<8x32xbf16, #tpu.memory_space<vmem>>, vector<8x8xbf16>
    tpu.vector_store %arg14[%c0_43, %c16_44], %106 {strides = array<i32>} : memref<8x32xbf16, #tpu.memory_space<vmem>>, vector<8x8xbf16>,
    %108 = vector.extract_strided_slice %38 {offsets = [0, 24], sizes = [8, 8], strides = [1, 1]} : vector<8x32xf32> to vector<8x8xf32>
    %109 = arith.truncf %108 : vector<8x8xf32> to vector<8x8xbf16>
    %c0_45 = arith.constant 0 : index
    %c24 = arith.constant 24 : index
    %110 = vector.load %arg13[%c0_45, %c24] : memref<8x64xbf16, #tpu.memory_space<vmem>>, vector<8x8xbf16>
    %c0_46 = arith.constant 0 : index
    %c56 = arith.constant 56 : index
    %111 = vector.load %arg13[%c0_46, %c56] : memref<8x64xbf16, #tpu.memory_space<vmem>>, vector<8x8xbf16>
    %cst_47 = arith.constant dense<0.000000e+00> : vector<8x8xf32>
    %112 = tpu.matmul %109, %110, %cst_47 {dimension_numbers = #tpu.dot_dimension_numbers<[1], [1], [0], [0], [0, 0, 1, 0], [], []>} : vector<8x8xbf16>, vector<8x8xbf16>, vector<8x8xf32> -> vector<8x8xf32>
    %cst_48 = arith.constant -1.000000e+09 : f32
    %113 = vector.broadcast %cst_48 : f32 to vector<8x8xf32>
    %114 = arith.select %44, %113, %112 : vector<8x8xi1>, vector<8x8xf32>
    %cst_49 = arith.constant dense<0xFF800000> : vector<8xf32>
    %115 = vector.multi_reduction <maximumf>, %114, %cst_49 [1] : vector<8x8xf32> to vector<8xf32>
    %116 = vector.shape_cast %115 : vector<8xf32> to vector<8x1xf32>
    %117 = vector.broadcast %116 : vector<8x1xf32> to vector<8x8xf32>
    %118 = arith.subf %114, %117 : vector<8x8xf32>
    %119 = math.exp %118 : vector<8x8xf32>
    %cst_50 = arith.constant dense<0.000000e+00> : vector<8xf32>
    %120 = vector.multi_reduction <add>, %119, %cst_50 [1] : vector<8x8xf32> to vector<8xf32>
    %121 = vector.shape_cast %120 : vector<8xf32> to vector<8x1xf32>
    %122 = tpu.reciprocal %121 {approx = true} : vector<8x1xf32> -> vector<8x1xf32>
    %123 = vector.broadcast %122 : vector<8x1xf32> to vector<8x8xf32>
    %124 = arith.mulf %119, %123 : vector<8x8xf32>
    %125 = arith.truncf %124 : vector<8x8xf32> to vector<8x8xbf16>
    %cst_51 = arith.constant dense<0.000000e+00> : vector<8x8xf32>
    %126 = tpu.matmul %125, %111, %cst_51 {dimension_numbers = #tpu.dot_dimension_numbers<[1], [0], [0], [1], [0, 0, 1, 1], [], []>} : vector<8x8xbf16>, vector<8x8xbf16>, vector<8x8xf32> -> vector<8x8xf32>
    %127 = arith.truncf %126 : vector<8x8xf32> to vector<8x8xbf16>
    %c0_52 = arith.constant 0 : index
    %c24_53 = arith.constant 24 : index
    %128 = vector.load %arg14[%c0_52, %c24_53] : memref<8x32xbf16, #tpu.memory_space<vmem>>, vector<8x8xbf16>
    tpu.vector_store %arg14[%c0_52, %c24_53], %127 {strides = array<i32>} : memref<8x32xbf16, #tpu.memory_space<vmem>>, vector<8x8xbf16>,
    %c0_54 = arith.constant 0 : index
    %c0_55 = arith.constant 0 : index
    %129 = vector.load %arg14[%c0_54, %c0_55] : memref<8x32xbf16, #tpu.memory_space<vmem>>, vector<8x32xbf16>
    %c0_56 = arith.constant 0 : index
    %c0_57 = arith.constant 0 : index
    %130 = vector.load %arg10[%c0_56, %c0_57] : memref<32x32xbf16, #tpu.memory_space<vmem>>, vector<32x32xbf16>
    %cst_58 = arith.constant dense<0.000000e+00> : vector<8x32xf32>
    %131 = tpu.matmul %129, %130, %cst_58 {dimension_numbers = #tpu.dot_dimension_numbers<[1], [0], [0], [1], [0, 0, 1, 1], [], []>} : vector<8x32xbf16>, vector<32x32xbf16>, vector<8x32xf32> -> vector<8x32xf32>
    %132 = arith.addf %6, %131 : vector<8x32xf32>
    %c0_59 = arith.constant 0 : index
    %c0_60 = arith.constant 0 : index
    %133 = vector.load %arg11[%c0_59, %c0_60] : memref<1x32xf32, #tpu.memory_space<vmem>>, vector<1x32xf32>
    %134 = vector.broadcast %133 : vector<1x32xf32> to vector<8x32xf32>
    %135 = arith.addf %132, %134 : vector<8x32xf32>
    %c0_61 = arith.constant 0 : index
    %c0_62 = arith.constant 0 : index
    %c0_63 = arith.constant 0 : index
    %136 = vector.load %arg12[%c0_61, %c0_62, %c0_63] : memref<1x8x32xf32, #tpu.memory_space<vmem>>, vector<1x8x32xf32>
    %137 = vector.shape_cast %136 : vector<1x8x32xf32> to vector<8x32xf32>
    %138 = vector.shape_cast %135 : vector<8x32xf32> to vector<1x8x32xf32>
    tpu.vector_store %arg12[%c0_61, %c0_62, %c0_63], %138 {strides = array<i32>} : memref<1x8x32xf32, #tpu.memory_space<vmem>>, vector<1x8x32xf32>,
    return
  }
  func.func @transform_0(%arg0: i32, %arg1: i32) -> (i32, i32, i32) {
    %c0_i32 = arith.constant 0 : i32
    %c0_i32_0 = arith.constant 0 : i32
    return %arg0, %arg1, %c0_i32 : i32, i32, i32
  }
  func.func @transform_1(%arg0: i32, %arg1: i32) -> (i32, i32, i32) {
    %c0_i32 = arith.constant 0 : i32
    %c0_i32_0 = arith.constant 0 : i32
    %c0_i32_1 = arith.constant 0 : i32
    return %arg0, %c0_i32, %c0_i32_0 : i32, i32, i32
  }
  func.func @transform_2(%arg0: i32, %arg1: i32) -> (i32, i32) {
    %c0_i32 = arith.constant 0 : i32
    %c0_i32_0 = arith.constant 0 : i32
    %c0_i32_1 = arith.constant 0 : i32
    return %c0_i32, %c0_i32_0 : i32, i32
  }
  func.func @transform_3(%arg0: i32, %arg1: i32) -> (i32, i32) {
    %c0_i32 = arith.constant 0 : i32
    %c0_i32_0 = arith.constant 0 : i32
    %c0_i32_1 = arith.constant 0 : i32
    return %c0_i32, %c0_i32_0 : i32, i32
  }
  func.func @transform_4(%arg0: i32, %arg1: i32) -> (i32, i32) {
    %c0_i32 = arith.constant 0 : i32
    %c0_i32_0 = arith.constant 0 : i32
    %c0_i32_1 = arith.constant 0 : i32
    return %c0_i32, %c0_i32_0 : i32, i32
  }
  func.func @transform_5(%arg0: i32, %arg1: i32) -> (i32, i32) {
    %c0_i32 = arith.constant 0 : i32
    %c0_i32_0 = arith.constant 0 : i32
    %c0_i32_1 = arith.constant 0 : i32
    return %c0_i32, %c0_i32_0 : i32, i32
  }
  func.func @transform_6(%arg0: i32, %arg1: i32) -> (i32, i32) {
    %c0_i32 = arith.constant 0 : i32
    %c0_i32_0 = arith.constant 0 : i32
    %c0_i32_1 = arith.constant 0 : i32
    return %c0_i32, %c0_i32_0 : i32, i32
  }
  func.func @transform_7(%arg0: i32, %arg1: i32) -> (i32, i32) {
    %c0_i32 = arith.constant 0 : i32
    %c0_i32_0 = arith.constant 0 : i32
    %c0_i32_1 = arith.constant 0 : i32
    return %c0_i32, %c0_i32_0 : i32, i32
  }
  func.func @transform_8(%arg0: i32, %arg1: i32) -> (i32, i32) {
    %c0_i32 = arith.constant 0 : i32
    %c0_i32_0 = arith.constant 0 : i32
    %c0_i32_1 = arith.constant 0 : i32
    return %c0_i32, %c0_i32_0 : i32, i32
  }
  func.func @transform_9(%arg0: i32, %arg1: i32) -> (i32, i32) {
    %c0_i32 = arith.constant 0 : i32
    %c0_i32_0 = arith.constant 0 : i32
    %c0_i32_1 = arith.constant 0 : i32
    return %c0_i32, %c0_i32_0 : i32, i32
  }
  func.func @transform_10(%arg0: i32, %arg1: i32) -> (i32, i32, i32) {
    %c0_i32 = arith.constant 0 : i32
    %c0_i32_0 = arith.constant 0 : i32
    return %arg0, %arg1, %c0_i32 : i32, i32, i32
  }
}

</mosaic_0001>

<bundles_post_ra>
// kernel: tpu_custom_call.1
= control target key start
LH: loop header
LB: loop body
LE: loop exit
PB: predicated region body
PF: predicated region fallthrough
CT: control target
= control target key end

     0   :  { %s2816_s0 = inlined_call_operand.hbm [shape: f32[2,8,32], index: 0, kind: input, shape index: {}]   ;;  %s2817_s1 = inlined_call_operand.hbm [shape: f32[2,8,32], index: 1, kind: input, shape index: {}]   ;;  %s2818_s2 = inlined_call_operand.hbm [shape: f32[1,32], index: 2, kind: input, shape index: {}]   ;;  %s2819_s3 = inlined_call_operand.hbm [shape: f32[1,32], index: 3, kind: input, shape index: {}]   ;;  %s2820_s4 = inlined_call_operand.hbm [shape: bf16[32,32], index: 4, kind: input, shape index: {}]   ;;  %s2821_s5 = inlined_call_operand.hbm [shape: f32[1,32], index: 5, kind: input, shape index: {}]   ;;  %s2822_s6 = inlined_call_operand.hbm [shape: bf16[32,64], index: 6, kind: input, shape index: {}]   ;;  %s2823_s7 = inlined_call_operand.hbm [shape: f32[1,64], index: 7, kind: input, shape index: {}]   ;;  %s2824_s8 = inlined_call_operand.hbm [shape: bf16[32,32], index: 8, kind: input, shape index: {}]   ;;  %s2825_s9 = inlined_call_operand.hbm [shape: f32[1,32], index: 9, kind: input, shape index: {}]   ;;  %s2826_s10 = inlined_call_operand.hbm [shape: f32[2,8,32], index: 10, kind: output, shape index: {}]  }
   0x1   :  { %2838 = sst [smem:[#allocation33_spill]] %s2817_s1 }
   0x2   :  { %2839 = sst [smem:[#allocation34_spill]] %s2818_s2 }
   0x3   :  { %2840 = sst [smem:[#allocation35_spill]] %s2819_s3 }
   0x4   :  { %2841 = sst [smem:[#allocation36_spill]] %s2826_s10 }
   0x5   :  { %15 = vsyncpa [#allocation5], 0 }
   0x6   :  { %17 = vsyncpa [#allocation5 + $0x1], 0 }
   0x7   :  { %18 = vsyncpa [#allocation8], 0 }
   0x8   :  { %19 = vsyncpa [#allocation11], 0 }
   0x9   :  { %20 = vsyncpa [#allocation14], 0 }
   0xa   :  { %21 = vsyncpa [#allocation17], 0 }
   0xb   :  { %22 = vsyncpa [#allocation20], 0 }
   0xc   :  { %23 = vsyncpa [#allocation6], 0 }
   0xd   :  { %25 = vsyncpa [#allocation6 + $0x1], 0  ;;  %s2298_s13 = smov 0   ;;  %s2300_s14 = smov 0  }
   0xe   :  { %s2302_s15 = smov 0   ;;  %s2304_s16 = smov 0  }
   0xf   :  { %s2306_s17 = smov 0   ;;  %s2308_s18 = smov 0  }
  0x10 LB: > { %2842 = sst [smem:[#allocation30_spill]] %s2196_s13  ;;  %s1474_s19 = sadd.s32 4294967295, %s2216_s18   ;;  %s2216_s18 = sphi %s2308_s18, %s31_s18   ;;  %s2212_s17 = sphi %s2306_s17, %s2876_s17   ;;  %s2208_s16 = sphi %s2304_s16, %s2875_s16   ;;  %s2204_s15 = sphi %s2302_s15, %s2874_s15   ;;  %s2200_s14 = sphi %s2300_s14, %s2873_s14   ;;  %s2196_s13 = sphi %s2298_s13, %s2872_s13  }
  0x11   : > { %2843 = sst [smem:[#allocation31_spill]] %s2208_s16  ;;  %s1475_s20 = sadd.s32 4294967294, %s2216_s18  }
  0x12   : > { %p65_p0 = scmp.ne.s32.totalorder %s2200_s14, %s2196_s13  ;;  %p2332_p1 = scmp.eq.s32.totalorder %s1474_s19, 0 }
  0x13   : > { %p2336_p2 = scmp.eq.s32.totalorder %s1474_s19, 1  ;;  %p291_p3 = scmp.eq.s32.totalorder %s1475_s20, 1 }
  0x14   : > { %s2844_s21 = scalar_select %p2332_p1, 1, 0 }
  0x15   : > { %s2845_s22 = scalar_select %p2336_p2, 1, 0 }
  0x16   : > { %p2342_p4 = por %p2332_p1, %p65_p0  ;;  %p1476_p5 = scmp.ge.s32.totalorder %s2216_s18, 1 }
  0x17   : > { %p2347_p6 = por %p291_p3, %p65_p0  ;;  %p298_p7 = scmp.lt.s32.totalorder %s2216_s18, 3 }
  0x18   : > { %s2846_s23 = scalar_select %p2342_p4, 1, 0 }
  0x19   : > { %s2847_s24 = scalar_select %p2347_p6, 1, 0 }
  0x1a   : > { %s2827_s25 = sshll.u32 %s2208_s16, 7  ;;  %p2353_p8 = pnand %p1476_p5, %p298_p7 }
  0x1b   : > { %2848 = sst [smem:[#allocation32_spill]] %s2847_s24  ;;  %s2850_s1 = sld [smem:[#allocation33_spill]] }
  0x1c   : > { %s2849_s26 = scalar_select %p2353_p8, 1, 0 }
  0x1d   : > { %s2218_s30 = smov [#allocation7]   ;;  %p1671_p9 = pneg %p2353_p8 }
  0x1e   : > { %s313_s11 = sshll.u32 %s2218_s30, 4  ;;  %s2219_s20 = smov [#allocation10]   ;;  %s314_s11 = int_to_ptr.vmem [resolvable:$true] %s313_s11 }
  0x1f   : > { %p2369_p11 = pnand %p1671_p9, %p2342_p4  ;;  %p2375_p12 = pnand %p1671_p9, %p2332_p1 }
  0x20   : > { %s335_s27 = sshll.u32 %s2219_s20, 4  ;;  %s336_s27 = int_to_ptr.vmem [resolvable:$true] %s335_s27 }
  0x21   : > { %s2362_s29 = scalar_lea.hbm %s2850_s1, %s2827_s25  ;;  %p1828_p0 = pneg %p2369_p11 }
  0x22   : > { %s2852_s19 = scalar_select %p2375_p12, 1, 0 }
  0x23   : > { %s1826_s28 = scalar_lea.hbm %s2362_s29, 128  ;;  %s1831_s24 = scalar_lea.hbm %s2850_s1, 256 }
  0x24   : > { %p1827_p13 = scmp.ne.s32.totalorder %s2362_s29, %s1826_s28  ;;  %p1832_p7 = scmp.lt.u32.totalorder %s2362_s29, %s2850_s1 }
  0x25   : > { %p1833_p9 = scmp.lt.u32.totalorder %s1831_s24, %s1826_s28  ;;  %p1835_p6 = scmp.lt.u32.totalorder %s1826_s28, %s2362_s29 }
  0x26   : > { %p1829_p3 = pnand %p1828_p0, %p1827_p13 }
  0x27   : > { %p1834_p10 = por %p1833_p9, %p1832_p7 }
  0x28   : > { %p1830_p5 = pneg %p1829_p3 }
  0x29   : > { %p1836_p1 = por %p1835_p6, %p1834_p10 }
  0x2b   : > { %p1837_p4 = pnand %p1836_p1, %p1830_p5 }
  0x2d   : > { %1840 = shalt.err (!%p1837_p4)
}
  0x2e   : > { %s1841_s20 = scalar_lea.vmem %s314_s11, 128  ;;  %p1849_p2 = scmp.lt.s32.totalorder %s314_s11, %s314_s11 }
  0x2f   : > { %p1842_p8 = scmp.ne.s32.totalorder %s314_s11, %s1841_s20  ;;  %p1850_p12 = scmp.lt.s32.totalorder %s1841_s20, %s1841_s20 }
  0x31   : > { %p1844_p13 = pnand %p1842_p8, %p1828_p0  ;;  %p1851_p7 = por %p1850_p12, %p1849_p2 }
  0x33   : > { %p1845_p3 = pneg %p1844_p13 }
  0x35   : > { %p1852_p9 = pnand %p1851_p7, %p1845_p3 }
  0x37   : > { %1855 = shalt.err (!%p1852_p9)
}
  0x38   : > { %1674 = dma.hbm_to_vmem [thread:$0]  (!%p2369_p11), %s2362_s29, 128, %s314_s11, [#allocation8]  }
  0x39   : > { %s2220_s10 = smov [#allocation13]   ;;  %s2853_s3 = sld [smem:[#allocation35_spill]] }
  0x3a   : > { %s359_s13 = sshll.u32 %s2220_s10, 4  ;;  %p2854_p4 = scmp.ne.s32.totalorder %s2852_s19, 0  ;;  %s360_s13 = int_to_ptr.vmem [resolvable:$true] %s359_s13 }
  0x3c   : > { %p2408_p2 = pneg %p2854_p4 }
  0x3f   : > { %s1856_s28 = scalar_lea.hbm %s2853_s3, 16 }
  0x40   : > { %p1857_p1 = scmp.ne.s32.totalorder %s2853_s3, %s1856_s28  ;;  %p1863_p10 = scmp.lt.u32.totalorder %s1856_s28, %s2853_s3 }
  0x42   : > { %p1859_p6 = pnand %p2408_p2, %p1857_p1 }
  0x44   : > { %p1860_p8 = pneg %p1859_p6 }
  0x46   : > { %p1865_p11 = pnand %p1863_p10, %p1860_p8 }
  0x48   : > { %1868 = shalt.err (!%p1865_p11)
}
  0x49   : > { %s1869_s12 = scalar_lea.vmem %s336_s27, 16  ;;  %s1876_s1 = scalar_lea.vmem %s336_s27, 32 }
  0x4a   : > { %p1870_p12 = scmp.ne.s32.totalorder %s336_s27, %s1869_s12  ;;  %p1877_p13 = scmp.lt.s32.totalorder %s336_s27, %s336_s27 }
  0x4b   : > { %p1878_p3 = scmp.lt.s32.totalorder %s1876_s1, %s1869_s12 }
  0x4c   : > { %p1872_p0 = pnand %p1870_p12, %p2408_p2 }
  0x4d   : > { %p1879_p7 = por %p1878_p3, %p1877_p13 }
  0x4e   : > { %p1873_p5 = pneg %p1872_p0 }
  0x50   : > { %p1880_p9 = pnand %p1879_p7, %p1873_p5 }
  0x52   : > { %1883 = shalt.err (!%p1880_p9)
}
  0x53   : > { %1680 = dma.hbm_to_vmem [thread:$0]  (!%p2854_p4), %s2853_s3, 16, %s336_s27, [#allocation11]  }
  0x54   : > { %s1884_s30 = scalar_lea.hbm %s2821_s5, 16 }
  0x55   : > { %p1885_p1 = scmp.ne.s32.totalorder %s2821_s5, %s1884_s30  ;;  %p1891_p10 = scmp.lt.u32.totalorder %s1884_s30, %s2821_s5 }
  0x57   : > { %p1887_p6 = pnand %p1885_p1, %p2408_p2 }
  0x59   : > { %p1888_p8 = pneg %p1887_p6 }
  0x5b   : > { %p1893_p11 = pnand %p1891_p10, %p1888_p8 }
  0x5d   : > { %1896 = shalt.err (!%p1893_p11)
}
  0x5e   : > { %s1897_s10 = scalar_lea.vmem %s360_s13, 16  ;;  %s1904_s27 = scalar_lea.vmem %s360_s13, 32 }
  0x5f   : > { %p1898_p12 = scmp.ne.s32.totalorder %s360_s13, %s1897_s10  ;;  %p1905_p13 = scmp.lt.s32.totalorder %s360_s13, %s360_s13 }
  0x60   : > { %p1906_p3 = scmp.lt.s32.totalorder %s1904_s27, %s1897_s10 }
  0x61   : > { %p1900_p0 = pnand %p1898_p12, %p2408_p2 }
  0x62   : > { %p1907_p7 = por %p1906_p3, %p1905_p13 }
  0x63   : > { %p1901_p5 = pneg %p1900_p0 }
  0x65   : > { %p1908_p9 = pnand %p1907_p7, %p1901_p5 }
  0x67   : > { %1911 = shalt.err (!%p1908_p9)
}
  0x68   : > { %1686 = dma.hbm_to_vmem [thread:$0]  (!%p2854_p4), %s2821_s5, 16, %s360_s13, [#allocation14]  }
  0x69   : > { %s2221_s28 = smov [#allocation16]   ;;  %s2222_s29 = smov [#allocation9]  }
  0x6a   : > { %s383_s30 = sshll.u32 %s2221_s28, 4  ;;  %s324_s11 = sshll.u32 %s2222_s29, 4  ;;  %s384_s30 = int_to_ptr.vmem [resolvable:$true] %s383_s30  ;;  %s325_s11 = int_to_ptr.vmem [resolvable:$true] %s324_s11 }
  0x6b   : > { %s1912_s3 = scalar_lea.hbm %s2823_s7, 16 }
  0x6c   : > { %p1913_p1 = scmp.ne.s32.totalorder %s2823_s7, %s1912_s3  ;;  %p1919_p10 = scmp.lt.u32.totalorder %s1912_s3, %s2823_s7 }
  0x6e   : > { %p1915_p6 = pnand %p1913_p1, %p2408_p2 }
  0x70   : > { %p1916_p8 = pneg %p1915_p6 }
  0x72   : > { %p1921_p11 = pnand %p1919_p10, %p1916_p8 }
  0x74   : > { %1924 = shalt.err (!%p1921_p11)
}
  0x75   : > { %s1925_s13 = scalar_lea.vmem %s384_s30, 16  ;;  %s1932_s25 = scalar_lea.vmem %s384_s30, 32 }
  0x76   : > { %p1926_p12 = scmp.ne.s32.totalorder %s384_s30, %s1925_s13  ;;  %p1933_p13 = scmp.lt.s32.totalorder %s384_s30, %s384_s30 }
  0x77   : > { %p1934_p3 = scmp.lt.s32.totalorder %s1932_s25, %s1925_s13 }
  0x78   : > { %p1928_p0 = pnand %p1926_p12, %p2408_p2 }
  0x79   : > { %p1935_p7 = por %p1934_p3, %p1933_p13 }
  0x7a   : > { %p1929_p5 = pneg %p1928_p0 }
  0x7c   : > { %p1936_p9 = pnand %p1935_p7, %p1929_p5 }
  0x7e   : > { %1939 = shalt.err (!%p1936_p9)
}
  0x7f   : > { %1692 = dma.hbm_to_vmem [thread:$0]  (!%p2854_p4), %s2823_s7, 16, %s384_s30, [#allocation17]  }
  0x80   : > { %s2856_s2 = sld [smem:[#allocation34_spill]] }
  0x86   : > { %s1940_s12 = scalar_lea.hbm %s2856_s2, 16 }
  0x87   : > { %p1941_p1 = scmp.ne.s32.totalorder %s2856_s2, %s1940_s12  ;;  %p1947_p10 = scmp.lt.u32.totalorder %s1940_s12, %s2856_s2 }
  0x89   : > { %p1943_p6 = pnand %p1941_p1, %p2408_p2 }
  0x8b   : > { %p1944_p8 = pneg %p1943_p6 }
  0x8d   : > { %p1949_p11 = pnand %p1947_p10, %p1944_p8 }
  0x8f   : > { %1952 = shalt.err (!%p1949_p11)
}
  0x90   : > { %s1953_s13 = scalar_lea.vmem %s325_s11, 16  ;;  %s1960_s30 = scalar_lea.vmem %s325_s11, 32 }
  0x91   : > { %p1954_p12 = scmp.ne.s32.totalorder %s325_s11, %s1953_s13  ;;  %p1961_p13 = scmp.lt.s32.totalorder %s325_s11, %s325_s11 }
  0x92   : > { %p1962_p3 = scmp.lt.s32.totalorder %s1960_s30, %s1953_s13 }
  0x93   : > { %p1956_p0 = pnand %p1954_p12, %p2408_p2 }
  0x94   : > { %p1963_p7 = por %p1962_p3, %p1961_p13 }
  0x95   : > { %p1957_p5 = pneg %p1956_p0 }
  0x97   : > { %p1964_p9 = pnand %p1963_p7, %p1957_p5 }
  0x99   : > { %1967 = shalt.err (!%p1964_p9)
}
  0x9a   : > { %1677 = dma.hbm_to_vmem [thread:$0]  (!%p2854_p4), %s2856_s2, 16, %s325_s11, [#allocation8]  }
  0x9b   : > { %s2223_s29 = smov [#allocation12]   ;;  %s1968_s1 = scalar_lea.hbm %s2820_s4, 256 }
  0x9c   : > { %s345_s3 = sshll.u32 %s2223_s29, 4  ;;  %p1969_p1 = scmp.ne.s32.totalorder %s2820_s4, %s1968_s1  ;;  %s346_s3 = int_to_ptr.vmem [resolvable:$true] %s345_s3 }
  0x9d   : > { %p1975_p10 = scmp.lt.u32.totalorder %s1968_s1, %s2820_s4 }
  0x9e   : > { %p1971_p6 = pnand %p1969_p1, %p2408_p2 }
  0xa0   : > { %p1972_p8 = pneg %p1971_p6 }
  0xa2   : > { %p1977_p11 = pnand %p1975_p10, %p1972_p8 }
  0xa4   : > { %1980 = shalt.err (!%p1977_p11)
}
  0xa5   : > { %s1981_s11 = scalar_lea.vmem %s346_s3, 256  ;;  %p1989_p13 = scmp.lt.s32.totalorder %s346_s3, %s346_s3 }
  0xa6   : > { %p1982_p12 = scmp.ne.s32.totalorder %s346_s3, %s1981_s11  ;;  %p1990_p3 = scmp.lt.s32.totalorder %s1981_s11, %s1981_s11 }
  0xa8   : > { %p1984_p0 = pnand %p1982_p12, %p2408_p2  ;;  %p1991_p7 = por %p1990_p3, %p1989_p13 }
  0xaa   : > { %p1985_p5 = pneg %p1984_p0 }
  0xac   : > { %p1992_p9 = pnand %p1991_p7, %p1985_p5 }
  0xae   : > { %1995 = shalt.err (!%p1992_p9)
}
  0xaf   : > { %s2224_s30 = smov 64   ;;  %s2225_s25 = smov 4  }
  0xb0   : > { %1683 = dma.hbm_to_vmem [thread:$0]  (!%p2854_p4), %s2820_s4, 256, %s346_s3, [#allocation11], %s2224_s30, %s2224_s30, %s2225_s25  }
  0xb1   : > { %s2226_s16 = smov [#allocation15]   ;;  %s2227_s1 = smov [#allocation18]  }
  0xb2   : > { %s369_s12 = sshll.u32 %s2226_s16, 4  ;;  %s393_s10 = sshll.u32 %s2227_s1, 4  ;;  %s370_s12 = int_to_ptr.vmem [resolvable:$true] %s369_s12  ;;  %s2499_s10 = int_to_ptr.vmem [resolvable:$true] %s393_s10 }
  0xb3   : > { %s1996_s13 = scalar_lea.hbm %s2822_s6, 256 }
  0xb4   : > { %p1997_p1 = scmp.ne.s32.totalorder %s2822_s6, %s1996_s13  ;;  %p2003_p10 = scmp.lt.u32.totalorder %s1996_s13, %s2822_s6 }
  0xb6   : > { %p1999_p6 = pnand %p1997_p1, %p2408_p2 }
  0xb8   : > { %p2000_p8 = pneg %p1999_p6 }
  0xba   : > { %p2005_p11 = pnand %p2003_p10, %p2000_p8 }
  0xbc   : > { %2008 = shalt.err (!%p2005_p11)
}
  0xbd   : > { %s2009_s29 = scalar_lea.vmem %s370_s12, 256  ;;  %p2017_p13 = scmp.lt.s32.totalorder %s370_s12, %s370_s12 }
  0xbe   : > { %p2010_p12 = scmp.ne.s32.totalorder %s370_s12, %s2009_s29  ;;  %p2018_p3 = scmp.lt.s32.totalorder %s2009_s29, %s2009_s29 }
  0xc0   : > { %p2012_p0 = pnand %p2010_p12, %p2408_p2  ;;  %p2019_p7 = por %p2018_p3, %p2017_p13 }
  0xc2   : > { %p2013_p5 = pneg %p2012_p0 }
  0xc4   : > { %p2020_p9 = pnand %p2019_p7, %p2013_p5 }
  0xc6   : > { %2023 = shalt.err (!%p2020_p9)
}
  0xc7   : > { %1689 = dma.hbm_to_vmem [thread:$0]  (!%p2854_p4), %s2822_s6, 256, %s370_s12, [#allocation14], %s2224_s30, %s2224_s30, %s2225_s25  }
  0xc8   : > { %s2024_s24 = scalar_lea.hbm %s2824_s8, 256 }
  0xc9   : > { %p2025_p1 = scmp.ne.s32.totalorder %s2824_s8, %s2024_s24  ;;  %p2031_p10 = scmp.lt.u32.totalorder %s2024_s24, %s2824_s8 }
  0xcb   : > { %p2027_p6 = pnand %p2025_p1, %p2408_p2 }
  0xcd   : > { %p2028_p8 = pneg %p2027_p6 }
  0xcf   : > { %p2033_p11 = pnand %p2031_p10, %p2028_p8 }
  0xd1   : > { %2036 = shalt.err (!%p2033_p11)
}
  0xd2   : > { %s2037_s12 = scalar_lea.vmem %s2499_s10, 256  ;;  %p2045_p13 = scmp.lt.s32.totalorder %s2499_s10, %s2499_s10 }
  0xd3   : > { %p2038_p12 = scmp.ne.s32.totalorder %s2499_s10, %s2037_s12  ;;  %p2046_p3 = scmp.lt.s32.totalorder %s2037_s12, %s2037_s12 }
  0xd5   : > { %p2040_p0 = pnand %p2038_p12, %p2408_p2  ;;  %p2047_p7 = por %p2046_p3, %p2045_p13 }
  0xd7   : > { %p2041_p5 = pneg %p2040_p0 }
  0xd9   : > { %p2048_p9 = pnand %p2047_p7, %p2041_p5 }
  0xdb   : > { %2051 = shalt.err (!%p2048_p9)
}
  0xdc   : > { %1695 = dma.hbm_to_vmem [thread:$0]  (!%p2854_p4), %s2824_s8, 256, %s2499_s10, [#allocation17], %s2224_s30, %s2224_s30, %s2225_s25  }
  0xdd   : > { %s2228_s16 = smov [#allocation19]   ;;  %s2052_s13 = scalar_lea.hbm %s2825_s9, 16 }
  0xde   : > { %s407_s1 = sshll.u32 %s2228_s16, 4  ;;  %p2053_p1 = scmp.ne.s32.totalorder %s2825_s9, %s2052_s13  ;;  %s408_s1 = int_to_ptr.vmem [resolvable:$true] %s407_s1 }
  0xdf   : > { %p2059_p10 = scmp.lt.u32.totalorder %s2052_s13, %s2825_s9 }
  0xe0   : > { %p2055_p6 = pnand %p2053_p1, %p2408_p2 }
  0xe2   : > { %p2056_p8 = pneg %p2055_p6 }
  0xe4   : > { %p2061_p11 = pnand %p2059_p10, %p2056_p8 }
  0xe6   : > { %2064 = shalt.err (!%p2061_p11)
}
  0xe7   : > { %s2065_s30 = scalar_lea.vmem %s408_s1, 16  ;;  %s2072_s25 = scalar_lea.vmem %s408_s1, 32 }
  0xe8   : > { %p2066_p12 = scmp.ne.s32.totalorder %s408_s1, %s2065_s30  ;;  %p2073_p13 = scmp.lt.s32.totalorder %s408_s1, %s408_s1 }
  0xe9   : > { %p2074_p3 = scmp.lt.s32.totalorder %s2072_s25, %s2065_s30 }
  0xea   : > { %p2068_p0 = pnand %p2066_p12, %p2408_p2 }
  0xeb   : > { %p2075_p7 = por %p2074_p3, %p2073_p13 }
  0xec   : > { %p2069_p5 = pneg %p2068_p0 }
  0xee   : > { %p2076_p9 = pnand %p2075_p7, %p2069_p5 }
  0xf0   : > { %2079 = shalt.err (!%p2076_p9)
}
  0xf1   : > { %1698 = dma.hbm_to_vmem [thread:$0]  (!%p2854_p4), %s2825_s9, 16, %s408_s1, [#allocation20]  }
  0xf2   : > { %s43_s20 = sadd.s32 1, %s2212_s17  ;;  %s52_s2 = sadd.s32 1, %s2204_s15 }
  0xf3   : > { %p45_p2 = scmp.ge.s32.totalorder %s43_s20, 2  ;;  %p59_p1 = scmp.ne.s32.totalorder %s2204_s15, %s2200_s14 }
  0xf4   : > { %p60_p6 = scmp.eq.s32.totalorder %s2216_s18, 0  ;;  %p2858_p10 = scmp.ne.s32.totalorder %s2845_s22, 0 }
  0xf5   : > { %s2878_s20 = smov (%p45_p2, %s43_s20), 0  ;;  %p1715_p4 = scmp.lt.s32.totalorder %s2216_s18, 2 }
  0xf6   : > { %p2573_p8 = por %p60_p6, %p59_p1  ;;  %p2579_p11 = por %p2858_p10, %p59_p1 }
  0xf7   : > { %s47_s27 = ssub.s32 %s2212_s17, %s2878_s20  ;;  %s418_s1 = sand.u32 1, %s2204_s15  }
  0xf8   : > { %p50_p12 = scmp.eq.s32.totalorder %s47_s27, 0  ;;  %s1487_s24 = sshll.u32 %s418_s1, 3 }
  0xf9   : > { %s1488_s11 = sshll.u32 %s2212_s17, 7  ;;  %s422_s22 = scalar_lea.vmem [#allocation4], %s1487_s24 }
  0xfa   : > { %s2588_s13 = scalar_select %p50_p12, %s2204_s15, %s52_s2  }
  0xfb   : > { %s2594_s12 = scalar_lea.hbm %s2816_s0, %s1488_s11  ;;  %s430_s30 = sshll.u32 %s422_s22, 4  ;;  %s2596_s30 = int_to_ptr.vmem [resolvable:$true] %s430_s30 }
  0xfc   : > { %p2600_p0 = pnand %p1715_p4, %p2573_p8  ;;  %s419_s10 = scalar_lea.sflag [#allocation5], %s418_s1 }
  0xfd   : > { %s2080_s29 = scalar_lea.hbm %s2594_s12, 128  ;;  %s2085_s24 = scalar_lea.hbm %s2816_s0, 256 }
  0xfe   : > { %p2081_p5 = scmp.ne.s32.totalorder %s2594_s12, %s2080_s29  ;;  %p2082_p13 = pneg %p2600_p0 }
  0xff   : > { %p2086_p9 = scmp.lt.u32.totalorder %s2594_s12, %s2816_s0  ;;  %p2087_p2 = scmp.lt.u32.totalorder %s2085_s24, %s2080_s29 }
 0x100   : > { %p2083_p3 = pnand %p2082_p13, %p2081_p5  ;;  %p2089_p6 = scmp.lt.u32.totalorder %s2080_s29, %s2594_s12 }
 0x101   : > { %p2088_p1 = por %p2087_p2, %p2086_p9 }
 0x102   : > { %p2084_p7 = pneg %p2083_p3 }
 0x103   : > { %p2090_p8 = por %p2089_p6, %p2088_p1 }
 0x105   : > { %p2091_p10 = pnand %p2090_p8, %p2084_p7 }
 0x107   : > { %2094 = shalt.err (!%p2091_p10)
}
 0x108   : > { %s2095_s1 = scalar_lea.vmem %s2596_s30, 128  ;;  %s2229_s28 = smov [#allocation4]  }
 0x109   : > { %p2096_p4 = scmp.ne.s32.totalorder %s2596_s30, %s2095_s1  ;;  %s2100_s3 = sshll.u32 %s2229_s28, 4  ;;  %s2101_s3 = int_to_ptr.vmem [resolvable:$false] %s2100_s3 }
 0x10a   : > { %s2102_s22 = scalar_lea.vmem %s2101_s3, 256  ;;  %p2103_p3 = scmp.lt.s32.totalorder %s2596_s30, %s2101_s3 }
 0x10b   : > { %p2098_p12 = pnand %p2096_p4, %p2082_p13  ;;  %p2104_p9 = scmp.lt.s32.totalorder %s2102_s22, %s2095_s1 }
 0x10d   : > { %p2099_p5 = pneg %p2098_p12  ;;  %p2105_p2 = por %p2104_p9, %p2103_p3 }
 0x10f   : > { %p2106_p1 = pnand %p2105_p2, %p2099_p5 }
 0x111   : > { %2109 = shalt.err (!%p2106_p1)
}
 0x112   : > { %1702 = dma.hbm_to_vmem [thread:$0]  (!%p2600_p0), %s2594_s12, 128, %s2596_s30, %s419_s10  }
 0x113   : > { %p2861_p7 = scmp.ne.s32.totalorder %s2849_s26, 0 }
 0x114   : > { %s2632_s29 = sand.u32 (!%p2861_p7), 1, %s2200_s14   ;;  %p2862_p13 = scmp.ne.s32.totalorder (!%p2861_p7), %s2846_s23, 0 }
 0x115   : > { %439 = sbr.rel (%p2861_p7) target bundleno = 2116 (0x844), region = 60  ;;  %s1490_s2 = sshll.u32 (!%p2861_p7), %s2632_s29, 3 }
 0x116   : > { %s442_s27 = scalar_lea.sflag (!%p2861_p7), [#allocation5], %s2632_s29  ;;  %s445_s24 = scalar_lea.vmem (!%p2861_p7), [#allocation4], %s1490_s2 }
 0x11c   : > { %2163 = dma.done.wait (%p2862_p13), %s442_s27, 128  }
 0x11d   : > { %2165 = vsyncadd (%p2862_p13), %s442_s27, 4294967168 }
 0x11e   : > { %2167 = dma.done.wait (%p2862_p13), [#allocation8], 128  }
 0x11f   : > { %2169 = vsyncadd (%p2862_p13), [#allocation8], 4294967168  ;;  %p2863_p0 = scmp.ne.s32.totalorder %s2844_s21, 0 }
 0x121   : > { %2171 = dma.done.wait (%p2863_p0), [#allocation8], 16  }
 0x122   : > { %2173 = vsyncadd (%p2863_p0), [#allocation8], 4294967280 }
 0x123   : > { %2175 = dma.done.wait (%p2863_p0), [#allocation11], 272  }
 0x124   : > { %2177 = vsyncadd (%p2863_p0), [#allocation11], 4294967024 }
 0x125   : > { %2179 = dma.done.wait (%p2863_p0), [#allocation14], 272  }
 0x126   : > { %2181 = vsyncadd (%p2863_p0), [#allocation14], 4294967024 }
 0x127   : > { %2183 = dma.done.wait (%p2863_p0), [#allocation17], 272  }
 0x128   : > { %2185 = vsyncadd (%p2863_p0), [#allocation17], 4294967024 }
 0x129   : > { %2187 = dma.done.wait (%p2863_p0), [#allocation20], 16  }
 0x12a   : > { %2189 = vsyncadd (%p2863_p0), [#allocation20], 4294967280  ;;  %vm526_vm0 = vcmask 261120   ;;  %v525_v0 = vld [vmem:[#allocation7] sm:$0xff]  ;;  %v2666_v1 = vld [vmem:[%s445_s24] sm:$0xff]  ;;  %v2230_v16 = vmov 0.0  }
 0x12b   : > { %v527_v2 = vsel %vm526_vm0, %v525_v0, 0.0  ;;  %v627_v3 = vsel %vm526_vm0, %v2666_v1, 0.0  ;;  %v1796_v14 = vld [vmem:[#allocation15] sm:$0xff]   ;;  %v1798_v15 = vld [vmem:[#allocation12] sm:$0xff]   ;;  %1561 = vmatprep.subr.bf16.mxu0 %v2230_v16  ;;  %1569 = vmatprep.subr.bf16.mxu1 %v2230_v16  ;;  %vm2231_vm1 = vmmov 0   ;;  %v1799_v18 = vld [vmem:[#allocation12 + $0x8] sm:$0xff]  }
 0x12c   : > { %528 = vadd.xlane.f32.xlu0 %v527_v2  ;;  %1562 = vmatpush3.bf16.msra.mxu0 %v1796_v14  ;;  %v1797_v17 = vld [vmem:[#allocation15 + $0x8] sm:$0xff]   ;;  %v1500_v37 = vld [vmem:[#allocation16] ss:$0 sm:$0xff]  ;;  %vm623_vm2 = vcmask 519168   ;;  %v1504_v42 = vld [vmem:[#allocation13] ss:$0 sm:$0xff] }
 0x12d   : > { %1570 = vmatpush3.bf16.msra.mxu1 %v1798_v15  ;;  %1563 = vmatprep.subr.bf16.mxu0 %v2230_v16  ;;  %v1534_v26 = vld [vmem:[#allocation9] ss:$0 sm:$0xff]  ;;  %v1535_v28 = vld [vmem:[#allocation10] ss:$0 sm:$0xff]  ;;  %vm733_vm3 = vcmask 64512   ;;  %s2232_s21 = smov 120  }
 0x12e   : > { %1565 = vmatprep.mubr.msk.bf16.mxu0 %vm2231_vm1, %v2230_v16  ;;  %1571 = vmatprep.subr.bf16.mxu1 %v2230_v16  ;;  %s2233_s23 = smov 112   ;;  %s2234_s26 = smov 104   ;;  %vm801_vm5 = vcmask 1043456   ;;  %vm846_vm6 = vcmask 60416   ;;  %vm971_vm7 = vcmask 126016   ;;  %vm1095_vm8 = vcmask 191616  }
 0x12f   : > { %1573 = vmatprep.mubr.msk.bf16.mxu1 %vm2231_vm1, %v2230_v16  ;;  %s2235_s12 = smov 88   ;;  %s2236_s30 = smov 80   ;;  %vm1219_vm9 = vcmask 257216  }
 0x130   : > { %628 = vadd.xlane.f32.xlu0 %v627_v3  ;;  %1564 = vmatpush3.bf16.msra.mxu0 %v1797_v17  ;;  %v542_v3 = vlaneseq  ;;  %s2237_s25 = smov 96   ;;  %s2238_s10 = smov 72  }
 0x131   : > { %1577 = vmatprep.subr.bf16.mxu0 %v2230_v16  ;;  %1572 = vmatpush3.bf16.msra.mxu1 %v1799_v18  ;;  %s2239_s19 = smov 8   ;;  %s2240_s11 = smov 16  }
 0x132   : > { %1583 = vmatprep.subr.bf16.mxu1 %v2230_v16  ;;  %s2241_s1 = smov 24   ;;  %s2864_s28 = sld [smem:[#allocation31_spill]] }
 0x133   : > { %s517_s3 = scalar_lea.vmem [#allocation21], %s1490_s2  ;;  %s1292_s2 = scalar_lea.sflag [#allocation6], %s2632_s29 }
 0x134   : > { %s1306_s22 = sshll.u32 %s517_s3, 4  ;;  %s2768_s22 = int_to_ptr.vmem [resolvable:$true] %s1306_s22 }
 0x138   : > { %s2865_s27 = sshll.u32 %s2864_s28, 7 }
 0x1b9   : > { %v529_v4 = vpop.xlane.xlu0 %528 }
 0x1ba   : > { %v531_v5 = vmul.f32 0.03125, %v529_v4  ;;  %v543_v4 = vshrl.u32 %v542_v3, 7 }
 0x1bc   : > { %v532_v6 = vsub.f32 %v525_v0, %v531_v5  ;;  %v729_v5 = vand.u32 127, %v542_v3 }
 0x1bd   : > { %v629_v7 = vpop.xlane.xlu0 %628 }
 0x1be   : > { %v631_v8 = vmul.f32 0.03125, %v629_v7  ;;  %v533_v9 = vmul.f32 %v532_v6, %v532_v6  ;;  %vm730_vm4 = vcmp.gt.s32.totalorder %v729_v5, %v543_v4 }
 0x1c0   : > { %v632_v10 = vsub.f32 %v2666_v1, %v631_v8  ;;  %v534_v11 = vsel %vm526_vm0, %v533_v9, 0.0 }
 0x1c1   : > { %535 = vadd.xlane.f32.xlu1 %v534_v11 }
 0x1c2   : > { %v633_v12 = vmul.f32 %v632_v10, %v632_v10 }
 0x1c4   : > { %v634_v13 = vsel %vm526_vm0, %v633_v12, 0.0 }
 0x1c5   : > { %635 = vadd.xlane.f32.xlu1 %v634_v13 }
 0x24e   : > { %v536_v19 = vpop.xlane.xlu1 %535 }
 0x24f   : > { %v537_v20 = vmul.f32 0.03125, %v536_v19 }
 0x251   : > { %v538_v21 = vadd.f32 1e-05, %v537_v20 }
 0x252   : > { %v636_v22 = vpop.xlane.xlu1 %635 }
 0x253   : > { %1806 = vrsqrt.f32 %v538_v21  ;;  %v637_v23 = vmul.f32 0.03125, %v636_v22 }
 0x255   : > { %v638_v24 = vadd.f32 1e-05, %v637_v23 }
 0x257   : > { %1808 = vrsqrt.f32 %v638_v24 }
 0x25d   : > { %v1807_v25 = vpop.eup %1806 }
 0x25e   : > { %v540_v27 = vmul.f32 %v1807_v25, %v532_v6 }
 0x260   : > { %v547_v29 = vmul.f32 %v1534_v26, %v540_v27 }
 0x261   : > { %v1809_v30 = vpop.eup %1808 }
 0x262   : > { %v554_v31 = vadd.f32 %v1535_v28, %v547_v29  ;;  %v640_v32 = vmul.f32 %v1809_v30, %v632_v10 }
 0x264   : > { %v555_v33 = vpack.c.bf16 %v554_v31, %v554_v31  ;;  %v647_v34 = vmul.f32 %v1534_v26, %v640_v32 }
 0x266   : > { %1566 = vmatmul.mubr.msk.bf16.vlgmr.msra.gmra.mrb[0].mxu0 %vm526_vm0, %v555_v33  ;;  %v654_v35 = vadd.f32 %v1535_v28, %v647_v34 }
 0x267   : > { %1579 = vmatprep.mubr.msk.bf16.mxu0 %vm2231_vm1, %v2230_v16 }
 0x268   : > { %v655_v36 = vpack.c.bf16 %v654_v35, %v654_v35 }
 0x26a   : > { %1574 = vmatmul.mubr.msk.bf16.vlgmr.msra.gmra.mrb[0].mxu1 %vm526_vm0, %v655_v36 }
 0x26b   : > { %1585 = vmatprep.mubr.msk.bf16.mxu1 %vm2231_vm1, %v2230_v16 }
 0x339   : > { %v616_v38 = vpop.f32.mrb[0].mxu0 }
 0x33a   : > { %v617_v39 = vadd.f32 %v1500_v37, %v616_v38  ;;  %v1567_v40 = vpop.f32.mrb[1].mxu0 }
 0x33b   : > { %v619_v41 = vpop.f32.mrb[2].mxu0 }
 0x33c   : > { %v622_v43 = vpack.c.bf16 %v617_v39, %v617_v39  ;;  %v1568_v44 = vpop.f32.mrb[3].mxu0 }
 0x33d   : > { %v716_v45 = vpop.f32.mrb[0].mxu1 }
 0x33e   : > { %624 = vst.msk [vmem:[#allocation2] sm:$0xf] %vm623_vm2, %v622_v43  ;;  %v717_v46 = vadd.f32 %v1504_v42, %v716_v45  ;;  %v1575_v47 = vpop.f32.mrb[1].mxu1 }
 0x33f   : > { %v719_v48 = vpop.f32.mrb[2].mxu1 }
 0x340   : > { %v722_v49 = vmul.f32 0.35355338, %v717_v46  ;;  %v1576_v50 = vpop.f32.mrb[3].mxu1 }
 0x342   : > { %v731_v51 = vpack.c.bf16 %v722_v49, %v722_v49 }
 0x344   : > { %850 = vrot.lane.b32.xlu1 %v731_v51, %s2232_s21 }
 0x345   : > { %v2690_v52 = vld [vmem:[#allocation2] sm:$0xf] }
 0x346   : > { %v2692_v53 = vld [vmem:[#allocation2] ss:$0 sps:$4 sm:$0xff]   ;;  %v738_v54 = vsel %vm733_vm3, %v2690_v52, 0  ;;  %v1509_v46 = vcombine.low %v2690_v52, %v2690_v52 }
 0x347   : > { %v2696_v55 = vld [vmem:[#allocation2] ss:$0 sps:$4 sm:$0xff]   ;;  %1578 = vmatpush3.bf16.xpose.msra.mxu0 %v738_v54 }
 0x348   : > { %979 = vrot.lane.b32.xlu1 %v2692_v53, %s2233_s23  ;;  %855 = vrot.lane.b32.xlu0 %v2696_v55, %s2232_s21  ;;  %v2701_v56 = vld [vmem:[#allocation2] ss:$0 sps:$4 sm:$0xff]  }
 0x349   : > { %1589 = vmatprep.subr.bf16.mxu0 %v2230_v16 }
 0x34c   : > { %974 = vrot.lane.b32.xlu1 %v731_v51, %s2233_s23  ;;  %1103 = vrot.lane.b32.xlu0 %v2701_v56, %s2234_s26  ;;  %s2866_s23 = sld [smem:[#allocation36_spill]] }
 0x34e   : > { %1580 = vmatmul.mubr.msk.bf16.vlgmr.msra.gmra.mrb[4].mxu0 %vm733_vm3, %v731_v51 }
 0x34f   : > { %1591 = vmatprep.mubr.msk.bf16.mxu0 %vm2231_vm1, %v2230_v16 }
 0x350   : > { %1098 = vrot.lane.b32.xlu1 %v731_v51, %s2234_s26 }
 0x352   : > { %s2766_s26 = scalar_lea.hbm %s2866_s23, %s2865_s27 }
 0x3b6   : > { %v851_v57 = vpop.permute.xlu1 %850 }
 0x3ba   : > { %v856_v58 = vpop.permute.xlu0 %855  ;;  %v980_v60 = vpop.permute.xlu1 %979 }
 0x3bb   : > { %v861_v59 = vsel %vm733_vm3, %v856_v58, 0  ;;  %v985_v61 = vsel %vm733_vm3, %v980_v60, 0 }
 0x3bc   : > { %1590 = vmatpush3.bf16.xpose.msra.mxu0 %v861_v59 }
 0x3bd   : > { %1601 = vmatprep.subr.bf16.mxu0 %v2230_v16 }
 0x3be   : > { %v1104_v62 = vpop.permute.xlu0 %1103  ;;  %v975_v63 = vpop.permute.xlu1 %974 }
 0x3bf   : > { %v1109_v0 = vsel %vm733_vm3, %v1104_v62, 0 }
 0x3c2   : > { %v1099_v2 = vpop.permute.xlu1 %1098 }
 0x3c3   : > { %1592 = vmatmul.mubr.msk.bf16.vlgmr.msra.gmra.mrb[8].mxu0 %vm733_vm3, %v851_v57 }
 0x3c4   : > { %1602 = vmatpush3.bf16.xpose.msra.mxu0 %v985_v61  ;;  %1603 = vmatprep.mubr.msk.bf16.mxu0 %vm2231_vm1, %v2230_v16 }
 0x3c5   : > { %1613 = vmatprep.subr.bf16.mxu0 %v2230_v16 }
 0x3cb   : > { %1604 = vmatmul.mubr.msk.bf16.vlgmr.msra.gmra.mrb[12].mxu0 %vm733_vm3, %v975_v63 }
 0x3cc   : > { %1614 = vmatpush3.bf16.xpose.msra.mxu0 %v1109_v0  ;;  %1615 = vmatprep.mubr.msk.bf16.mxu0 %vm2231_vm1, %v2230_v16 }
 0x3cd   : > { %1625 = vmatprep.subr.bf16.mxu0 %v2230_v16 }
 0x3d3   : > { %1616 = vmatmul.mubr.msk.bf16.vlgmr.msra.gmra.mrb[16].mxu0 %vm733_vm3, %v1099_v2 }
 0x3d4   : > { %1629 = vmatprep.mubr.msk.bf16.mxu0 %vm2231_vm1, %v2230_v16 }
 0x421   : > { %v774_v6 = vpop.f32.mrb[4].mxu0 }
 0x422   : > { %v780_v7 = vsel %vm730_vm4, -1e+09, %v774_v6  ;;  %v1581_v8 = vpop.f32.mrb[5].mxu0 }
 0x423   : > { %v777_v9 = vpop.f32.mrb[6].mxu0  ;;  %v781_v10 = vsel %vm733_vm3, %v780_v7, -inf }
 0x424   : > { %782 = vmax.xlane.f32.xlu0 %v781_v10  ;;  %v1582_v11 = vpop.f32.mrb[7].mxu0 }
 0x496   : > { %v897_v12 = vpop.f32.mrb[8].mxu0 }
 0x497   : > { %v903_v13 = vsel %vm730_vm4, -1e+09, %v897_v12  ;;  %v1593_v14 = vpop.f32.mrb[9].mxu0 }
 0x498   : > { %v900_v15 = vpop.f32.mrb[10].mxu0  ;;  %v904_v17 = vsel %vm733_vm3, %v903_v13, -inf }
 0x499   : > { %905 = vmax.xlane.f32.xlu1 %v904_v17  ;;  %v1594_v18 = vpop.f32.mrb[11].mxu0 }
 0x49e   : > { %v1021_v19 = vpop.f32.mrb[12].mxu0 }
 0x49f   : > { %v1027_v20 = vsel %vm730_vm4, -1e+09, %v1021_v19  ;;  %v1605_v21 = vpop.f32.mrb[13].mxu0 }
 0x4a0   : > { %v1024_v22 = vpop.f32.mrb[14].mxu0  ;;  %v1028_v23 = vsel %vm733_vm3, %v1027_v20, -inf }
 0x4a1   : > { %1029 = vmax.xlane.f32.xlu0 %v1028_v23  ;;  %v1606_v24 = vpop.f32.mrb[15].mxu0 }
 0x4a6   : > { %v1145_v25 = vpop.f32.mrb[16].mxu0 }
 0x4a7   : > { %v1151_v26 = vsel %vm730_vm4, -1e+09, %v1145_v25  ;;  %v1617_v27 = vpop.f32.mrb[17].mxu0 }
 0x4a8   : > { %v1148_v28 = vpop.f32.mrb[18].mxu0  ;;  %v1152_v29 = vsel %vm733_vm3, %v1151_v26, -inf }
 0x4a9   : > { %1153 = vmax.xlane.f32.xlu0 %v1152_v29  ;;  %v1618_v30 = vpop.f32.mrb[19].mxu0  ;;  %v1804_v29 = vld [vmem:[#allocation18] sm:$0xff]  }
 0x4aa   : > { %1626 = vmatpush3.bf16.msra.mxu0 %v1804_v29  ;;  %v1805_v30 = vld [vmem:[#allocation18 + $0x8] sm:$0xff]  }
 0x4ab   : > { %1627 = vmatprep.subr.bf16.mxu0 %v2230_v16 }
 0x4ae   : > { %1628 = vmatpush3.bf16.msra.mxu0 %v1805_v30 }
 0x4b1   : > { %v783_v31 = vpop.xlane.xlu0 %782 }
 0x4b2   : > { %v784_v32 = vsub.f32 %v780_v7, %v783_v31 }
 0x4b4   : > { %v785_v33 = vmul.f32 1.442695, %v784_v32 }
 0x4b6   : > { %1810 = vpow2.f32 %v785_v33 }
 0x4c0   : > { %v1811_v34 = vpop.eup %1810 }
 0x4c1   : > { %v787_v35 = vsel %vm733_vm3, %v1811_v34, 0.0 }
 0x4c2   : > { %788 = vadd.xlane.f32.xlu0 %v787_v35 }
 0x526   : > { %v906_v36 = vpop.xlane.xlu1 %905 }
 0x527   : > { %v907_v37 = vsub.f32 %v903_v13, %v906_v36 }
 0x529   : > { %v908_v38 = vmul.f32 1.442695, %v907_v37 }
 0x52b   : > { %1812 = vpow2.f32 %v908_v38 }
 0x52e   : > { %v1030_v39 = vpop.xlane.xlu0 %1029 }
 0x52f   : > { %v1031_v40 = vsub.f32 %v1027_v20, %v1030_v39 }
 0x531   : > { %v1032_v41 = vmul.f32 1.442695, %v1031_v40  ;;  %v1526_v40 = vld [vmem:[#allocation19] ss:$0 sm:$0xff] }
 0x533   : > { %1814 = vpow2.f32 %v1032_v41 }
 0x535   : > { %v1813_v42 = vpop.eup %1812 }
 0x536   : > { %v910_v43 = vsel %vm733_vm3, %v1813_v42, 0.0  ;;  %v1154_v47 = vpop.xlane.xlu0 %1153 }
 0x537   : > { %911 = vadd.xlane.f32.xlu1 %v910_v43  ;;  %v1155_v48 = vsub.f32 %v1151_v26, %v1154_v47 }
 0x539   : > { %v1156_v49 = vmul.f32 1.442695, %v1155_v48 }
 0x53b   : > { %1816 = vpow2.f32 %v1156_v49 }
 0x53d   : > { %v1815_v44 = vpop.eup %1814 }
 0x53e   : > { %v1034_v45 = vsel %vm733_vm3, %v1815_v44, 0.0 }
 0x53f   : > { %1035 = vadd.xlane.f32.xlu0 %v1034_v45 }
 0x545   : > { %v1817_v50 = vpop.eup %1816 }
 0x546   : > { %v1158_v51 = vsel %vm733_vm3, %v1817_v50, 0.0 }
 0x548   : > { %916 = vrot.lane.b32.xlu1 %v2696_v55, %s2235_s12  ;;  %s2110_s12 = scalar_lea.vmem %s2768_s22, 128 }
 0x549   : > { %p2111_p6 = scmp.ne.s32.totalorder %s2768_s22, %s2110_s12 }
 0x54b   : > { %p2112_p8 = pnand %p2111_p6, %p2579_p11 }
 0x54c   : > { %1040 = vrot.lane.b32.xlu1 %v2692_v53, %s2236_s30  ;;  %s2242_s30 = smov [#allocation21]  }
 0x54d   : > { %p2113_p10 = pneg %p2112_p8 }
 0x54f   : > { %v789_v54 = vpop.xlane.xlu0 %788 }
 0x550   : > { %1818 = vrcp.f32 %v789_v54 }
 0x555   : > { %796 = vrot.lane.b32.xlu0 %v1509_v46, %s2237_s25  ;;  %s2114_s25 = sshll.u32 %s2242_s30, 4  ;;  %s2115_s25 = int_to_ptr.vmem [resolvable:$false] %s2114_s25 }
 0x556   : > { %p2117_p4 = scmp.lt.s32.totalorder %s2768_s22, %s2115_s25 }
 0x55a   : > { %v1819_v53 = vpop.eup %1818 }
 0x55b   : > { %v791_v52 = vmul.f32 %v1819_v53, %v1811_v34 }
 0x55d   : > { %v792_v61 = vpack.c.bf16 %v791_v52, %v791_v52 }
 0x570   : > { %1159 = vadd.xlane.f32.xlu1 %v1158_v51 }
 0x581   : > { %1164 = vrot.lane.b32.xlu1 %v2701_v56, %s2238_s10  ;;  %s2116_s10 = scalar_lea.vmem %s2115_s25, 256 }
 0x582   : > { %p2118_p12 = scmp.lt.s32.totalorder %s2116_s10, %s2110_s12 }
 0x584   : > { %p2119_p5 = por %p2118_p12, %p2117_p4 }
 0x586   : > { %p2120_p3 = pnand %p2119_p5, %p2113_p10 }
 0x5c4   : > { %v912_v55 = vpop.xlane.xlu1 %911 }
 0x5c5   : > { %1820 = vrcp.f32 %v912_v55 }
 0x5c8   : > { %v917_v60 = vpop.permute.xlu1 %916 }
 0x5c9   : > { %v922_v56 = vsel %vm801_vm5, %v917_v60, 0 }
 0x5cc   : > { %v1036_v57 = vpop.xlane.xlu0 %1035  ;;  %v1041_v0 = vpop.permute.xlu1 %1040 }
 0x5cd   : > { %1822 = vrcp.f32 %v1036_v57  ;;  %v1046_v4 = vsel %vm801_vm5, %v1041_v0, 0 }
 0x5cf   : > { %v1821_v62 = vpop.eup %1820 }
 0x5d0   : > { %v797_v58 = vpop.permute.xlu0 %796  ;;  %v914_v63 = vmul.f32 %v1821_v62, %v1813_v42 }
 0x5d1   : > { %v803_v59 = vsel %vm801_vm5, %v797_v58, 0 }
 0x5d2   : > { %1584 = vmatpush3.bf16.msra.mxu1 %v803_v59  ;;  %v915_v2 = vpack.c.bf16 %v914_v63, %v914_v63 }
 0x5d3   : > { %1595 = vmatprep.subr.bf16.mxu1 %v2230_v16 }
 0x5d5   : > { %1586 = vmatmul.mubr.msk.bf16.vlgmr.msra.gmra.mrb[4].mxu1 %vm733_vm3, %v792_v61 }
 0x5d6   : > { %1596 = vmatpush3.bf16.msra.mxu1 %v922_v56  ;;  %1597 = vmatprep.mubr.msk.bf16.mxu1 %vm2231_vm1, %v2230_v16 }
 0x5d7   : > { %1607 = vmatprep.subr.bf16.mxu1 %v2230_v16  ;;  %v1823_v3 = vpop.eup %1822 }
 0x5d8   : > { %v1038_v5 = vmul.f32 %v1823_v3, %v1815_v44 }
 0x5da   : > { %v1039_v6 = vpack.c.bf16 %v1038_v5, %v1038_v5 }
 0x5dd   : > { %1598 = vmatmul.mubr.msk.bf16.vlgmr.msra.gmra.mrb[8].mxu1 %vm733_vm3, %v915_v2 }
 0x5de   : > { %1608 = vmatpush3.bf16.msra.mxu1 %v1046_v4  ;;  %1609 = vmatprep.mubr.msk.bf16.mxu1 %vm2231_vm1, %v2230_v16 }
 0x5df   : > { %1619 = vmatprep.subr.bf16.mxu1 %v2230_v16 }
 0x5e5   : > { %1610 = vmatmul.mubr.msk.bf16.vlgmr.msra.gmra.mrb[12].mxu1 %vm733_vm3, %v1039_v6 }
 0x5e6   : > { %1621 = vmatprep.mubr.msk.bf16.mxu1 %vm2231_vm1, %v2230_v16 }
 0x5fd   : > { %v1160_v7 = vpop.xlane.xlu1 %1159 }
 0x5fe   : > { %1824 = vrcp.f32 %v1160_v7 }
 0x601   : > { %v1165_v8 = vpop.permute.xlu1 %1164 }
 0x602   : > { %v1170_v9 = vsel %vm801_vm5, %v1165_v8, 0 }
 0x603   : > { %1620 = vmatpush3.bf16.msra.mxu1 %v1170_v9 }
 0x608   : > { %v1825_v10 = vpop.eup %1824 }
 0x609   : > { %v1162_v11 = vmul.f32 %v1825_v10, %v1817_v50 }
 0x60b   : > { %v1163_v12 = vpack.c.bf16 %v1162_v11, %v1162_v11 }
 0x60d   : > { %1622 = vmatmul.mubr.msk.bf16.vlgmr.msra.gmra.mrb[16].mxu1 %vm733_vm3, %v1163_v12 }
 0x6a8   : > { %v839_v13 = vpop.f32.mrb[4].mxu1 }
 0x6a9   : > { %v845_v14 = vpack.c.bf16 %v839_v13, %v839_v13  ;;  %v1587_v15 = vpop.f32.mrb[5].mxu1 }
 0x6aa   : > { %v842_v17 = vpop.f32.mrb[6].mxu1 }
 0x6ab   : > { %847 = vst.msk [vmem:[#allocation3] sm:$0xf] %vm846_vm6, %v845_v14  ;;  %v1588_v18 = vpop.f32.mrb[7].mxu1 }
 0x6b0   : > { %v958_v19 = vpop.f32.mrb[8].mxu1 }
 0x6b1   : > { %v1531_v20 = vpack.c.bf16 %v958_v19, %v958_v19  ;;  %v1599_v21 = vpop.f32.mrb[9].mxu1 }
 0x6b2   : > { %v961_v22 = vpop.f32.mrb[10].mxu1 }
 0x6b3   : > { %968 = vrot.lane.b32.xlu0 %v1531_v20, %s2239_s19  ;;  %v1600_v23 = vpop.f32.mrb[11].mxu1 }
 0x6b8   : > { %v1082_v24 = vpop.f32.mrb[12].mxu1 }
 0x6b9   : > { %v1532_v25 = vpack.c.bf16 %v1082_v24, %v1082_v24  ;;  %v1611_v26 = vpop.f32.mrb[13].mxu1 }
 0x6ba   : > { %v1085_v27 = vpop.f32.mrb[14].mxu1 }
 0x6bb   : > { %1092 = vrot.lane.b32.xlu1 %v1532_v25, %s2240_s11  ;;  %v1612_v28 = vpop.f32.mrb[15].mxu1 }
 0x6e0   : > { %v1206_v31 = vpop.f32.mrb[16].mxu1 }
 0x6e1   : > { %v1533_v32 = vpack.c.bf16 %v1206_v31, %v1206_v31  ;;  %v1623_v33 = vpop.f32.mrb[17].mxu1 }
 0x6e2   : > { %v1209_v34 = vpop.f32.mrb[18].mxu1 }
 0x6e3   : > { %1216 = vrot.lane.b32.xlu0 %v1533_v32, %s2241_s1  ;;  %v1624_v35 = vpop.f32.mrb[19].mxu1 }
 0x725   : > { %v969_v36 = vpop.permute.xlu0 %968 }
 0x726   : > { %972 = vst.msk [vmem:[#allocation3] sm:$0xf] %vm971_vm7, %v969_v36 }
 0x72d   : > { %v1093_v37 = vpop.permute.xlu1 %1092 }
 0x72e   : > { %1096 = vst.msk [vmem:[#allocation3] sm:$0xf] %vm1095_vm8, %v1093_v37 }
 0x755   : > { %v1217_v38 = vpop.permute.xlu0 %1216 }
 0x756   : > { %1220 = vst.msk [vmem:[#allocation3] sm:$0xf] %vm1219_vm9, %v1217_v38 }
 0x75d   : > { %v1221_v16 = vld [vmem:[#allocation3] sm:$0xf] }
 0x75e   : > { %1630 = vmatmul.mubr.msk.bf16.vlgmr.msra.gmra.mrb[20].mxu0 %vm526_vm0, %v1221_v16 }
 0x831   : > { %v1275_v39 = vpop.f32.mrb[20].mxu0 }
 0x832   : > { %v1281_v41 = vadd.f32 %v1275_v39, %v2666_v1  ;;  %v1631_v42 = vpop.f32.mrb[21].mxu0 }
 0x833   : > { %v1278_v43 = vpop.f32.mrb[22].mxu0 }
 0x834   : > { %v1289_v44 = vadd.f32 %v1526_v40, %v1281_v41  ;;  %v1632_v45 = vpop.f32.mrb[23].mxu0 }
 0x836   : > { %1290 = vst.msk [vmem:[%s517_s3] sm:$0xff] %vm526_vm0, %v1289_v44 }
 0x837   : > { %2123 = shalt.err (!%p2120_p3)
}
 0x838   : > { %s2124_s29 = scalar_lea.hbm %s2766_s26, 128  ;;  %s2128_s1 = scalar_lea.hbm %s2866_s23, 256 }
 0x839   : > { %p2125_p9 = scmp.ne.s32.totalorder %s2766_s26, %s2124_s29  ;;  %p2129_p7 = scmp.lt.u32.totalorder %s2766_s26, %s2866_s23 }
 0x83a   : > { %p2130_p13 = scmp.lt.u32.totalorder %s2128_s1, %s2124_s29  ;;  %p2132_p6 = scmp.lt.u32.totalorder %s2124_s29, %s2766_s26 }
 0x83b   : > { %p2126_p2 = pnand %p2125_p9, %p2579_p11 }
 0x83c   : > { %p2131_p0 = por %p2130_p13, %p2129_p7 }
 0x83d   : > { %p2127_p1 = pneg %p2126_p2 }
 0x83e   : > { %p2133_p8 = por %p2132_p6, %p2131_p0 }
 0x840   : > { %p2134_p10 = pnand %p2133_p8, %p2127_p1 }
 0x842   : > { %2137 = shalt.err (!%p2134_p10)
}
 0x843   : > { %1669 = dma.vmem_to_hbm [thread:$0]  (%p2579_p11), %s2768_s22, 128, %s2766_s26, %s1292_s2  }
 0x844 PF: > { %s2867_s27 = sld [smem:[#allocation30_spill]]  ;;  %s2868_s24 = sld [smem:[#allocation32_spill]] }
 0x845   : > { %p2870_p12 = scmp.ge.s32.totalorder %s2216_s18, 2 }
 0x84a   : > { %s1318_s21 = sand.u32 1, %s2867_s27   ;;  %p2869_p4 = scmp.ne.s32.totalorder %s2868_s24, 0 }
 0x84b   : > { %s1319_s12 = scalar_lea.sflag [#allocation6], %s1318_s21 }
 0x84c   : > { %p1704_p5 = pnand %p2870_p12, %p2869_p4 }
 0x84e   : > { %2191 = dma.done.wait (!%p1704_p5), %s1319_s12, 128  }
 0x84f   : > { %2193 = vsyncadd (!%p1704_p5), %s1319_s12, 4294967168  ;;  %s31_s18 = sadd.s32 1, %s2216_s18   ;;  %s2871_s16 = smov %s2588_s13 }
 0x850   : > { %p28_p3 = scmp.ge.s32.totalorder %s31_s18, 4   ;;  %s2872_s13 = smov %s2200_s14 }
 0x851   : > { %s2873_s14 = smov %s2204_s15  ;;  %s2874_s15 = smov %s2871_s16 }
 0x852   : > { %s2875_s16 = smov %s2212_s17  ;;  %s2876_s17 = smov %s2878_s20 }
 0x853   :  { %30 = sbr.rel (!%p28_p3) target bundleno = 16 (0x10), region = 146 }
 0x85a   :  { %1324 = vsyncpa [#allocation5], 1 }
 0x85b   :  { %1326 = vsyncpa [#allocation5 + $0x1], 1 }
 0x85c   :  { %1327 = vsyncpa [#allocation8], 1 }
 0x85d   :  { %1328 = vsyncpa [#allocation11], 1 }
 0x85e   :  { %1329 = vsyncpa [#allocation14], 1 }
 0x85f   :  { %1330 = vsyncpa [#allocation17], 1 }
 0x860   :  { %1331 = vsyncpa [#allocation20], 1 }
 0x861   :  { %1332 = vsyncpa [#allocation6], 1 }
 0x862   :  { %1334 = vsyncpa [#allocation6 + $0x1], 1 }

// kernel: tpu_custom_call.1
= control target key start
LH: loop header
LB: loop body
LE: loop exit
PB: predicated region body
PF: predicated region fallthrough
CT: control target
= control target key end

     0   :  { %s2843_s0 = inlined_call_operand.hbm [shape: f32[2,8,32], index: 0, kind: input, shape index: {}]   ;;  %s2844_s1 = inlined_call_operand.hbm [shape: f32[2,8,32], index: 1, kind: input, shape index: {}]   ;;  %s2845_s2 = inlined_call_operand.hbm [shape: f32[1,32], index: 2, kind: input, shape index: {}]   ;;  %s2846_s3 = inlined_call_operand.hbm [shape: f32[1,32], index: 3, kind: input, shape index: {}]   ;;  %s2847_s4 = inlined_call_operand.hbm [shape: bf16[32,32], index: 4, kind: input, shape index: {}]   ;;  %s2848_s5 = inlined_call_operand.hbm [shape: f32[1,32], index: 5, kind: input, shape index: {}]   ;;  %s2849_s6 = inlined_call_operand.hbm [shape: bf16[32,64], index: 6, kind: input, shape index: {}]   ;;  %s2850_s7 = inlined_call_operand.hbm [shape: f32[1,64], index: 7, kind: input, shape index: {}]   ;;  %s2851_s8 = inlined_call_operand.hbm [shape: bf16[32,32], index: 8, kind: input, shape index: {}]   ;;  %s2852_s9 = inlined_call_operand.hbm [shape: f32[1,32], index: 9, kind: input, shape index: {}]   ;;  %s2853_s10 = inlined_call_operand.hbm [shape: f32[2,8,32], index: 10, kind: output, shape index: {}]  }
   0x1   :  { %2859 = sst [smem:[#allocation31_spill]] %s2845_s2 }
   0x2   :  { %2860 = sst [smem:[#allocation32_spill]] %s2846_s3 }
   0x3   :  { %2861 = sst [smem:[#allocation33_spill]] %s2847_s4 }
   0x4   :  { %2862 = sst [smem:[#allocation34_spill]] %s2848_s5 }
   0x5   :  { %2863 = sst [smem:[#allocation35_spill]] %s2849_s6 }
   0x6   :  { %2864 = sst [smem:[#allocation36_spill]] %s2850_s7 }
   0x7   :  { %2865 = sst [smem:[#allocation37_spill]] %s2851_s8 }
   0x8   :  { %2866 = sst [smem:[#allocation38_spill]] %s2853_s10 }
   0x9   :  { %15 = vsyncpa [#allocation5], 0 }
   0xa   :  { %17 = vsyncpa [#allocation5 + $0x1], 0 }
   0xb   :  { %18 = vsyncpa [#allocation8], 0 }
   0xc   :  { %20 = vsyncpa [#allocation8 + $0x1], 0 }
   0xd   :  { %21 = vsyncpa [#allocation11], 0 }
   0xe   :  { %22 = vsyncpa [#allocation14], 0 }
   0xf   :  { %23 = vsyncpa [#allocation17], 0 }
  0x10   :  { %24 = vsyncpa [#allocation20], 0 }
  0x11   :  { %25 = vsyncpa [#allocation6], 0 }
  0x12   :  { %27 = vsyncpa [#allocation6 + $0x1], 0  ;;  %s2327_s13 = smov 0   ;;  %s2329_s14 = smov 0  }
  0x13   :  { %s2331_s15 = smov 0   ;;  %s2333_s16 = smov 0  }
  0x14   :  { %s2335_s17 = smov 0   ;;  %s2337_s18 = smov 0  }
  0x15 LB: > { %2867 = sst [smem:[#allocation30_spill]] %s2237_s16  ;;  %s2358_s19 = sadd.s32 4294967295, %s2245_s18   ;;  %s2245_s18 = sphi %s2337_s18, %s33_s18   ;;  %s2241_s17 = sphi %s2335_s17, %s2906_s17   ;;  %s2237_s16 = sphi %s2333_s16, %s2905_s16   ;;  %s2233_s15 = sphi %s2331_s15, %s2904_s15   ;;  %s2229_s14 = sphi %s2329_s14, %s2903_s14   ;;  %s2225_s13 = sphi %s2327_s13, %s2902_s13  }
  0x16   : > { %p1504_p0 = scmp.ge.s32.totalorder %s2245_s18, 1  ;;  %p2854_p1 = scmp.eq.s32.totalorder %s2358_s19, 0 }
  0x17   : > { %p300_p2 = scmp.lt.s32.totalorder %s2245_s18, 3  ;;  %s2247_s21 = smov [#allocation9]  }
  0x18   : > { %s313_s22 = sshll.u32 %s2247_s21, 4  ;;  %s2248_s23 = smov [#allocation10]   ;;  %s314_s22 = int_to_ptr.vmem [resolvable:$true] %s313_s22 }
  0x19   : > { %p2363_p3 = pnand %p1504_p0, %p300_p2  ;;  %s324_s24 = sshll.u32 %s2248_s23, 4  ;;  %s2376_s24 = int_to_ptr.vmem [resolvable:$true] %s324_s24 }
  0x1a   : > { %s2249_s26 = smov [#allocation13]   ;;  %s2870_s2 = sld [smem:[#allocation31_spill]] }
  0x1b   : > { %s2868_s20 = scalar_select %p2363_p3, 1, 0 }
  0x1c   : > { %p1701_p5 = pneg %p2363_p3  ;;  %s348_s27 = sshll.u32 %s2249_s26, 4  ;;  %s2378_s27 = int_to_ptr.vmem [resolvable:$true] %s348_s27 }
  0x1e   : > { %p2372_p6 = pnand %p1701_p5, %p2854_p1 }
  0x20   : > { %s1855_s30 = scalar_lea.hbm %s2870_s2, 16  ;;  %p2388_p8 = pneg %p2372_p6 }
  0x21   : > { %p1856_p7 = scmp.ne.s32.totalorder %s2870_s2, %s1855_s30  ;;  %p1862_p11 = scmp.lt.u32.totalorder %s1855_s30, %s2870_s2 }
  0x23   : > { %p1858_p9 = pnand %p2388_p8, %p1856_p7 }
  0x25   : > { %p1859_p10 = pneg %p1858_p9 }
  0x27   : > { %p1864_p12 = pnand %p1862_p11, %p1859_p10 }
  0x29   : > { %1867 = shalt.err (!%p1864_p12)
}
  0x2a   : > { %s1868_s28 = scalar_lea.vmem %s314_s22, 16  ;;  %s1875_s29 = scalar_lea.vmem %s314_s22, 32 }
  0x2b   : > { %p1869_p13 = scmp.ne.s32.totalorder %s314_s22, %s1868_s28  ;;  %p1876_p5 = scmp.lt.s32.totalorder %s314_s22, %s314_s22 }
  0x2c   : > { %p1877_p4 = scmp.lt.s32.totalorder %s1875_s29, %s1868_s28 }
  0x2d   : > { %p1871_p0 = pnand %p1869_p13, %p2388_p8 }
  0x2e   : > { %p1878_p1 = por %p1877_p4, %p1876_p5 }
  0x2f   : > { %p1872_p2 = pneg %p1871_p0 }
  0x31   : > { %p1879_p3 = pnand %p1878_p1, %p1872_p2 }
  0x33   : > { %1882 = shalt.err (!%p1879_p3)
}
  0x34   : > { %1704 = dma.hbm_to_vmem [thread:$0]  (!%p2372_p6), %s2870_s2, 16, %s314_s22, [#allocation8]  }
  0x35   : > { %s2872_s3 = sld [smem:[#allocation32_spill]] }
  0x3b   : > { %s1883_s26 = scalar_lea.hbm %s2872_s3, 16 }
  0x3c   : > { %p1884_p7 = scmp.ne.s32.totalorder %s2872_s3, %s1883_s26  ;;  %p1890_p1 = scmp.lt.u32.totalorder %s1883_s26, %s2872_s3 }
  0x3e   : > { %p1886_p9 = pnand %p1884_p7, %p2388_p8 }
  0x40   : > { %p1887_p4 = pneg %p1886_p9 }
  0x42   : > { %p1892_p3 = pnand %p1890_p1, %p1887_p4 }
  0x44   : > { %1895 = shalt.err (!%p1892_p3)
}
  0x45   : > { %s1896_s22 = scalar_lea.vmem %s2376_s24, 16  ;;  %s1903_s10 = scalar_lea.vmem %s2376_s24, 32 }
  0x46   : > { %p1897_p10 = scmp.ne.s32.totalorder %s2376_s24, %s1896_s22  ;;  %p1904_p13 = scmp.lt.s32.totalorder %s2376_s24, %s2376_s24 }
  0x47   : > { %p1905_p0 = scmp.lt.s32.totalorder %s1903_s10, %s1896_s22 }
  0x48   : > { %p1899_p11 = pnand %p1897_p10, %p2388_p8 }
  0x49   : > { %p1906_p2 = por %p1905_p0, %p1904_p13 }
  0x4a   : > { %p1900_p12 = pneg %p1899_p11 }
  0x4c   : > { %p1907_p5 = pnand %p1906_p2, %p1900_p12 }
  0x4e   : > { %1910 = shalt.err (!%p1907_p5)
}
  0x4f   : > { %1707 = dma.hbm_to_vmem [thread:$0]  (!%p2372_p6), %s2872_s3, 16, %s2376_s24, [#allocation11]  }
  0x50   : > { %s2873_s5 = sld [smem:[#allocation34_spill]] }
  0x56   : > { %s1911_s23 = scalar_lea.hbm %s2873_s5, 16 }
  0x57   : > { %p1912_p7 = scmp.ne.s32.totalorder %s2873_s5, %s1911_s23  ;;  %p1918_p1 = scmp.lt.u32.totalorder %s1911_s23, %s2873_s5 }
  0x59   : > { %p1914_p9 = pnand %p1912_p7, %p2388_p8 }
  0x5b   : > { %p1915_p4 = pneg %p1914_p9 }
  0x5d   : > { %p1920_p3 = pnand %p1918_p1, %p1915_p4 }
  0x5f   : > { %1923 = shalt.err (!%p1920_p3)
}
  0x60   : > { %s1924_s24 = scalar_lea.vmem %s2378_s27, 16  ;;  %s1931_s10 = scalar_lea.vmem %s2378_s27, 32 }
  0x61   : > { %p1925_p10 = scmp.ne.s32.totalorder %s2378_s27, %s1924_s24  ;;  %p1932_p13 = scmp.lt.s32.totalorder %s2378_s27, %s2378_s27 }
  0x62   : > { %p1933_p0 = scmp.lt.s32.totalorder %s1931_s10, %s1924_s24 }
  0x63   : > { %p1927_p11 = pnand %p1925_p10, %p2388_p8 }
  0x64   : > { %p1934_p2 = por %p1933_p0, %p1932_p13 }
  0x65   : > { %p1928_p12 = pneg %p1927_p11 }
  0x67   : > { %p1935_p5 = pnand %p1934_p2, %p1928_p12 }
  0x69   : > { %1938 = shalt.err (!%p1935_p5)
}
  0x6a   : > { %1713 = dma.hbm_to_vmem [thread:$0]  (!%p2372_p6), %s2873_s5, 16, %s2378_s27, [#allocation14]  }
  0x6b   : > { %s2250_s12 = smov [#allocation16]   ;;  %s2251_s23 = smov [#allocation12]  }
  0x6c   : > { %s372_s30 = sshll.u32 %s2250_s12, 4  ;;  %s334_s26 = sshll.u32 %s2251_s23, 4  ;;  %s373_s30 = int_to_ptr.vmem [resolvable:$true] %s372_s30  ;;  %s335_s26 = int_to_ptr.vmem [resolvable:$true] %s334_s26 }
  0x6d   : > { %s2874_s7 = sld [smem:[#allocation36_spill]] }
  0x73   : > { %s1939_s22 = scalar_lea.hbm %s2874_s7, 16 }
  0x74   : > { %p1940_p7 = scmp.ne.s32.totalorder %s2874_s7, %s1939_s22  ;;  %p1946_p1 = scmp.lt.u32.totalorder %s1939_s22, %s2874_s7 }
  0x76   : > { %p1942_p9 = pnand %p1940_p7, %p2388_p8 }
  0x78   : > { %p1943_p4 = pneg %p1942_p9 }
  0x7a   : > { %p1948_p3 = pnand %p1946_p1, %p1943_p4 }
  0x7c   : > { %1951 = shalt.err (!%p1948_p3)
}
  0x7d   : > { %s1952_s27 = scalar_lea.vmem %s373_s30, 16  ;;  %s1959_s11 = scalar_lea.vmem %s373_s30, 32 }
  0x7e   : > { %p1953_p10 = scmp.ne.s32.totalorder %s373_s30, %s1952_s27  ;;  %p1960_p13 = scmp.lt.s32.totalorder %s373_s30, %s373_s30 }
  0x7f   : > { %p1961_p0 = scmp.lt.s32.totalorder %s1959_s11, %s1952_s27 }
  0x80   : > { %p1955_p11 = pnand %p1953_p10, %p2388_p8 }
  0x81   : > { %p1962_p2 = por %p1961_p0, %p1960_p13 }
  0x82   : > { %p1956_p12 = pneg %p1955_p11 }
  0x84   : > { %p1963_p5 = pnand %p1962_p2, %p1956_p12 }
  0x86   : > { %1966 = shalt.err (!%p1963_p5)
}
  0x87   : > { %1719 = dma.hbm_to_vmem [thread:$0]  (!%p2372_p6), %s2874_s7, 16, %s373_s30, [#allocation17]  }
  0x88   : > { %s2875_s4 = sld [smem:[#allocation33_spill]] }
  0x8e   : > { %s1967_s29 = scalar_lea.hbm %s2875_s4, 256 }
  0x8f   : > { %p1968_p7 = scmp.ne.s32.totalorder %s2875_s4, %s1967_s29  ;;  %p1974_p1 = scmp.lt.u32.totalorder %s1967_s29, %s2875_s4 }
  0x91   : > { %p1970_p9 = pnand %p1968_p7, %p2388_p8 }
  0x93   : > { %p1971_p4 = pneg %p1970_p9 }
  0x95   : > { %p1976_p3 = pnand %p1974_p1, %p1971_p4 }
  0x97   : > { %1979 = shalt.err (!%p1976_p3)
}
  0x98   : > { %s1980_s27 = scalar_lea.vmem %s335_s26, 256  ;;  %p1988_p13 = scmp.lt.s32.totalorder %s335_s26, %s335_s26 }
  0x99   : > { %p1981_p10 = scmp.ne.s32.totalorder %s335_s26, %s1980_s27  ;;  %p1989_p0 = scmp.lt.s32.totalorder %s1980_s27, %s1980_s27 }
  0x9b   : > { %p1983_p11 = pnand %p1981_p10, %p2388_p8  ;;  %p1990_p2 = por %p1989_p0, %p1988_p13 }
  0x9d   : > { %p1984_p12 = pneg %p1983_p11 }
  0x9f   : > { %p1991_p5 = pnand %p1990_p2, %p1984_p12 }
  0xa1   : > { %1994 = shalt.err (!%p1991_p5)
}
  0xa2   : > { %s2252_s30 = smov 64   ;;  %s2253_s11 = smov 4  }
  0xa3   : > { %1710 = dma.hbm_to_vmem [thread:$0]  (!%p2372_p6), %s2875_s4, 256, %s335_s26, [#allocation11], %s2252_s30, %s2252_s30, %s2253_s11  }
  0xa4   : > { %s2254_s2 = smov [#allocation15]   ;;  %s2255_s29 = smov [#allocation18]  }
  0xa5   : > { %s358_s28 = sshll.u32 %s2254_s2, 4  ;;  %s382_s22 = sshll.u32 %s2255_s29, 4  ;;  %s359_s28 = int_to_ptr.vmem [resolvable:$true] %s358_s28  ;;  %s383_s22 = int_to_ptr.vmem [resolvable:$true] %s382_s22 }
  0xa6   : > { %s2876_s6 = sld [smem:[#allocation35_spill]] }
  0xac   : > { %s1995_s16 = scalar_lea.hbm %s2876_s6, 256 }
  0xad   : > { %p1996_p7 = scmp.ne.s32.totalorder %s2876_s6, %s1995_s16  ;;  %p2002_p1 = scmp.lt.u32.totalorder %s1995_s16, %s2876_s6 }
  0xaf   : > { %p1998_p9 = pnand %p1996_p7, %p2388_p8 }
  0xb1   : > { %p1999_p4 = pneg %p1998_p9 }
  0xb3   : > { %p2004_p3 = pnand %p2002_p1, %p1999_p4 }
  0xb5   : > { %2007 = shalt.err (!%p2004_p3)
}
  0xb6   : > { %s2008_s26 = scalar_lea.vmem %s359_s28, 256  ;;  %p2016_p13 = scmp.lt.s32.totalorder %s359_s28, %s359_s28 }
  0xb7   : > { %p2009_p10 = scmp.ne.s32.totalorder %s359_s28, %s2008_s26  ;;  %p2017_p0 = scmp.lt.s32.totalorder %s2008_s26, %s2008_s26 }
  0xb9   : > { %p2011_p11 = pnand %p2009_p10, %p2388_p8  ;;  %p2018_p2 = por %p2017_p0, %p2016_p13 }
  0xbb   : > { %p2012_p12 = pneg %p2011_p11 }
  0xbd   : > { %p2019_p5 = pnand %p2018_p2, %p2012_p12 }
  0xbf   : > { %2022 = shalt.err (!%p2019_p5)
}
  0xc0   : > { %1716 = dma.hbm_to_vmem [thread:$0]  (!%p2372_p6), %s2876_s6, 256, %s359_s28, [#allocation14], %s2252_s30, %s2252_s30, %s2253_s11  }
  0xc1   : > { %s2877_s8 = sld [smem:[#allocation37_spill]] }
  0xc7   : > { %s2023_s23 = scalar_lea.hbm %s2877_s8, 256 }
  0xc8   : > { %p2024_p7 = scmp.ne.s32.totalorder %s2877_s8, %s2023_s23  ;;  %p2030_p1 = scmp.lt.u32.totalorder %s2023_s23, %s2877_s8 }
  0xca   : > { %p2026_p9 = pnand %p2024_p7, %p2388_p8 }
  0xcc   : > { %p2027_p4 = pneg %p2026_p9 }
  0xce   : > { %p2032_p3 = pnand %p2030_p1, %p2027_p4 }
  0xd0   : > { %2035 = shalt.err (!%p2032_p3)
}
  0xd1   : > { %s2036_s16 = scalar_lea.vmem %s383_s22, 256  ;;  %p2044_p13 = scmp.lt.s32.totalorder %s383_s22, %s383_s22 }
  0xd2   : > { %p2037_p10 = scmp.ne.s32.totalorder %s383_s22, %s2036_s16  ;;  %p2045_p0 = scmp.lt.s32.totalorder %s2036_s16, %s2036_s16 }
  0xd4   : > { %p2039_p11 = pnand %p2037_p10, %p2388_p8  ;;  %p2046_p2 = por %p2045_p0, %p2044_p13 }
  0xd6   : > { %p2040_p12 = pneg %p2039_p11 }
  0xd8   : > { %p2047_p5 = pnand %p2046_p2, %p2040_p12 }
  0xda   : > { %2050 = shalt.err (!%p2047_p5)
}
  0xdb   : > { %1722 = dma.hbm_to_vmem [thread:$0]  (!%p2372_p6), %s2877_s8, 256, %s383_s22, [#allocation17], %s2252_s30, %s2252_s30, %s2253_s11  }
  0xdc   : > { %s2256_s26 = smov [#allocation19]   ;;  %s2051_s12 = scalar_lea.hbm %s2852_s9, 16 }
  0xdd   : > { %s396_s3 = sshll.u32 %s2256_s26, 4  ;;  %p2052_p7 = scmp.ne.s32.totalorder %s2852_s9, %s2051_s12  ;;  %s397_s3 = int_to_ptr.vmem [resolvable:$true] %s396_s3 }
  0xde   : > { %p2058_p1 = scmp.lt.u32.totalorder %s2051_s12, %s2852_s9 }
  0xdf   : > { %p2054_p9 = pnand %p2052_p7, %p2388_p8 }
  0xe1   : > { %p2055_p4 = pneg %p2054_p9 }
  0xe3   : > { %p2060_p3 = pnand %p2058_p1, %p2055_p4 }
  0xe5   : > { %2063 = shalt.err (!%p2060_p3)
}
  0xe6   : > { %s2064_s30 = scalar_lea.vmem %s397_s3, 16  ;;  %s2071_s11 = scalar_lea.vmem %s397_s3, 32 }
  0xe7   : > { %p2065_p10 = scmp.ne.s32.totalorder %s397_s3, %s2064_s30  ;;  %p2072_p13 = scmp.lt.s32.totalorder %s397_s3, %s397_s3 }
  0xe8   : > { %p2073_p0 = scmp.lt.s32.totalorder %s2071_s11, %s2064_s30 }
  0xe9   : > { %p2067_p11 = pnand %p2065_p10, %p2388_p8 }
  0xea   : > { %p2074_p2 = por %p2073_p0, %p2072_p13 }
  0xeb   : > { %p2068_p12 = pneg %p2067_p11 }
  0xed   : > { %p2075_p5 = pnand %p2074_p2, %p2068_p12 }
  0xef   : > { %2078 = shalt.err (!%p2075_p5)
}
  0xf0   : > { %1725 = dma.hbm_to_vmem [thread:$0]  (!%p2372_p6), %s2852_s9, 16, %s397_s3, [#allocation20]  }
  0xf1   : > { %s1503_s21 = sadd.s32 4294967294, %s2245_s18   ;;  %s45_s16 = sadd.s32 1, %s2241_s17 }
  0xf2   : > { %p47_p8 = scmp.ge.s32.totalorder %s45_s16, 2  ;;  %s54_s25 = sadd.s32 1, %s2233_s15 }
  0xf3   : > { %p61_p7 = scmp.ne.s32.totalorder %s2233_s15, %s2229_s14  ;;  %p62_p9 = scmp.eq.s32.totalorder %s2245_s18, 0 }
  0xf4   : > { %s2908_s16 = smov (%p47_p8, %s45_s16), 0  ;;  %p67_p1 = scmp.ne.s32.totalorder %s2229_s14, %s2225_s13 }
  0xf5   : > { %p2559_p4 = por %p62_p9, %p61_p7  ;;  %s49_s27 = ssub.s32 %s2241_s17, %s2908_s16 }
  0xf6   : > { %p287_p6 = scmp.eq.s32.totalorder %s2358_s19, 1  ;;  %p52_p3 = scmp.eq.s32.totalorder %s49_s27, 0 }
  0xf7   : > { %p2879_p10 = scmp.eq.s32.totalorder %s2358_s19, 0  ;;  %p293_p13 = scmp.eq.s32.totalorder %s1503_s21, 1 }
  0xf8   : > { %p2574_p12 = por %p287_p6, %p61_p7  ;;  %p1745_p2 = scmp.lt.s32.totalorder %s2245_s18, 2 }
  0xf9   : > { %p2570_p11 = por %p2879_p10, %p67_p1  ;;  %p2581_p0 = por %p293_p13, %p67_p1 }
  0xfa   : > { %s2881_s3 = scalar_select %p2574_p12, 1, 0 }
  0xfb   : > { %s2880_s26 = scalar_select %p2570_p11, 1, 0 }
  0xfc   : > { %s2579_s5 = scalar_select %p52_p3, %s2233_s15, %s54_s25  }
  0xfd   : > { %s2882_s7 = scalar_select %p2581_p0, 1, 0 }
  0xfe   : > { %s407_s12 = sand.u32 1, %s2233_s15   ;;  %s1515_s23 = sshll.u32 %s2241_s17, 7 }
  0xff   : > { %s2588_s2 = sshll.u32 %s407_s12, 3  ;;  %s2593_s30 = scalar_lea.hbm %s2843_s0, %s1515_s23 }
 0x100   : > { %s411_s11 = scalar_lea.vmem [#allocation4], %s2588_s2  ;;  %p2598_p5 = pnand %p1745_p2, %p2559_p4 }
 0x101   : > { %s419_s22 = sshll.u32 %s411_s11, 4  ;;  %s2607_s27 = scalar_lea.hbm %s2844_s1, %s1515_s23  ;;  %s2602_s22 = int_to_ptr.vmem [resolvable:$true] %s419_s22 }
 0x102   : > { %s408_s29 = scalar_lea.sflag [#allocation5], %s407_s12  ;;  %s2079_s24 = scalar_lea.hbm %s2593_s30, 128 }
 0x103   : > { %p2080_p8 = scmp.ne.s32.totalorder %s2593_s30, %s2079_s24  ;;  %p2081_p7 = pneg %p2598_p5 }
 0x104   : > { %s2084_s4 = scalar_lea.hbm %s2843_s0, 256  ;;  %p2085_p1 = scmp.lt.u32.totalorder %s2593_s30, %s2843_s0 }
 0x105   : > { %p2082_p9 = pnand %p2081_p7, %p2080_p8  ;;  %p2086_p6 = scmp.lt.u32.totalorder %s2084_s4, %s2079_s24 }
 0x106   : > { %p2088_p10 = scmp.lt.u32.totalorder %s2079_s24, %s2593_s30 }
 0x107   : > { %p2083_p4 = pneg %p2082_p9  ;;  %p2087_p3 = por %p2086_p6, %p2085_p1 }
 0x109   : > { %p2089_p13 = por %p2088_p10, %p2087_p3 }
 0x10b   : > { %p2090_p2 = pnand %p2089_p13, %p2083_p4 }
 0x10d   : > { %2093 = shalt.err (!%p2090_p2)
}
 0x10e   : > { %s2094_s12 = scalar_lea.vmem %s2602_s22, 128  ;;  %s2257_s23 = smov [#allocation4]  }
 0x10f   : > { %p2095_p8 = scmp.ne.s32.totalorder %s2602_s22, %s2094_s12  ;;  %s2099_s21 = sshll.u32 %s2257_s23, 4  ;;  %s2100_s21 = int_to_ptr.vmem [resolvable:$false] %s2099_s21 }
 0x110   : > { %s2101_s6 = scalar_lea.vmem %s2100_s21, 256  ;;  %p2102_p12 = scmp.lt.s32.totalorder %s2602_s22, %s2100_s21 }
 0x111   : > { %p2097_p9 = pnand %p2095_p8, %p2081_p7  ;;  %p2103_p1 = scmp.lt.s32.totalorder %s2101_s6, %s2094_s12 }
 0x113   : > { %p2098_p0 = pneg %p2097_p9  ;;  %p2104_p6 = por %p2103_p1, %p2102_p12 }
 0x115   : > { %p2105_p3 = pnand %p2104_p6, %p2098_p0 }
 0x117   : > { %2108 = shalt.err (!%p2105_p3)
}
 0x118   : > { %1729 = dma.hbm_to_vmem [thread:$0]  (!%p2598_p5), %s2593_s30, 128, %s2602_s22, %s408_s29  }
 0x119   : > { %s426_s4 = sand.u32 1, %s2245_s18   ;;  %s430_s8 = scalar_lea.vmem [#allocation7], %s2588_s2 }
 0x11a   : > { %s437_s25 = sshll.u32 %s430_s8, 4  ;;  %s427_s24 = scalar_lea.sflag [#allocation8], %s426_s4  ;;  %s438_s25 = int_to_ptr.vmem [resolvable:$true] %s437_s25 }
 0x11b   : > { %s2109_s28 = scalar_lea.hbm %s2607_s27, 128  ;;  %s2114_s23 = scalar_lea.hbm %s2844_s1, 256 }
 0x11c   : > { %p2110_p12 = scmp.ne.s32.totalorder %s2607_s27, %s2109_s28  ;;  %p2115_p10 = scmp.lt.u32.totalorder %s2607_s27, %s2844_s1 }
 0x11d   : > { %p2116_p13 = scmp.lt.u32.totalorder %s2114_s23, %s2109_s28  ;;  %p2118_p8 = scmp.lt.u32.totalorder %s2109_s28, %s2607_s27 }
 0x11e   : > { %p2112_p0 = pnand %p2110_p12, %p2081_p7 }
 0x11f   : > { %p2117_p2 = por %p2116_p13, %p2115_p10 }
 0x120   : > { %p2113_p4 = pneg %p2112_p0 }
 0x121   : > { %p2119_p9 = por %p2118_p8, %p2117_p2 }
 0x123   : > { %p2120_p1 = pnand %p2119_p9, %p2113_p4 }
 0x125   : > { %2123 = shalt.err (!%p2120_p1)
}
 0x126   : > { %s2124_s2 = scalar_lea.vmem %s438_s25, 128  ;;  %s2258_s30 = smov [#allocation7]  }
 0x127   : > { %p2125_p6 = scmp.ne.s32.totalorder %s438_s25, %s2124_s2  ;;  %s2129_s22 = sshll.u32 %s2258_s30, 4  ;;  %s2130_s22 = int_to_ptr.vmem [resolvable:$false] %s2129_s22 }
 0x128   : > { %s2131_s29 = scalar_lea.vmem %s2130_s22, 256  ;;  %p2132_p0 = scmp.lt.s32.totalorder %s438_s25, %s2130_s22 }
 0x129   : > { %p2127_p3 = pnand %p2125_p6, %p2081_p7  ;;  %p2133_p11 = scmp.lt.s32.totalorder %s2131_s29, %s2124_s2 }
 0x12b   : > { %p2128_p12 = pneg %p2127_p3  ;;  %p2134_p10 = por %p2133_p11, %p2132_p0 }
 0x12d   : > { %p2135_p13 = pnand %p2134_p10, %p2128_p12 }
 0x12f   : > { %2138 = shalt.err (!%p2135_p13)
}
 0x130   : > { %1732 = dma.hbm_to_vmem [thread:$0]  (!%p2598_p5), %s2607_s27, 128, %s438_s25, %s427_s24  }
 0x131   : > { %p2884_p4 = scmp.ne.s32.totalorder %s2868_s20, 0 }
 0x132   : > { %s2658_s4 = sand.u32 (!%p2884_p4), 1, %s2229_s14   ;;  %p2885_p11 = scmp.ne.s32.totalorder (!%p2884_p4), %s2880_s26, 0 }
 0x133   : > { %446 = sbr.rel (%p2884_p4) target bundleno = 2152 (0x868), region = 60  ;;  %s2661_s8 = sshll.u32 (!%p2884_p4), %s2658_s4, 3 }
 0x134   : > { %s449_s28 = scalar_lea.sflag (!%p2884_p4), [#allocation5], %s2658_s4  ;;  %s452_s11 = scalar_lea.vmem (!%p2884_p4), [#allocation4], %s2661_s8 }
 0x13a   : > { %2192 = dma.done.wait (%p2885_p11), %s449_s28, 128  }
 0x13b   : > { %2194 = vsyncadd (%p2885_p11), %s449_s28, 4294967168  ;;  %s457_s20 = sand.u32 1, %s2358_s19   ;;  %s461_s27 = scalar_lea.vmem [#allocation7], %s2661_s8 }
 0x13c   : > { %s458_s10 = scalar_lea.sflag [#allocation8], %s457_s20 }
 0x13d   : > { %2196 = dma.done.wait (%p2885_p11), %s458_s10, 128  }
 0x13e   : > { %2198 = vsyncadd (%p2885_p11), %s458_s10, 4294967168  ;;  %p2886_p5 = scmp.eq.s32.totalorder %s2358_s19, 0 }
 0x140   : > { %2200 = dma.done.wait (%p2886_p5), [#allocation8], 16   ;;  %p2887_p7 = pmov %p2886_p5 }
 0x141   : > { %p2888_p2 = pmov %p2886_p5 }
 0x142   : > { %2202 = vsyncadd (%p2887_p7), [#allocation8], 4294967280 }
 0x143   : > { %2204 = dma.done.wait (%p2888_p2), [#allocation11], 272   ;;  %p2889_p8 = pmov %p2888_p2 }
 0x144   : > { %p2890_p9 = pmov %p2888_p2 }
 0x145   : > { %2206 = vsyncadd (%p2889_p8), [#allocation11], 4294967024 }
 0x146   : > { %2208 = dma.done.wait (%p2890_p9), [#allocation14], 272   ;;  %p2891_p1 = pmov %p2888_p2 }
 0x148   : > { %2210 = vsyncadd (%p2891_p1), [#allocation14], 4294967024  ;;  %p2892_p6 = pmov %p2891_p1 }
 0x149   : > { %p2893_p3 = pmov %p2891_p1 }
 0x14a   : > { %2212 = dma.done.wait (%p2892_p6), [#allocation17], 272  }
 0x14b   : > { %2214 = vsyncadd (%p2893_p3), [#allocation17], 4294967024  ;;  %p2894_p12 = pmov %p2891_p1 }
 0x14c   : > { %p2895_p0 = pmov %p2891_p1 }
 0x14d   : > { %2216 = dma.done.wait (%p2894_p12), [#allocation20], 16  }
 0x14e   : > { %2218 = vsyncadd (%p2895_p0), [#allocation20], 4294967280  ;;  %vm543_vm0 = vcmask 261120   ;;  %v542_v0 = vld [vmem:[%s461_s27] sm:$0xff]  ;;  %v2695_v1 = vld [vmem:[%s452_s11] sm:$0xff]  ;;  %v2259_v16 = vmov 0.0  }
 0x14f   : > { %v544_v2 = vsel %vm543_vm0, %v542_v0, 0.0  ;;  %v644_v3 = vsel %vm543_vm0, %v2695_v1, 0.0  ;;  %v1825_v14 = vld [vmem:[#allocation15] sm:$0xff]   ;;  %v1827_v15 = vld [vmem:[#allocation12] sm:$0xff]   ;;  %1591 = vmatprep.subr.bf16.mxu0 %v2259_v16  ;;  %1599 = vmatprep.subr.bf16.mxu1 %v2259_v16  ;;  %vm2260_vm1 = vmmov 0   ;;  %v1828_v18 = vld [vmem:[#allocation12 + $0x8] sm:$0xff]  }
 0x150   : > { %545 = vadd.xlane.f32.xlu0 %v544_v2  ;;  %1592 = vmatpush3.bf16.msra.mxu0 %v1825_v14  ;;  %v1826_v17 = vld [vmem:[#allocation15 + $0x8] sm:$0xff]   ;;  %v1530_v37 = vld [vmem:[#allocation16] ss:$0 sm:$0xff]  ;;  %vm640_vm2 = vcmask 519168   ;;  %v1534_v42 = vld [vmem:[#allocation13] ss:$0 sm:$0xff] }
 0x151   : > { %1600 = vmatpush3.bf16.msra.mxu1 %v1827_v15  ;;  %1593 = vmatprep.subr.bf16.mxu0 %v2259_v16  ;;  %v1564_v26 = vld [vmem:[#allocation9] ss:$0 sm:$0xff]  ;;  %v1565_v28 = vld [vmem:[#allocation10] ss:$0 sm:$0xff]  ;;  %vm750_vm3 = vcmask 64512   ;;  %s2261_s19 = smov 120  }
 0x152   : > { %1595 = vmatprep.mubr.msk.bf16.mxu0 %vm2260_vm1, %v2259_v16  ;;  %1601 = vmatprep.subr.bf16.mxu1 %v2259_v16  ;;  %s2262_s26 = smov 112   ;;  %s2263_s25 = smov 104   ;;  %vm818_vm5 = vcmask 1043456   ;;  %vm863_vm6 = vcmask 60416   ;;  %vm988_vm7 = vcmask 126016   ;;  %vm1112_vm8 = vcmask 191616  }
 0x153   : > { %1603 = vmatprep.mubr.msk.bf16.mxu1 %vm2260_vm1, %v2259_v16  ;;  %s2264_s24 = smov 88   ;;  %s2265_s12 = smov 80   ;;  %vm1236_vm9 = vcmask 257216  }
 0x154   : > { %645 = vadd.xlane.f32.xlu0 %v644_v3  ;;  %1594 = vmatpush3.bf16.msra.mxu0 %v1826_v17  ;;  %v559_v3 = vlaneseq  ;;  %s2266_s23 = smov 96   ;;  %s2267_s21 = smov 72  }
 0x155   : > { %1607 = vmatprep.subr.bf16.mxu0 %v2259_v16  ;;  %1602 = vmatpush3.bf16.msra.mxu1 %v1828_v18  ;;  %s2268_s6 = smov 8   ;;  %s2269_s2 = smov 16  }
 0x156   : > { %1613 = vmatprep.subr.bf16.mxu1 %v2259_v16  ;;  %s2270_s30 = smov 24   ;;  %s2896_s22 = sld [smem:[#allocation30_spill]] }
 0x157   : > { %s534_s28 = scalar_lea.vmem [#allocation21], %s2661_s8  ;;  %s2897_s27 = sld [smem:[#allocation38_spill]] }
 0x158   : > { %s1323_s11 = sshll.u32 %s534_s28, 4  ;;  %s1309_s8 = scalar_lea.sflag [#allocation6], %s2658_s4  ;;  %s2795_s11 = int_to_ptr.vmem [resolvable:$true] %s1323_s11 }
 0x159   : > { %p2898_p13 = scmp.ne.s32.totalorder %s2881_s3, 0 }
 0x15c   : > { %s1558_s29 = sshll.u32 %s2896_s22, 7 }
 0x1dd   : > { %v546_v4 = vpop.xlane.xlu0 %545 }
 0x1de   : > { %v548_v5 = vmul.f32 0.03125, %v546_v4  ;;  %v560_v4 = vshrl.u32 %v559_v3, 7 }
 0x1e0   : > { %v549_v6 = vsub.f32 %v542_v0, %v548_v5  ;;  %v746_v5 = vand.u32 127, %v559_v3 }
 0x1e1   : > { %v646_v7 = vpop.xlane.xlu0 %645 }
 0x1e2   : > { %v648_v8 = vmul.f32 0.03125, %v646_v7  ;;  %v550_v9 = vmul.f32 %v549_v6, %v549_v6  ;;  %vm747_vm4 = vcmp.gt.s32.totalorder %v746_v5, %v560_v4 }
 0x1e4   : > { %v649_v10 = vsub.f32 %v2695_v1, %v648_v8  ;;  %v551_v11 = vsel %vm543_vm0, %v550_v9, 0.0 }
 0x1e5   : > { %552 = vadd.xlane.f32.xlu1 %v551_v11 }
 0x1e6   : > { %v650_v12 = vmul.f32 %v649_v10, %v649_v10 }
 0x1e8   : > { %v651_v13 = vsel %vm543_vm0, %v650_v12, 0.0 }
 0x1e9   : > { %652 = vadd.xlane.f32.xlu1 %v651_v13 }
 0x272   : > { %v553_v19 = vpop.xlane.xlu1 %552 }
 0x273   : > { %v554_v20 = vmul.f32 0.03125, %v553_v19 }
 0x275   : > { %v555_v21 = vadd.f32 1e-05, %v554_v20 }
 0x276   : > { %v653_v22 = vpop.xlane.xlu1 %652 }
 0x277   : > { %1835 = vrsqrt.f32 %v555_v21  ;;  %v654_v23 = vmul.f32 0.03125, %v653_v22 }
 0x279   : > { %v655_v24 = vadd.f32 1e-05, %v654_v23 }
 0x27b   : > { %1837 = vrsqrt.f32 %v655_v24 }
 0x281   : > { %v1836_v25 = vpop.eup %1835 }
 0x282   : > { %v557_v27 = vmul.f32 %v1836_v25, %v549_v6 }
 0x284   : > { %v564_v29 = vmul.f32 %v1564_v26, %v557_v27 }
 0x285   : > { %v1838_v30 = vpop.eup %1837 }
 0x286   : > { %v571_v31 = vadd.f32 %v1565_v28, %v564_v29  ;;  %v657_v32 = vmul.f32 %v1838_v30, %v649_v10 }
 0x288   : > { %v572_v33 = vpack.c.bf16 %v571_v31, %v571_v31  ;;  %v664_v34 = vmul.f32 %v1564_v26, %v657_v32 }
 0x28a   : > { %1596 = vmatmul.mubr.msk.bf16.vlgmr.msra.gmra.mrb[0].mxu0 %vm543_vm0, %v572_v33  ;;  %v671_v35 = vadd.f32 %v1565_v28, %v664_v34 }
 0x28b   : > { %1609 = vmatprep.mubr.msk.bf16.mxu0 %vm2260_vm1, %v2259_v16 }
 0x28c   : > { %v672_v36 = vpack.c.bf16 %v671_v35, %v671_v35 }
 0x28e   : > { %1604 = vmatmul.mubr.msk.bf16.vlgmr.msra.gmra.mrb[0].mxu1 %vm543_vm0, %v672_v36 }
 0x28f   : > { %1615 = vmatprep.mubr.msk.bf16.mxu1 %vm2260_vm1, %v2259_v16 }
 0x35d   : > { %v633_v38 = vpop.f32.mrb[0].mxu0 }
 0x35e   : > { %v634_v39 = vadd.f32 %v1530_v37, %v633_v38  ;;  %v1597_v40 = vpop.f32.mrb[1].mxu0 }
 0x35f   : > { %v636_v41 = vpop.f32.mrb[2].mxu0 }
 0x360   : > { %v639_v43 = vpack.c.bf16 %v634_v39, %v634_v39  ;;  %v1598_v44 = vpop.f32.mrb[3].mxu0 }
 0x361   : > { %v733_v45 = vpop.f32.mrb[0].mxu1 }
 0x362   : > { %641 = vst.msk [vmem:[#allocation2] sm:$0xf] %vm640_vm2, %v639_v43  ;;  %v734_v46 = vadd.f32 %v1534_v42, %v733_v45  ;;  %v1605_v47 = vpop.f32.mrb[1].mxu1 }
 0x363   : > { %v736_v48 = vpop.f32.mrb[2].mxu1 }
 0x364   : > { %v739_v49 = vmul.f32 0.35355338, %v734_v46  ;;  %v1606_v50 = vpop.f32.mrb[3].mxu1 }
 0x366   : > { %v748_v51 = vpack.c.bf16 %v739_v49, %v739_v49 }
 0x368   : > { %867 = vrot.lane.b32.xlu1 %v748_v51, %s2261_s19 }
 0x369   : > { %v2719_v52 = vld [vmem:[#allocation2] sm:$0xf] }
 0x36a   : > { %v2721_v53 = vld [vmem:[#allocation2] ss:$0 sps:$4 sm:$0xff]   ;;  %v755_v54 = vsel %vm750_vm3, %v2719_v52, 0  ;;  %v1539_v46 = vcombine.low %v2719_v52, %v2719_v52 }
 0x36b   : > { %v2725_v55 = vld [vmem:[#allocation2] ss:$0 sps:$4 sm:$0xff]   ;;  %1608 = vmatpush3.bf16.xpose.msra.mxu0 %v755_v54 }
 0x36c   : > { %996 = vrot.lane.b32.xlu1 %v2721_v53, %s2262_s26  ;;  %872 = vrot.lane.b32.xlu0 %v2725_v55, %s2261_s19  ;;  %v2730_v56 = vld [vmem:[#allocation2] ss:$0 sps:$4 sm:$0xff]   ;;  %s2793_s19 = scalar_lea.hbm %s2897_s27, %s1558_s29 }
 0x36d   : > { %1619 = vmatprep.subr.bf16.mxu0 %v2259_v16 }
 0x370   : > { %991 = vrot.lane.b32.xlu1 %v748_v51, %s2262_s26  ;;  %1120 = vrot.lane.b32.xlu0 %v2730_v56, %s2263_s25  ;;  %s2139_s26 = scalar_lea.vmem %s2795_s11, 128 }
 0x371   : > { %p2140_p10 = scmp.ne.s32.totalorder %s2795_s11, %s2139_s26 }
 0x372   : > { %1610 = vmatmul.mubr.msk.bf16.vlgmr.msra.gmra.mrb[4].mxu0 %vm750_vm3, %v748_v51 }
 0x373   : > { %1621 = vmatprep.mubr.msk.bf16.mxu0 %vm2260_vm1, %v2259_v16  ;;  %p2141_p4 = pnand %p2140_p10, %p2898_p13 }
 0x374   : > { %1115 = vrot.lane.b32.xlu1 %v748_v51, %s2263_s25  ;;  %s2271_s25 = smov [#allocation21]  }
 0x375   : > { %p2142_p11 = pneg %p2141_p4 }
 0x3da   : > { %v868_v57 = vpop.permute.xlu1 %867 }
 0x3de   : > { %v873_v58 = vpop.permute.xlu0 %872  ;;  %v997_v60 = vpop.permute.xlu1 %996 }
 0x3df   : > { %v878_v59 = vsel %vm750_vm3, %v873_v58, 0  ;;  %v1002_v61 = vsel %vm750_vm3, %v997_v60, 0 }
 0x3e0   : > { %1620 = vmatpush3.bf16.xpose.msra.mxu0 %v878_v59 }
 0x3e1   : > { %1631 = vmatprep.subr.bf16.mxu0 %v2259_v16 }
 0x3e2   : > { %v1121_v62 = vpop.permute.xlu0 %1120  ;;  %v992_v63 = vpop.permute.xlu1 %991 }
 0x3e3   : > { %v1126_v0 = vsel %vm750_vm3, %v1121_v62, 0 }
 0x3e6   : > { %v1116_v2 = vpop.permute.xlu1 %1115 }
 0x3e7   : > { %1622 = vmatmul.mubr.msk.bf16.vlgmr.msra.gmra.mrb[8].mxu0 %vm750_vm3, %v868_v57 }
 0x3e8   : > { %1632 = vmatpush3.bf16.xpose.msra.mxu0 %v1002_v61  ;;  %1633 = vmatprep.mubr.msk.bf16.mxu0 %vm2260_vm1, %v2259_v16 }
 0x3e9   : > { %1643 = vmatprep.subr.bf16.mxu0 %v2259_v16 }
 0x3ef   : > { %1634 = vmatmul.mubr.msk.bf16.vlgmr.msra.gmra.mrb[12].mxu0 %vm750_vm3, %v992_v63 }
 0x3f0   : > { %1644 = vmatpush3.bf16.xpose.msra.mxu0 %v1126_v0  ;;  %1645 = vmatprep.mubr.msk.bf16.mxu0 %vm2260_vm1, %v2259_v16 }
 0x3f1   : > { %1655 = vmatprep.subr.bf16.mxu0 %v2259_v16 }
 0x3f7   : > { %1646 = vmatmul.mubr.msk.bf16.vlgmr.msra.gmra.mrb[16].mxu0 %vm750_vm3, %v1116_v2 }
 0x3f8   : > { %1659 = vmatprep.mubr.msk.bf16.mxu0 %vm2260_vm1, %v2259_v16 }
 0x445   : > { %v791_v6 = vpop.f32.mrb[4].mxu0 }
 0x446   : > { %v797_v7 = vsel %vm747_vm4, -1e+09, %v791_v6  ;;  %v1611_v8 = vpop.f32.mrb[5].mxu0 }
 0x447   : > { %v794_v9 = vpop.f32.mrb[6].mxu0  ;;  %v798_v10 = vsel %vm750_vm3, %v797_v7, -inf }
 0x448   : > { %799 = vmax.xlane.f32.xlu0 %v798_v10  ;;  %v1612_v11 = vpop.f32.mrb[7].mxu0 }
 0x4ba   : > { %v914_v12 = vpop.f32.mrb[8].mxu0 }
 0x4bb   : > { %v920_v13 = vsel %vm747_vm4, -1e+09, %v914_v12  ;;  %v1623_v14 = vpop.f32.mrb[9].mxu0 }
 0x4bc   : > { %v917_v15 = vpop.f32.mrb[10].mxu0  ;;  %v921_v17 = vsel %vm750_vm3, %v920_v13, -inf }
 0x4bd   : > { %922 = vmax.xlane.f32.xlu1 %v921_v17  ;;  %v1624_v18 = vpop.f32.mrb[11].mxu0 }
 0x4c2   : > { %v1038_v19 = vpop.f32.mrb[12].mxu0 }
 0x4c3   : > { %v1044_v20 = vsel %vm747_vm4, -1e+09, %v1038_v19  ;;  %v1635_v21 = vpop.f32.mrb[13].mxu0 }
 0x4c4   : > { %v1041_v22 = vpop.f32.mrb[14].mxu0  ;;  %v1045_v23 = vsel %vm750_vm3, %v1044_v20, -inf }
 0x4c5   : > { %1046 = vmax.xlane.f32.xlu0 %v1045_v23  ;;  %v1636_v24 = vpop.f32.mrb[15].mxu0 }
 0x4ca   : > { %v1162_v25 = vpop.f32.mrb[16].mxu0 }
 0x4cb   : > { %v1168_v26 = vsel %vm747_vm4, -1e+09, %v1162_v25  ;;  %v1647_v27 = vpop.f32.mrb[17].mxu0 }
 0x4cc   : > { %v1165_v28 = vpop.f32.mrb[18].mxu0  ;;  %v1169_v29 = vsel %vm750_vm3, %v1168_v26, -inf }
 0x4cd   : > { %1170 = vmax.xlane.f32.xlu0 %v1169_v29  ;;  %v1648_v30 = vpop.f32.mrb[19].mxu0  ;;  %v1833_v29 = vld [vmem:[#allocation18] sm:$0xff]  }
 0x4ce   : > { %1656 = vmatpush3.bf16.msra.mxu0 %v1833_v29  ;;  %v1834_v30 = vld [vmem:[#allocation18 + $0x8] sm:$0xff]  }
 0x4cf   : > { %1657 = vmatprep.subr.bf16.mxu0 %v2259_v16 }
 0x4d2   : > { %1658 = vmatpush3.bf16.msra.mxu0 %v1834_v30 }
 0x4d5   : > { %v800_v31 = vpop.xlane.xlu0 %799 }
 0x4d6   : > { %v801_v32 = vsub.f32 %v797_v7, %v800_v31 }
 0x4d8   : > { %v802_v33 = vmul.f32 1.442695, %v801_v32 }
 0x4da   : > { %1839 = vpow2.f32 %v802_v33 }
 0x4e4   : > { %v1840_v34 = vpop.eup %1839 }
 0x4e5   : > { %v804_v35 = vsel %vm750_vm3, %v1840_v34, 0.0 }
 0x4e6   : > { %805 = vadd.xlane.f32.xlu0 %v804_v35 }
 0x54a   : > { %v923_v36 = vpop.xlane.xlu1 %922 }
 0x54b   : > { %v924_v37 = vsub.f32 %v920_v13, %v923_v36 }
 0x54d   : > { %v925_v38 = vmul.f32 1.442695, %v924_v37 }
 0x54f   : > { %1841 = vpow2.f32 %v925_v38 }
 0x552   : > { %v1047_v39 = vpop.xlane.xlu0 %1046 }
 0x553   : > { %v1048_v40 = vsub.f32 %v1044_v20, %v1047_v39 }
 0x555   : > { %v1049_v41 = vmul.f32 1.442695, %v1048_v40  ;;  %v1556_v40 = vld [vmem:[#allocation19] ss:$0 sm:$0xff] }
 0x557   : > { %1843 = vpow2.f32 %v1049_v41 }
 0x559   : > { %v1842_v42 = vpop.eup %1841 }
 0x55a   : > { %v927_v43 = vsel %vm750_vm3, %v1842_v42, 0.0  ;;  %v1171_v47 = vpop.xlane.xlu0 %1170 }
 0x55b   : > { %928 = vadd.xlane.f32.xlu1 %v927_v43  ;;  %v1172_v48 = vsub.f32 %v1168_v26, %v1171_v47 }
 0x55d   : > { %v1173_v49 = vmul.f32 1.442695, %v1172_v48 }
 0x55f   : > { %1845 = vpow2.f32 %v1173_v49 }
 0x561   : > { %v1844_v44 = vpop.eup %1843 }
 0x562   : > { %v1051_v45 = vsel %vm750_vm3, %v1844_v44, 0.0 }
 0x563   : > { %1052 = vadd.xlane.f32.xlu0 %v1051_v45 }
 0x569   : > { %v1846_v50 = vpop.eup %1845 }
 0x56a   : > { %v1175_v51 = vsel %vm750_vm3, %v1846_v50, 0.0 }
 0x56c   : > { %933 = vrot.lane.b32.xlu1 %v2725_v55, %s2264_s24  ;;  %s2143_s24 = sshll.u32 %s2271_s25, 4  ;;  %s2144_s24 = int_to_ptr.vmem [resolvable:$false] %s2143_s24 }
 0x56d   : > { %p2146_p5 = scmp.lt.s32.totalorder %s2795_s11, %s2144_s24 }
 0x570   : > { %1057 = vrot.lane.b32.xlu1 %v2721_v53, %s2265_s12  ;;  %s2145_s12 = scalar_lea.vmem %s2144_s24, 256 }
 0x571   : > { %p2147_p7 = scmp.lt.s32.totalorder %s2145_s12, %s2139_s26 }
 0x573   : > { %v806_v54 = vpop.xlane.xlu0 %805  ;;  %p2148_p2 = por %p2147_p7, %p2146_p5 }
 0x574   : > { %1847 = vrcp.f32 %v806_v54 }
 0x575   : > { %p2149_p8 = pnand %p2148_p2, %p2142_p11 }
 0x579   : > { %813 = vrot.lane.b32.xlu0 %v1539_v46, %s2266_s23 }
 0x57e   : > { %v1848_v53 = vpop.eup %1847 }
 0x57f   : > { %v808_v52 = vmul.f32 %v1848_v53, %v1840_v34 }
 0x581   : > { %v809_v61 = vpack.c.bf16 %v808_v52, %v808_v52 }
 0x594   : > { %1176 = vadd.xlane.f32.xlu1 %v1175_v51 }
 0x5a5   : > { %1181 = vrot.lane.b32.xlu1 %v2730_v56, %s2267_s21 }
 0x5e8   : > { %v929_v55 = vpop.xlane.xlu1 %928 }
 0x5e9   : > { %1849 = vrcp.f32 %v929_v55 }
 0x5ec   : > { %v934_v60 = vpop.permute.xlu1 %933 }
 0x5ed   : > { %v939_v56 = vsel %vm818_vm5, %v934_v60, 0 }
 0x5f0   : > { %v1053_v57 = vpop.xlane.xlu0 %1052  ;;  %v1058_v0 = vpop.permute.xlu1 %1057 }
 0x5f1   : > { %1851 = vrcp.f32 %v1053_v57  ;;  %v1063_v4 = vsel %vm818_vm5, %v1058_v0, 0 }
 0x5f3   : > { %v1850_v62 = vpop.eup %1849 }
 0x5f4   : > { %v814_v58 = vpop.permute.xlu0 %813  ;;  %v931_v63 = vmul.f32 %v1850_v62, %v1842_v42 }
 0x5f5   : > { %v820_v59 = vsel %vm818_vm5, %v814_v58, 0 }
 0x5f6   : > { %1614 = vmatpush3.bf16.msra.mxu1 %v820_v59  ;;  %v932_v2 = vpack.c.bf16 %v931_v63, %v931_v63 }
 0x5f7   : > { %1625 = vmatprep.subr.bf16.mxu1 %v2259_v16 }
 0x5f9   : > { %1616 = vmatmul.mubr.msk.bf16.vlgmr.msra.gmra.mrb[4].mxu1 %vm750_vm3, %v809_v61 }
 0x5fa   : > { %1626 = vmatpush3.bf16.msra.mxu1 %v939_v56  ;;  %1627 = vmatprep.mubr.msk.bf16.mxu1 %vm2260_vm1, %v2259_v16 }
 0x5fb   : > { %1637 = vmatprep.subr.bf16.mxu1 %v2259_v16  ;;  %v1852_v3 = vpop.eup %1851 }
 0x5fc   : > { %v1055_v5 = vmul.f32 %v1852_v3, %v1844_v44 }
 0x5fe   : > { %v1056_v6 = vpack.c.bf16 %v1055_v5, %v1055_v5 }
 0x601   : > { %1628 = vmatmul.mubr.msk.bf16.vlgmr.msra.gmra.mrb[8].mxu1 %vm750_vm3, %v932_v2 }
 0x602   : > { %1638 = vmatpush3.bf16.msra.mxu1 %v1063_v4  ;;  %1639 = vmatprep.mubr.msk.bf16.mxu1 %vm2260_vm1, %v2259_v16 }
 0x603   : > { %1649 = vmatprep.subr.bf16.mxu1 %v2259_v16 }
 0x609   : > { %1640 = vmatmul.mubr.msk.bf16.vlgmr.msra.gmra.mrb[12].mxu1 %vm750_vm3, %v1056_v6 }
 0x60a   : > { %1651 = vmatprep.mubr.msk.bf16.mxu1 %vm2260_vm1, %v2259_v16 }
 0x621   : > { %v1177_v7 = vpop.xlane.xlu1 %1176 }
 0x622   : > { %1853 = vrcp.f32 %v1177_v7 }
 0x625   : > { %v1182_v8 = vpop.permute.xlu1 %1181 }
 0x626   : > { %v1187_v9 = vsel %vm818_vm5, %v1182_v8, 0 }
 0x627   : > { %1650 = vmatpush3.bf16.msra.mxu1 %v1187_v9 }
 0x62c   : > { %v1854_v10 = vpop.eup %1853 }
 0x62d   : > { %v1179_v11 = vmul.f32 %v1854_v10, %v1846_v50 }
 0x62f   : > { %v1180_v12 = vpack.c.bf16 %v1179_v11, %v1179_v11 }
 0x631   : > { %1652 = vmatmul.mubr.msk.bf16.vlgmr.msra.gmra.mrb[16].mxu1 %vm750_vm3, %v1180_v12 }
 0x6cc   : > { %v856_v13 = vpop.f32.mrb[4].mxu1 }
 0x6cd   : > { %v862_v14 = vpack.c.bf16 %v856_v13, %v856_v13  ;;  %v1617_v15 = vpop.f32.mrb[5].mxu1 }
 0x6ce   : > { %v859_v17 = vpop.f32.mrb[6].mxu1 }
 0x6cf   : > { %864 = vst.msk [vmem:[#allocation3] sm:$0xf] %vm863_vm6, %v862_v14  ;;  %v1618_v18 = vpop.f32.mrb[7].mxu1 }
 0x6d4   : > { %v975_v19 = vpop.f32.mrb[8].mxu1 }
 0x6d5   : > { %v1561_v20 = vpack.c.bf16 %v975_v19, %v975_v19  ;;  %v1629_v21 = vpop.f32.mrb[9].mxu1 }
 0x6d6   : > { %v978_v22 = vpop.f32.mrb[10].mxu1 }
 0x6d7   : > { %985 = vrot.lane.b32.xlu0 %v1561_v20, %s2268_s6  ;;  %v1630_v23 = vpop.f32.mrb[11].mxu1 }
 0x6dc   : > { %v1099_v24 = vpop.f32.mrb[12].mxu1 }
 0x6dd   : > { %v1562_v25 = vpack.c.bf16 %v1099_v24, %v1099_v24  ;;  %v1641_v26 = vpop.f32.mrb[13].mxu1 }
 0x6de   : > { %v1102_v27 = vpop.f32.mrb[14].mxu1 }
 0x6df   : > { %1109 = vrot.lane.b32.xlu1 %v1562_v25, %s2269_s2  ;;  %v1642_v28 = vpop.f32.mrb[15].mxu1 }
 0x704   : > { %v1223_v31 = vpop.f32.mrb[16].mxu1 }
 0x705   : > { %v1563_v32 = vpack.c.bf16 %v1223_v31, %v1223_v31  ;;  %v1653_v33 = vpop.f32.mrb[17].mxu1 }
 0x706   : > { %v1226_v34 = vpop.f32.mrb[18].mxu1 }
 0x707   : > { %1233 = vrot.lane.b32.xlu0 %v1563_v32, %s2270_s30  ;;  %v1654_v35 = vpop.f32.mrb[19].mxu1 }
 0x749   : > { %v986_v36 = vpop.permute.xlu0 %985 }
 0x74a   : > { %989 = vst.msk [vmem:[#allocation3] sm:$0xf] %vm988_vm7, %v986_v36 }
 0x751   : > { %v1110_v37 = vpop.permute.xlu1 %1109 }
 0x752   : > { %1113 = vst.msk [vmem:[#allocation3] sm:$0xf] %vm1112_vm8, %v1110_v37 }
 0x779   : > { %v1234_v38 = vpop.permute.xlu0 %1233 }
 0x77a   : > { %1237 = vst.msk [vmem:[#allocation3] sm:$0xf] %vm1236_vm9, %v1234_v38 }
 0x781   : > { %v1238_v16 = vld [vmem:[#allocation3] sm:$0xf] }
 0x782   : > { %1660 = vmatmul.mubr.msk.bf16.vlgmr.msra.gmra.mrb[20].mxu0 %vm543_vm0, %v1238_v16 }
 0x855   : > { %v1292_v39 = vpop.f32.mrb[20].mxu0 }
 0x856   : > { %v1298_v41 = vadd.f32 %v1292_v39, %v2695_v1  ;;  %v1661_v42 = vpop.f32.mrb[21].mxu0 }
 0x857   : > { %v1295_v43 = vpop.f32.mrb[22].mxu0 }
 0x858   : > { %v1306_v44 = vadd.f32 %v1556_v40, %v1298_v41  ;;  %v1662_v45 = vpop.f32.mrb[23].mxu0 }
 0x85a   : > { %1307 = vst.msk [vmem:[%s534_s28] sm:$0xff] %vm543_vm0, %v1306_v44 }
 0x85b   : > { %2152 = shalt.err (!%p2149_p8)
}
 0x85c   : > { %s2153_s4 = scalar_lea.hbm %s2793_s19, 128  ;;  %s2157_s6 = scalar_lea.hbm %s2897_s27, 256 }
 0x85d   : > { %p2154_p9 = scmp.ne.s32.totalorder %s2793_s19, %s2153_s4  ;;  %p2158_p3 = scmp.lt.u32.totalorder %s2793_s19, %s2897_s27 }
 0x85e   : > { %p2159_p12 = scmp.lt.u32.totalorder %s2157_s6, %s2153_s4  ;;  %p2161_p10 = scmp.lt.u32.totalorder %s2153_s4, %s2793_s19 }
 0x85f   : > { %p2155_p1 = pnand %p2154_p9, %p2898_p13 }
 0x860   : > { %p2160_p0 = por %p2159_p12, %p2158_p3 }
 0x861   : > { %p2156_p6 = pneg %p2155_p1 }
 0x862   : > { %p2162_p4 = por %p2161_p10, %p2160_p0 }
 0x864   : > { %p2163_p11 = pnand %p2162_p4, %p2156_p6 }
 0x866   : > { %2166 = shalt.err (!%p2163_p11)
}
 0x867   : > { %1699 = dma.vmem_to_hbm [thread:$0]  (%p2898_p13), %s2795_s11, 128, %s2793_s19, %s1309_s8  }
 0x868 PF: > { %s1335_s22 = sand.u32 1, %s2225_s13   ;;  %p2899_p5 = scmp.ne.s32.totalorder %s2882_s7, 0 }
 0x869   : > { %p2900_p7 = scmp.ge.s32.totalorder %s2245_s18, 2  ;;  %s1336_s29 = scalar_lea.sflag [#allocation6], %s1335_s22 }
 0x86b   : > { %p1734_p2 = pnand %p2900_p7, %p2899_p5 }
 0x86d   : > { %2220 = dma.done.wait (!%p1734_p2), %s1336_s29, 128  }
 0x86e   : > { %2222 = vsyncadd (!%p1734_p2), %s1336_s29, 4294967168  ;;  %s33_s18 = sadd.s32 1, %s2245_s18   ;;  %s2901_s3 = smov %s2908_s16 }
 0x86f   : > { %p30_p8 = scmp.ge.s32.totalorder %s33_s18, 4   ;;  %s2902_s13 = smov %s2229_s14 }
 0x870   : > { %s2903_s14 = smov %s2233_s15  ;;  %s2904_s15 = smov %s2579_s5 }
 0x871   : > { %s2905_s16 = smov %s2241_s17  ;;  %s2906_s17 = smov %s2901_s3 }
 0x872   :  { %32 = sbr.rel (!%p30_p8) target bundleno = 21 (0x15), region = 154 }
 0x879   :  { %1341 = vsyncpa [#allocation5], 1 }
 0x87a   :  { %1343 = vsyncpa [#allocation5 + $0x1], 1 }
 0x87b   :  { %1344 = vsyncpa [#allocation8], 1 }
 0x87c   :  { %1346 = vsyncpa [#allocation8 + $0x1], 1 }
 0x87d   :  { %1347 = vsyncpa [#allocation11], 1 }
 0x87e   :  { %1348 = vsyncpa [#allocation14], 1 }
 0x87f   :  { %1349 = vsyncpa [#allocation17], 1 }
 0x880   :  { %1350 = vsyncpa [#allocation20], 1 }
 0x881   :  { %1351 = vsyncpa [#allocation6], 1 }
 0x882   :  { %1353 = vsyncpa [#allocation6 + $0x1], 1 }

</bundles_post_ra>
